<compile_context>
chip_gen: v7x
topology: tpu7x:2x2x1
jax: 0.10.0
libtpu: 0.0.40
codegen_flags: <defaults>
</compile_context>

<pallas_src>
import functools

import jax
import jax.numpy as jnp
import numpy as np
from jax import lax
from jax.experimental import pallas as pl
from jax.experimental.pallas import tpu as pltpu

LN_EPS = 1e-5
MATMUL_DTYPE = jnp.bfloat16      # MXU-native; f32 accumulation everywhere
ACT_DTYPE = jnp.bfloat16         # inter-kernel activation storage


# ----------------------------------------------------------------------------
# helpers
# ----------------------------------------------------------------------------
@functools.lru_cache(maxsize=None)
def _vmem_limit_bytes():
    cap = 64 * 1024 * 1024
    try:
        info = pltpu.get_tpu_info()
        cap = int(getattr(info, "vmem_capacity_bytes", cap))
    except Exception:
        pass
    # ~half of physical VMEM: 64 MiB on v5e/v6e (128 MiB), 32 MiB on v7x (64 MiB)
    return max(32 * 1024 * 1024, min(cap // 2, 96 * 1024 * 1024))


def _cparams(dims):
    return pltpu.CompilerParams(dimension_semantics=dims,
                                vmem_limit_bytes=_vmem_limit_bytes())


def _bcast_spec(shape):
    """Block covering the whole (weight) array, same block for every grid step."""
    zeros = (0,) * len(shape)
    return pl.BlockSpec(shape, lambda *_: zeros)


def _layernorm(x, gamma, beta, eps=LN_EPS):
    mean = jnp.mean(x, axis=-1, keepdims=True)
    xc = x - mean
    var = jnp.mean(xc * xc, axis=-1, keepdims=True)     # biased var (PyTorch LN)
    return xc * lax.rsqrt(var + eps) * gamma + beta


def _mha_out(q, k, v, nhead, wo_ref, bo_ref):
    """q:(T,D), k/v:(S,D) bf16, lane-dense (Q pre-scaled by 1/sqrt(dh) at pack
    time).  Per-head attention with f32 softmax stats (EUP approx reciprocal),
    lane-dense context concat and a single (T,D)@(D,D) output projection."""
    D = q.shape[-1]
    dh = D // nhead
    ctx = []
    for h in range(nhead):
        sl = slice(h * dh, (h + 1) * dh)
        s = lax.dot_general(q[:, sl], k[:, sl], (((1,), (1,)), ((), ())),
                            preferred_element_type=jnp.float32)        # (T,S)
        s = s - jnp.max(s, axis=-1, keepdims=True)
        p = jnp.exp(s)
        p = p * pl.reciprocal(jnp.sum(p, axis=-1, keepdims=True), approx=True)
        ctx.append(jnp.dot(p.astype(MATMUL_DTYPE), v[:, sl],
                           preferred_element_type=jnp.float32))         # (T,dh)
    oc = jnp.concatenate(ctx, axis=-1).astype(MATMUL_DTYPE)             # (T,D)
    return jnp.dot(oc, wo_ref[...], preferred_element_type=jnp.float32) + bo_ref[...]


def _ffn(x_f32, w1_ref, b1_ref, w2_ref, b2_ref):
    h = jnp.dot(x_f32.astype(MATMUL_DTYPE), w1_ref[...],
                preferred_element_type=jnp.float32) + b1_ref[...]
    h = jnp.maximum(h, 0.0)                                             # relu
    return jnp.dot(h.astype(MATMUL_DTYPE), w2_ref[...],
                   preferred_element_type=jnp.float32) + b2_ref[...]


# ----------------------------------------------------------------------------
# encoder self-attention + residual + LayerNorm  (query-tiled, K/V cached)
# ----------------------------------------------------------------------------
def _enc_self_attn_ln_kernel(nhead,
                             xq_ref, xkv_ref,
                             wq_ref, bq_ref, wkv_ref, bkv_ref,
                             wo_ref, bo_ref, g_ref, b_ref,
                             o_ref, kv_sc):
    D = wq_ref.shape[0]

    # K/V projection once per batch element (first query tile), kept in VMEM
    @pl.when(pl.program_id(1) == 0)
    def _():
        xkv = xkv_ref[0].astype(MATMUL_DTYPE)                           # (S,D)
        kv = jnp.dot(xkv, wkv_ref[...],
                     preferred_element_type=jnp.float32) + bkv_ref[...]  # (S,2D)
        kv_sc[...] = kv.astype(MATMUL_DTYPE)

    xq = xq_ref[0]                                                      # (tq,D)
    q = jnp.dot(xq.astype(MATMUL_DTYPE), wq_ref[...],
                preferred_element_type=jnp.float32) + bq_ref[...]       # pre-scaled
    kv = kv_sc[...]
    attn = _mha_out(q.astype(MATMUL_DTYPE), kv[:, :D], kv[:, D:],
                    nhead, wo_ref, bo_ref)
    o_ref[0] = _layernorm(xq.astype(jnp.float32) + attn,
                          g_ref[0], b_ref[0]).astype(o_ref.dtype)


def enc_self_attn_ln(x, w_q, b_q, w_kv, b_kv, wo, bo, g, b, *, nhead):
    B, S, D = x.shape
    tq = S if S <= 128 else 128
    n_qt = pl.cdiv(S, tq)
    return pl.pallas_call(
        functools.partial(_enc_self_attn_ln_kernel, nhead),
        out_shape=jax.ShapeDtypeStruct((B, S, D), ACT_DTYPE),
        grid=(B, n_qt),
        in_specs=[
            pl.BlockSpec((1, tq, D), lambda bi, qt: (bi, qt, 0)),   # query tile
            pl.BlockSpec((1, S, D), lambda bi, qt: (bi, 0, 0)),     # full K/V seq
            _bcast_spec((D, D)), _bcast_spec((1, D)),
            _bcast_spec((D, 2 * D)), _bcast_spec((1, 2 * D)),
            _bcast_spec((D, D)), _bcast_spec((1, D)),
            _bcast_spec((1, D)), _bcast_spec((1, D)),
        ],
        out_specs=pl.BlockSpec((1, tq, D), lambda bi, qt: (bi, qt, 0)),
        scratch_shapes=[pltpu.VMEM((S, 2 * D), MATMUL_DTYPE)],
        compiler_params=_cparams(("parallel", "arbitrary")),
    )(x, x, w_q, b_q, w_kv, b_kv, wo, bo, g, b)


# ----------------------------------------------------------------------------
# encoder FFN + residual + LayerNorm (row-tiled)
# ----------------------------------------------------------------------------
def _ffn_ln_kernel(x_ref, w1_ref, b1_ref, w2_ref, b2_ref, g_ref, b_ref, o_ref):
    x = x_ref[...].astype(jnp.float32)                                  # (R,D)
    y = _ffn(x, w1_ref, b1_ref, w2_ref, b2_ref)
    o_ref[...] = _layernorm(x + y, g_ref[0], b_ref[0]).astype(o_ref.dtype)


def ffn_ln(x, w1_t, b1, w2_t, b2, g, b):
    B, L, D = x.shape
    F = w1_t.shape[1]
    rows = B * L
    rb = rows if rows <= 1024 else 1024
    out = pl.pallas_call(
        _ffn_ln_kernel,
        out_shape=jax.ShapeDtypeStruct((rows, D), ACT_DTYPE),
        grid=(pl.cdiv(rows, rb),),
        in_specs=[
            pl.BlockSpec((rb, D), lambda i: (i, 0)),
            _bcast_spec((D, F)), _bcast_spec((1, F)),
            _bcast_spec((F, D)), _bcast_spec((1, D)),
            _bcast_spec((1, D)), _bcast_spec((1, D)),
        ],
        out_specs=pl.BlockSpec((rb, D), lambda i: (i, 0)),
        compiler_params=_cparams(("parallel",)),
    )(x.reshape(rows, D), w1_t, b1, w2_t, b2, g, b)
    return out.reshape(B, L, D)


# ----------------------------------------------------------------------------
# fused decoder layer: self-attn + cross-attn + FFN (+ final dec norm on last)
# ----------------------------------------------------------------------------
def _dec_layer_kernel(nhead, apply_final_norm,
                      tgt_ref, qpos_ref, mem_ref,
                      sa_wqk_ref, sa_bqk_ref, sa_wv_ref, sa_bv_ref,
                      sa_wo_ref, sa_bo_ref, n1g_ref, n1b_ref,
                      ca_wq_ref, ca_bq_ref, ca_wkv_ref, ca_bkv_ref,
                      ca_wo_ref, ca_bo_ref, n2g_ref, n2b_ref,
                      w1_ref, b1_ref, w2_ref, b2_ref, n3g_ref, n3b_ref,
                      fng_ref, fnb_ref, o_ref):
    D = sa_wv_ref.shape[0]
    tgt = tgt_ref[0].astype(jnp.float32)                                # (T,D)
    qpos = qpos_ref[0].astype(jnp.float32)                              # (T,D)

    # ---- self-attention: q = k = tgt + query_pos, v = tgt; residual + LN1
    xqk = (tgt + qpos).astype(MATMUL_DTYPE)
    qk = (jnp.dot(xqk, sa_wqk_ref[...], preferred_element_type=jnp.float32)
          + sa_bqk_ref[...]).astype(MATMUL_DTYPE)                       # (T,2D)
    v = (jnp.dot(tgt.astype(MATMUL_DTYPE), sa_wv_ref[...],
                 preferred_element_type=jnp.float32)
         + sa_bv_ref[...]).astype(MATMUL_DTYPE)                         # (T,D)
    attn = _mha_out(qk[:, :D], qk[:, D:], v, nhead, sa_wo_ref, sa_bo_ref)
    tgt = _layernorm(tgt + attn, n1g_ref[0], n1b_ref[0])

    # ---- cross-attention: q = tgt + query_pos, k = v = memory; residual + LN2
    xq = (tgt + qpos).astype(MATMUL_DTYPE)
    q = (jnp.dot(xq, ca_wq_ref[...], preferred_element_type=jnp.float32)
         + ca_bq_ref[...]).astype(MATMUL_DTYPE)                         # (T,D)
    mem = mem_ref[0].astype(MATMUL_DTYPE)                               # (S,D)
    kv = (jnp.dot(mem, ca_wkv_ref[...], preferred_element_type=jnp.float32)
          + ca_bkv_ref[...]).astype(MATMUL_DTYPE)                       # (S,2D)
    attn = _mha_out(q, kv[:, :D], kv[:, D:], nhead, ca_wo_ref, ca_bo_ref)
    tgt = _layernorm(tgt + attn, n2g_ref[0], n2b_ref[0])

    # ---- FFN + residual + LN3
    y = _ffn(tgt, w1_ref, b1_ref, w2_ref, b2_ref)
    tgt = _layernorm(tgt + y, n3g_ref[0], n3b_ref[0])

    if apply_final_norm:   # fused final decoder LayerNorm (last layer only)
        tgt = _layernorm(tgt, fng_ref[0], fnb_ref[0])
    o_ref[0] = tgt.astype(o_ref.dtype)


def decoder_layer(tgt, qpos, memory, lp, fng, fnb, *, nhead, final_norm, out_dtype):
    B, T, D = tgt.shape
    S = memory.shape[1]
    F = lp["w1_t"].shape[1]
    in_specs = [
        pl.BlockSpec((1, T, D), lambda bi: (bi, 0, 0)),     # tgt
        pl.BlockSpec((1, T, D), lambda bi: (bi, 0, 0)),     # query_pos
        pl.BlockSpec((1, S, D), lambda bi: (bi, 0, 0)),     # memory
        _bcast_spec((D, 2 * D)), _bcast_spec((1, 2 * D)),   # sa qk
        _bcast_spec((D, D)), _bcast_spec((1, D)),           # sa v
        _bcast_spec((D, D)), _bcast_spec((1, D)),           # sa out
        _bcast_spec((1, D)), _bcast_spec((1, D)),           # norm1
        _bcast_spec((D, D)), _bcast_spec((1, D)),           # ca q
        _bcast_spec((D, 2 * D)), _bcast_spec((1, 2 * D)),   # ca kv
        _bcast_spec((D, D)), _bcast_spec((1, D)),           # ca out
        _bcast_spec((1, D)), _bcast_spec((1, D)),           # norm2
        _bcast_spec((D, F)), _bcast_spec((1, F)),           # linear1
        _bcast_spec((F, D)), _bcast_spec((1, D)),           # linear2
        _bcast_spec((1, D)), _bcast_spec((1, D)),           # norm3
        _bcast_spec((1, D)), _bcast_spec((1, D)),           # final dec norm
    ]
    return pl.pallas_call(
        functools.partial(_dec_layer_kernel, nhead, final_norm),
        out_shape=jax.ShapeDtypeStruct((B, T, D), out_dtype),
        grid=(B,),
        in_specs=in_specs,
        out_specs=pl.BlockSpec((1, T, D), lambda bi: (bi, 0, 0)),
        compiler_params=_cparams(("parallel",)),
    )(tgt, qpos, memory,
      lp["sa_w_qk"], lp["sa_b_qk"], lp["sa_w_v"], lp["sa_b_v"],
      lp["sa_wo"], lp["sa_bo"], lp["n1_g"], lp["n1_b"],
      lp["ca_w_q"], lp["ca_b_q"], lp["ca_w_kv"], lp["ca_b_kv"],
      lp["ca_wo"], lp["ca_bo"], lp["n2_g"], lp["n2_b"],
      lp["w1_t"], lp["b1"], lp["w2_t"], lp["b2"], lp["n3_g"], lp["n3_b"],
      fng, fnb)


# ----------------------------------------------------------------------------
# layer / model forward (eval mode: dropout = identity)
# ----------------------------------------------------------------------------
def encoder_layer_forward(lp, x, *, nhead):
    x = enc_self_attn_ln(x, lp["w_q"], lp["b_q"], lp["w_kv"], lp["b_kv"],
                         lp["wo"], lp["bo"], lp["n1_g"], lp["n1_b"], nhead=nhead)
    x = ffn_ln(x, lp["w1_t"], lp["b1"], lp["w2_t"], lp["b2"],
               lp["n2_g"], lp["n2_b"])
    return x


def transformer_forward(packed, src, query_embed, y_ind, *, nhead):
    """Matches Transformer.forward(src, query_embed, y_ind) in eval mode."""
    bs, c, h, w = src.shape
    memory = jnp.transpose(src.reshape(bs, c, h * w), (0, 2, 1)).astype(ACT_DTYPE)
    y_emb = query_embed[y_ind]                                     # (bs, nq, d) f32
    qpos = y_emb.astype(ACT_DTYPE)
    for lp in packed["encoder_layers"]:
        memory = encoder_layer_forward(lp, memory, nhead=nhead)
    out = jnp.zeros_like(qpos)                                     # tgt = 0
    n_dec = len(packed["decoder_layers"])
    for li, lp in enumerate(packed["decoder_layers"]):
        is_last = li == n_dec - 1
        out = decoder_layer(out, qpos, memory, lp,
                            packed["dec_norm_g"], packed["dec_norm_b"],
                            nhead=nhead, final_norm=is_last,
                            out_dtype=jnp.float32 if is_last else ACT_DTYPE)
    return jnp.concatenate([out, y_emb], axis=-1)                  # (bs, nq, 2d)


# ----------------------------------------------------------------------------
# host-side weight packing (one time): lane-dense, pre-transposed, bf16,
# 1/sqrt(dh) folded into the Q weights/bias
# ----------------------------------------------------------------------------
def pack_params(params, nhead):
    def ln(g, b):
        return (g.reshape(1, -1).astype(jnp.float32),
                b.reshape(1, -1).astype(jnp.float32))

    def attn_pieces(in_w, in_b, out_w, out_b):
        D = out_w.shape[0]
        dh = D // nhead
        scale = 1.0 / float(np.sqrt(dh))
        wq, wk, wv = in_w[:D], in_w[D:2 * D], in_w[2 * D:]
        bq, bk, bv = in_b[:D], in_b[D:2 * D], in_b[2 * D:]
        return dict(
            wq_t=(wq.T * scale).astype(MATMUL_DTYPE),
            bq=(bq * scale).reshape(1, D).astype(jnp.float32),
            wk_t=wk.T.astype(MATMUL_DTYPE), bk=bk.reshape(1, D).astype(jnp.float32),
            wv_t=wv.T.astype(MATMUL_DTYPE), bv=bv.reshape(1, D).astype(jnp.float32),
            wo_t=out_w.T.astype(MATMUL_DTYPE), bo=out_b.reshape(1, D).astype(jnp.float32),
        )

    packed = {"encoder_layers": [], "decoder_layers": []}
    packed["dec_norm_g"], packed["dec_norm_b"] = ln(params["dec_norm_g"],
                                                    params["dec_norm_b"])

    for p in params["encoder_layers"]:
        a = attn_pieces(p["in_w"], p["in_b"], p["out_w"], p["out_b"])
        n1g, n1b = ln(p["n1_g"], p["n1_b"])
        n2g, n2b = ln(p["n2_g"], p["n2_b"])
        packed["encoder_layers"].append(dict(
            w_q=a["wq_t"], b_q=a["bq"],
            w_kv=jnp.concatenate([a["wk_t"], a["wv_t"]], axis=1),
            b_kv=jnp.concatenate([a["bk"], a["bv"]], axis=1),
            wo=a["wo_t"], bo=a["bo"],
            n1_g=n1g, n1_b=n1b,
            w1_t=p["w1"].T.astype(MATMUL_DTYPE),
            b1=p["b1"].reshape(1, -1).astype(jnp.float32),
            w2_t=p["w2"].T.astype(MATMUL_DTYPE),
            b2=p["b2"].reshape(1, -1).astype(jnp.float32),
            n2_g=n2g, n2_b=n2b,
        ))
    for p in params["decoder_layers"]:
        sa = attn_pieces(p["sa_in_w"], p["sa_in_b"], p["sa_out_w"], p["sa_out_b"])
        ca = attn_pieces(p["ca_in_w"], p["ca_in_b"], p["ca_out_w"], p["ca_out_b"])
        n1g, n1b = ln(p["n1_g"], p["n1_b"])
        n2g, n2b = ln(p["n2_g"], p["n2_b"])
        n3g, n3b = ln(p["n3_g"], p["n3_b"])
        packed["decoder_layers"].append(dict(
            sa_w_qk=jnp.concatenate([sa["wq_t"], sa["wk_t"]], axis=1),
            sa_b_qk=jnp.concatenate([sa["bq"], sa["bk"]], axis=1),
            sa_w_v=sa["wv_t"], sa_b_v=sa["bv"], sa_wo=sa["wo_t"], sa_bo=sa["bo"],
            ca_w_q=ca["wq_t"], ca_b_q=ca["bq"],
            ca_w_kv=jnp.concatenate([ca["wk_t"], ca["wv_t"]], axis=1),
            ca_b_kv=jnp.concatenate([ca["bk"], ca["bv"]], axis=1),
            ca_wo=ca["wo_t"], ca_bo=ca["bo"],
            w1_t=p["w1"].T.astype(MATMUL_DTYPE),
            b1=p["b1"].reshape(1, -1).astype(jnp.float32),
            w2_t=p["w2"].T.astype(MATMUL_DTYPE),
            b2=p["b2"].reshape(1, -1).astype(jnp.float32),
            n1_g=n1g, n1_b=n1b, n2_g=n2g, n2_b=n2b, n3_g=n3g, n3_b=n3b,
        ))
    return packed


# ----------------------------------------------------------------------------
# raw parameter init (PyTorch-layout weights, f32)
# ----------------------------------------------------------------------------
def init_params(key, d_model, nhead, dim_ff, n_enc, n_dec):
    kit = iter(jax.random.split(key, 128))
    wstd = 1.0 / float(np.sqrt(d_model))

    def w(shape):
        return wstd * jax.random.normal(next(kit), shape, jnp.float32)

    def b(shape):
        return 0.02 * jax.random.normal(next(kit), shape, jnp.float32)

    ones = lambda: jnp.ones((d_model,), jnp.float32)
    zeros = lambda: jnp.zeros((d_model,), jnp.float32)

    def enc_layer():
        return {
            "in_w": w((3 * d_model, d_model)), "in_b": b((3 * d_model,)),
            "out_w": w((d_model, d_model)), "out_b": jnp.zeros((d_model,), jnp.float32),
            "w1": w((dim_ff, d_model)), "b1": b((dim_ff,)),
            "w2": w((d_model, dim_ff)), "b2": b((d_model,)),
            "n1_g": ones(), "n1_b": zeros(), "n2_g": ones(), "n2_b": zeros(),
        }

    def dec_layer():
        return {
            "sa_in_w": w((3 * d_model, d_model)), "sa_in_b": b((3 * d_model,)),
            "sa_out_w": w((d_model, d_model)), "sa_out_b": jnp.zeros((d_model,), jnp.float32),
            "ca_in_w": w((3 * d_model, d_model)), "ca_in_b": b((3 * d_model,)),
            "ca_out_w": w((d_model, d_model)), "ca_out_b": jnp.zeros((d_model,), jnp.float32),
            "w1": w((dim_ff, d_model)), "b1": b((dim_ff,)),
            "w2": w((d_model, dim_ff)), "b2": b((d_model,)),
            "n1_g": ones(), "n1_b": zeros(), "n2_g": ones(), "n2_b": zeros(),
            "n3_g": ones(), "n3_b": zeros(),
        }

    return {
        "encoder_layers": [enc_layer() for _ in range(n_enc)],
        "decoder_layers": [dec_layer() for _ in range(n_dec)],
        "dec_norm_g": jnp.ones((d_model,), jnp.float32),
        "dec_norm_b": jnp.zeros((d_model,), jnp.float32),
    }


# ----------------------------------------------------------------------------
# pure-JAX f32 reference (same math as the PyTorch module) for sanity checking
# ----------------------------------------------------------------------------
def _ref_ln(x, g, b, eps=LN_EPS):
    m = x.mean(-1, keepdims=True)
    v = ((x - m) ** 2).mean(-1, keepdims=True)
    return (x - m) / jnp.sqrt(v + eps) * g + b


def _ref_mha(q_in, k_in, v_in, in_w, in_b, out_w, out_b, nhead):
    B, T, D = q_in.shape
    S = k_in.shape[1]
    dh = D // nhead
    wq, wk, wv = in_w[:D], in_w[D:2 * D], in_w[2 * D:]
    bq, bk, bv = in_b[:D], in_b[D:2 * D], in_b[2 * D:]
    Q = q_in @ wq.T + bq
    K = k_in @ wk.T + bk
    V = v_in @ wv.T + bv
    Qh = Q.reshape(B, T, nhead, dh).transpose(0, 2, 1, 3)
    Kh = K.reshape(B, S, nhead, dh).transpose(0, 2, 1, 3)
    Vh = V.reshape(B, S, nhead, dh).transpose(0, 2, 1, 3)
    s = jnp.einsum('bhtd,bhsd->bhts', Qh, Kh) / np.sqrt(dh)
    p = jax.nn.softmax(s, axis=-1)
    o = jnp.einsum('bhts,bhsd->bhtd', p, Vh).transpose(0, 2, 1, 3).reshape(B, T, D)
    return o @ out_w.T + out_b


def _ref_encoder_layer(p, x, nhead):
    sa = _ref_mha(x, x, x, p["in_w"], p["in_b"], p["out_w"], p["out_b"], nhead)
    x = _ref_ln(x + sa, p["n1_g"], p["n1_b"])
    ff = jnp.maximum(x @ p["w1"].T + p["b1"], 0.0) @ p["w2"].T + p["b2"]
    return _ref_ln(x + ff, p["n2_g"], p["n2_b"])


def _ref_decoder_layer(p, tgt, memory, qpos, nhead):
    q = tgt + qpos
    sa = _ref_mha(q, q, tgt, p["sa_in_w"], p["sa_in_b"], p["sa_out_w"], p["sa_out_b"], nhead)
    tgt = _ref_ln(tgt + sa, p["n1_g"], p["n1_b"])
    ca = _ref_mha(tgt + qpos, memory, memory,
                  p["ca_in_w"], p["ca_in_b"], p["ca_out_w"], p["ca_out_b"], nhead)
    tgt = _ref_ln(tgt + ca, p["n2_g"], p["n2_b"])
    ff = jnp.maximum(tgt @ p["w1"].T + p["b1"], 0.0) @ p["w2"].T + p["b2"]
    return _ref_ln(tgt + ff, p["n3_g"], p["n3_b"])


def _ref_transformer(params, src, query_embed, y_ind, nhead):
    bs, c, h, w = src.shape
    memory = jnp.transpose(src.reshape(bs, c, h * w), (0, 2, 1))
    y_emb = query_embed[y_ind]
    for p in params["encoder_layers"]:
        memory = _ref_encoder_layer(p, memory, nhead)
    out = jnp.zeros_like(y_emb)
    for p in params["decoder_layers"]:
        out = _ref_decoder_layer(p, out, memory, y_emb, nhead)
    out = _ref_ln(out, params["dec_norm_g"], params["dec_norm_b"])
    return jnp.concatenate([out, y_emb], axis=-1)


# ----------------------------------------------------------------------------
if __name__ == "__main__":
    d_model, nhead, dim_ff = 32, 4, 64
    n_enc, n_dec = 2, 2
    bs, h, w = 2, 4, 4                 # -> memory length = 16
    num_queries, num_embed = 8, 10

    key = jax.random.PRNGKey(0)
    kp, ks, ke, ki = jax.random.split(key, 4)
    params = init_params(kp, d_model, nhead, dim_ff, n_enc, n_dec)
    packed = pack_params(params, nhead)

    src = jax.random.normal(ks, (bs, d_model, h, w), jnp.float32)
    query_embed = jax.random.normal(ke, (num_embed, d_model), jnp.float32)
    y_ind = jax.random.randint(ki, (bs, num_queries), 0, num_embed)

    fwd = jax.jit(functools.partial(transformer_forward, nhead=nhead))
    out = fwd(packed, src, query_embed, y_ind)
    out = jax.block_until_ready(out)

    ref = _ref_transformer(params, src, query_embed, y_ind, nhead)
    # bf16 matmuls + bf16 inter-layer activation storage (f32 stats inside the
    # kernels) + EUP approx reciprocal => loose tolerance vs. the f32 reference
    np.testing.assert_allclose(np.asarray(out), np.asarray(ref), rtol=1e-1, atol=1e-1)

    print("KERNEL_OK")
</pallas_src>

<mosaic_0001>
module attributes {stable_mosaic.version = 11 : i64} {
  func.func @_enc_self_attn_ln_kernel(%arg0: i32, %arg1: i32, %arg2: memref<1x16x32xbf16, #tpu.memory_space<vmem>>, %arg3: memref<1x16x32xbf16, #tpu.memory_space<vmem>>, %arg4: memref<32x32xbf16, #tpu.memory_space<vmem>>, %arg5: memref<1x32xf32, #tpu.memory_space<vmem>>, %arg6: memref<32x64xbf16, #tpu.memory_space<vmem>>, %arg7: memref<1x64xf32, #tpu.memory_space<vmem>>, %arg8: memref<32x32xbf16, #tpu.memory_space<vmem>>, %arg9: memref<1x32xf32, #tpu.memory_space<vmem>>, %arg10: memref<1x32xf32, #tpu.memory_space<vmem>>, %arg11: memref<1x32xf32, #tpu.memory_space<vmem>>, %arg12: memref<1x16x32xbf16, #tpu.memory_space<vmem>>, %arg13: memref<16x64xbf16, #tpu.memory_space<vmem>>) attributes {dimension_semantics = [#tpu.dimension_semantics<parallel>, #tpu.dimension_semantics<arbitrary>], iteration_bounds = array<i64: 2, 1>, scalar_prefetch = 0 : i64, scratch_operands = 1 : i64, tpu.core_type = #tpu.core_type<tc>, window_params = [{transform_indices = @transform_0, window_bounds = array<i64: 1, 16, 32>}, {transform_indices = @transform_1, window_bounds = array<i64: 1, 16, 32>}, {pipeline_mode = #tpu.pipeline_mode<synchronous>, transform_indices = @transform_2, window_bounds = array<i64: 32, 32>}, {pipeline_mode = #tpu.pipeline_mode<synchronous>, transform_indices = @transform_3, window_bounds = array<i64: 1, 32>}, {pipeline_mode = #tpu.pipeline_mode<synchronous>, transform_indices = @transform_4, window_bounds = array<i64: 32, 64>}, {pipeline_mode = #tpu.pipeline_mode<synchronous>, transform_indices = @transform_5, window_bounds = array<i64: 1, 64>}, {pipeline_mode = #tpu.pipeline_mode<synchronous>, transform_indices = @transform_6, window_bounds = array<i64: 32, 32>}, {pipeline_mode = #tpu.pipeline_mode<synchronous>, transform_indices = @transform_7, window_bounds = array<i64: 1, 32>}, {pipeline_mode = #tpu.pipeline_mode<synchronous>, transform_indices = @transform_8, window_bounds = array<i64: 1, 32>}, {pipeline_mode = #tpu.pipeline_mode<synchronous>, transform_indices = @transform_9, window_bounds = array<i64: 1, 32>}, {transform_indices = @transform_10, window_bounds = array<i64: 1, 16, 32>}]} {
    %c0_i32 = arith.constant 0 : i32
    %0 = arith.cmpi eq, %arg1, %c0_i32 : i32
    %1 = arith.extui %0 : i1 to i32
    %c0_i32_0 = arith.constant 0 : i32
    %2 = arith.cmpi ne, %1, %c0_i32_0 : i32
    scf.if %2 {
      %c0_42 = arith.constant 0 : index
      %c0_43 = arith.constant 0 : index
      %c0_44 = arith.constant 0 : index
      %117 = vector.load %arg3[%c0_42, %c0_43, %c0_44] : memref<1x16x32xbf16, #tpu.memory_space<vmem>>, vector<1x16x32xbf16>
      %118 = vector.shape_cast %117 : vector<1x16x32xbf16> to vector<16x32xbf16>
      %c0_45 = arith.constant 0 : index
      %c0_46 = arith.constant 0 : index
      %119 = vector.load %arg6[%c0_45, %c0_46] : memref<32x64xbf16, #tpu.memory_space<vmem>>, vector<32x64xbf16>
      %cst_47 = arith.constant dense<0.000000e+00> : vector<16x64xf32>
      %120 = tpu.matmul %118, %119, %cst_47 {dimension_numbers = #tpu.dot_dimension_numbers<[1], [0], [0], [1], [0, 0, 1, 1], [], []>} : vector<16x32xbf16>, vector<32x64xbf16>, vector<16x64xf32> -> vector<16x64xf32>
      %c0_48 = arith.constant 0 : index
      %c0_49 = arith.constant 0 : index
      %121 = vector.load %arg7[%c0_48, %c0_49] : memref<1x64xf32, #tpu.memory_space<vmem>>, vector<1x64xf32>
      %122 = vector.broadcast %121 : vector<1x64xf32> to vector<16x64xf32>
      %123 = arith.addf %120, %122 : vector<16x64xf32>
      %124 = arith.truncf %123 : vector<16x64xf32> to vector<16x64xbf16>
      %c0_50 = arith.constant 0 : index
      %c0_51 = arith.constant 0 : index
      %125 = vector.load %arg13[%c0_50, %c0_51] : memref<16x64xbf16, #tpu.memory_space<vmem>>, vector<16x64xbf16>
      tpu.vector_store %arg13[%c0_50, %c0_51], %124 {strides = array<i32>} : memref<16x64xbf16, #tpu.memory_space<vmem>>, vector<16x64xbf16>,
    } else {
    }
    %c0 = arith.constant 0 : index
    %c0_1 = arith.constant 0 : index
    %c0_2 = arith.constant 0 : index
    %3 = vector.load %arg2[%c0, %c0_1, %c0_2] : memref<1x16x32xbf16, #tpu.memory_space<vmem>>, vector<1x16x32xbf16>
    %4 = vector.shape_cast %3 : vector<1x16x32xbf16> to vector<16x32xbf16>
    %c0_3 = arith.constant 0 : index
    %c0_4 = arith.constant 0 : index
    %5 = vector.load %arg4[%c0_3, %c0_4] : memref<32x32xbf16, #tpu.memory_space<vmem>>, vector<32x32xbf16>
    %cst = arith.constant dense<0.000000e+00> : vector<16x32xf32>
    %6 = tpu.matmul %4, %5, %cst {dimension_numbers = #tpu.dot_dimension_numbers<[1], [0], [0], [1], [0, 0, 1, 1], [], []>} : vector<16x32xbf16>, vector<32x32xbf16>, vector<16x32xf32> -> vector<16x32xf32>
    %c0_5 = arith.constant 0 : index
    %c0_6 = arith.constant 0 : index
    %7 = vector.load %arg5[%c0_5, %c0_6] : memref<1x32xf32, #tpu.memory_space<vmem>>, vector<1x32xf32>
    %8 = vector.broadcast %7 : vector<1x32xf32> to vector<16x32xf32>
    %9 = arith.addf %6, %8 : vector<16x32xf32>
    %c0_7 = arith.constant 0 : index
    %c0_8 = arith.constant 0 : index
    %10 = vector.load %arg13[%c0_7, %c0_8] : memref<16x64xbf16, #tpu.memory_space<vmem>>, vector<16x64xbf16>
    %11 = arith.truncf %9 : vector<16x32xf32> to vector<16x32xbf16>
    %12 = vector.extract_strided_slice %10 {offsets = [0, 0], sizes = [16, 32], strides = [1, 1]} : vector<16x64xbf16> to vector<16x32xbf16>
    %13 = vector.extract_strided_slice %10 {offsets = [0, 32], sizes = [16, 32], strides = [1, 1]} : vector<16x64xbf16> to vector<16x32xbf16>
    %14 = vector.extract_strided_slice %11 {offsets = [0, 0], sizes = [16, 8], strides = [1, 1]} : vector<16x32xbf16> to vector<16x8xbf16>
    %15 = vector.extract_strided_slice %12 {offsets = [0, 0], sizes = [16, 8], strides = [1, 1]} : vector<16x32xbf16> to vector<16x8xbf16>
    %cst_9 = arith.constant dense<0.000000e+00> : vector<16x16xf32>
    %16 = tpu.matmul %14, %15, %cst_9 {dimension_numbers = #tpu.dot_dimension_numbers<[1], [1], [0], [0], [0, 0, 1, 0], [], []>} : vector<16x8xbf16>, vector<16x8xbf16>, vector<16x16xf32> -> vector<16x16xf32>
    %cst_10 = arith.constant dense<0xFF800000> : vector<16xf32>
    %17 = vector.multi_reduction <maximumf>, %16, %cst_10 [1] : vector<16x16xf32> to vector<16xf32>
    %18 = vector.shape_cast %17 : vector<16xf32> to vector<16x1xf32>
    %19 = vector.broadcast %18 : vector<16x1xf32> to vector<16x16xf32>
    %20 = arith.subf %16, %19 : vector<16x16xf32>
    %21 = math.exp %20 : vector<16x16xf32>
    %cst_11 = arith.constant dense<0.000000e+00> : vector<16xf32>
    %22 = vector.multi_reduction <add>, %21, %cst_11 [1] : vector<16x16xf32> to vector<16xf32>
    %23 = vector.shape_cast %22 : vector<16xf32> to vector<16x1xf32>
    %24 = tpu.reciprocal %23 {approx = true} : vector<16x1xf32> -> vector<16x1xf32>
    %25 = vector.broadcast %24 : vector<16x1xf32> to vector<16x16xf32>
    %26 = arith.mulf %21, %25 : vector<16x16xf32>
    %27 = arith.truncf %26 : vector<16x16xf32> to vector<16x16xbf16>
    %28 = vector.extract_strided_slice %13 {offsets = [0, 0], sizes = [16, 8], strides = [1, 1]} : vector<16x32xbf16> to vector<16x8xbf16>
    %cst_12 = arith.constant dense<0.000000e+00> : vector<16x8xf32>
    %29 = tpu.matmul %27, %28, %cst_12 {dimension_numbers = #tpu.dot_dimension_numbers<[1], [0], [0], [1], [0, 0, 1, 1], [], []>} : vector<16x16xbf16>, vector<16x8xbf16>, vector<16x8xf32> -> vector<16x8xf32>
    %30 = vector.extract_strided_slice %11 {offsets = [0, 8], sizes = [16, 8], strides = [1, 1]} : vector<16x32xbf16> to vector<16x8xbf16>
    %31 = vector.extract_strided_slice %12 {offsets = [0, 8], sizes = [16, 8], strides = [1, 1]} : vector<16x32xbf16> to vector<16x8xbf16>
    %cst_13 = arith.constant dense<0.000000e+00> : vector<16x16xf32>
    %32 = tpu.matmul %30, %31, %cst_13 {dimension_numbers = #tpu.dot_dimension_numbers<[1], [1], [0], [0], [0, 0, 1, 0], [], []>} : vector<16x8xbf16>, vector<16x8xbf16>, vector<16x16xf32> -> vector<16x16xf32>
    %cst_14 = arith.constant dense<0xFF800000> : vector<16xf32>
    %33 = vector.multi_reduction <maximumf>, %32, %cst_14 [1] : vector<16x16xf32> to vector<16xf32>
    %34 = vector.shape_cast %33 : vector<16xf32> to vector<16x1xf32>
    %35 = vector.broadcast %34 : vector<16x1xf32> to vector<16x16xf32>
    %36 = arith.subf %32, %35 : vector<16x16xf32>
    %37 = math.exp %36 : vector<16x16xf32>
    %cst_15 = arith.constant dense<0.000000e+00> : vector<16xf32>
    %38 = vector.multi_reduction <add>, %37, %cst_15 [1] : vector<16x16xf32> to vector<16xf32>
    %39 = vector.shape_cast %38 : vector<16xf32> to vector<16x1xf32>
    %40 = tpu.reciprocal %39 {approx = true} : vector<16x1xf32> -> vector<16x1xf32>
    %41 = vector.broadcast %40 : vector<16x1xf32> to vector<16x16xf32>
    %42 = arith.mulf %37, %41 : vector<16x16xf32>
    %43 = arith.truncf %42 : vector<16x16xf32> to vector<16x16xbf16>
    %44 = vector.extract_strided_slice %13 {offsets = [0, 8], sizes = [16, 8], strides = [1, 1]} : vector<16x32xbf16> to vector<16x8xbf16>
    %cst_16 = arith.constant dense<0.000000e+00> : vector<16x8xf32>
    %45 = tpu.matmul %43, %44, %cst_16 {dimension_numbers = #tpu.dot_dimension_numbers<[1], [0], [0], [1], [0, 0, 1, 1], [], []>} : vector<16x16xbf16>, vector<16x8xbf16>, vector<16x8xf32> -> vector<16x8xf32>
    %46 = vector.extract_strided_slice %11 {offsets = [0, 16], sizes = [16, 8], strides = [1, 1]} : vector<16x32xbf16> to vector<16x8xbf16>
    %47 = vector.extract_strided_slice %12 {offsets = [0, 16], sizes = [16, 8], strides = [1, 1]} : vector<16x32xbf16> to vector<16x8xbf16>
    %cst_17 = arith.constant dense<0.000000e+00> : vector<16x16xf32>
    %48 = tpu.matmul %46, %47, %cst_17 {dimension_numbers = #tpu.dot_dimension_numbers<[1], [1], [0], [0], [0, 0, 1, 0], [], []>} : vector<16x8xbf16>, vector<16x8xbf16>, vector<16x16xf32> -> vector<16x16xf32>
    %cst_18 = arith.constant dense<0xFF800000> : vector<16xf32>
    %49 = vector.multi_reduction <maximumf>, %48, %cst_18 [1] : vector<16x16xf32> to vector<16xf32>
    %50 = vector.shape_cast %49 : vector<16xf32> to vector<16x1xf32>
    %51 = vector.broadcast %50 : vector<16x1xf32> to vector<16x16xf32>
    %52 = arith.subf %48, %51 : vector<16x16xf32>
    %53 = math.exp %52 : vector<16x16xf32>
    %cst_19 = arith.constant dense<0.000000e+00> : vector<16xf32>
    %54 = vector.multi_reduction <add>, %53, %cst_19 [1] : vector<16x16xf32> to vector<16xf32>
    %55 = vector.shape_cast %54 : vector<16xf32> to vector<16x1xf32>
    %56 = tpu.reciprocal %55 {approx = true} : vector<16x1xf32> -> vector<16x1xf32>
    %57 = vector.broadcast %56 : vector<16x1xf32> to vector<16x16xf32>
    %58 = arith.mulf %53, %57 : vector<16x16xf32>
    %59 = arith.truncf %58 : vector<16x16xf32> to vector<16x16xbf16>
    %60 = vector.extract_strided_slice %13 {offsets = [0, 16], sizes = [16, 8], strides = [1, 1]} : vector<16x32xbf16> to vector<16x8xbf16>
    %cst_20 = arith.constant dense<0.000000e+00> : vector<16x8xf32>
    %61 = tpu.matmul %59, %60, %cst_20 {dimension_numbers = #tpu.dot_dimension_numbers<[1], [0], [0], [1], [0, 0, 1, 1], [], []>} : vector<16x16xbf16>, vector<16x8xbf16>, vector<16x8xf32> -> vector<16x8xf32>
    %62 = vector.extract_strided_slice %11 {offsets = [0, 24], sizes = [16, 8], strides = [1, 1]} : vector<16x32xbf16> to vector<16x8xbf16>
    %63 = vector.extract_strided_slice %12 {offsets = [0, 24], sizes = [16, 8], strides = [1, 1]} : vector<16x32xbf16> to vector<16x8xbf16>
    %cst_21 = arith.constant dense<0.000000e+00> : vector<16x16xf32>
    %64 = tpu.matmul %62, %63, %cst_21 {dimension_numbers = #tpu.dot_dimension_numbers<[1], [1], [0], [0], [0, 0, 1, 0], [], []>} : vector<16x8xbf16>, vector<16x8xbf16>, vector<16x16xf32> -> vector<16x16xf32>
    %cst_22 = arith.constant dense<0xFF800000> : vector<16xf32>
    %65 = vector.multi_reduction <maximumf>, %64, %cst_22 [1] : vector<16x16xf32> to vector<16xf32>
    %66 = vector.shape_cast %65 : vector<16xf32> to vector<16x1xf32>
    %67 = vector.broadcast %66 : vector<16x1xf32> to vector<16x16xf32>
    %68 = arith.subf %64, %67 : vector<16x16xf32>
    %69 = math.exp %68 : vector<16x16xf32>
    %cst_23 = arith.constant dense<0.000000e+00> : vector<16xf32>
    %70 = vector.multi_reduction <add>, %69, %cst_23 [1] : vector<16x16xf32> to vector<16xf32>
    %71 = vector.shape_cast %70 : vector<16xf32> to vector<16x1xf32>
    %72 = tpu.reciprocal %71 {approx = true} : vector<16x1xf32> -> vector<16x1xf32>
    %73 = vector.broadcast %72 : vector<16x1xf32> to vector<16x16xf32>
    %74 = arith.mulf %69, %73 : vector<16x16xf32>
    %75 = arith.truncf %74 : vector<16x16xf32> to vector<16x16xbf16>
    %76 = vector.extract_strided_slice %13 {offsets = [0, 24], sizes = [16, 8], strides = [1, 1]} : vector<16x32xbf16> to vector<16x8xbf16>
    %cst_24 = arith.constant dense<0.000000e+00> : vector<16x8xf32>
    %77 = tpu.matmul %75, %76, %cst_24 {dimension_numbers = #tpu.dot_dimension_numbers<[1], [0], [0], [1], [0, 0, 1, 1], [], []>} : vector<16x16xbf16>, vector<16x8xbf16>, vector<16x8xf32> -> vector<16x8xf32>
    %78 = tpu.concatenate %29, %45, %61, %77 in 1 : vector<16x8xf32>, vector<16x8xf32>, vector<16x8xf32>, vector<16x8xf32> -> vector<16x32xf32>
    %79 = arith.truncf %78 : vector<16x32xf32> to vector<16x32xbf16>
    %c0_25 = arith.constant 0 : index
    %c0_26 = arith.constant 0 : index
    %80 = vector.load %arg8[%c0_25, %c0_26] : memref<32x32xbf16, #tpu.memory_space<vmem>>, vector<32x32xbf16>
    %cst_27 = arith.constant dense<0.000000e+00> : vector<16x32xf32>
    %81 = tpu.matmul %79, %80, %cst_27 {dimension_numbers = #tpu.dot_dimension_numbers<[1], [0], [0], [1], [0, 0, 1, 1], [], []>} : vector<16x32xbf16>, vector<32x32xbf16>, vector<16x32xf32> -> vector<16x32xf32>
    %c0_28 = arith.constant 0 : index
    %c0_29 = arith.constant 0 : index
    %82 = vector.load %arg9[%c0_28, %c0_29] : memref<1x32xf32, #tpu.memory_space<vmem>>, vector<1x32xf32>
    %83 = vector.broadcast %82 : vector<1x32xf32> to vector<16x32xf32>
    %84 = arith.addf %81, %83 : vector<16x32xf32>
    %85 = arith.extf %4 : vector<16x32xbf16> to vector<16x32xf32>
    %86 = arith.addf %85, %84 : vector<16x32xf32>
    %c0_30 = arith.constant 0 : index
    %c0_31 = arith.constant 0 : index
    %87 = vector.load %arg10[%c0_30, %c0_31] : memref<1x32xf32, #tpu.memory_space<vmem>>, vector<1x32xf32>
    %88 = vector.shape_cast %87 : vector<1x32xf32> to vector<32xf32>
    %c0_32 = arith.constant 0 : index
    %c0_33 = arith.constant 0 : index
    %89 = vector.load %arg11[%c0_32, %c0_33] : memref<1x32xf32, #tpu.memory_space<vmem>>, vector<1x32xf32>
    %90 = vector.shape_cast %89 : vector<1x32xf32> to vector<32xf32>
    %cst_34 = arith.constant dense<0.000000e+00> : vector<16xf32>
    %91 = vector.multi_reduction <add>, %86, %cst_34 [1] : vector<16x32xf32> to vector<16xf32>
    %92 = vector.shape_cast %91 : vector<16xf32> to vector<16x1xf32>
    %cst_35 = arith.constant 3.200000e+01 : f32
    %93 = vector.broadcast %cst_35 : f32 to vector<16x1xf32>
    %94 = arith.divf %92, %93 : vector<16x1xf32>
    %95 = vector.broadcast %94 : vector<16x1xf32> to vector<16x32xf32>
    %96 = arith.subf %86, %95 : vector<16x32xf32>
    %97 = arith.mulf %96, %96 : vector<16x32xf32>
    %cst_36 = arith.constant dense<0.000000e+00> : vector<16xf32>
    %98 = vector.multi_reduction <add>, %97, %cst_36 [1] : vector<16x32xf32> to vector<16xf32>
    %99 = vector.shape_cast %98 : vector<16xf32> to vector<16x1xf32>
    %cst_37 = arith.constant 3.200000e+01 : f32
    %100 = vector.broadcast %cst_37 : f32 to vector<16x1xf32>
    %101 = arith.divf %99, %100 : vector<16x1xf32>
    %cst_38 = arith.constant 9.99999974E-6 : f32
    %102 = vector.broadcast %cst_38 : f32 to vector<16x1xf32>
    %103 = arith.addf %101, %102 : vector<16x1xf32>
    %104 = math.rsqrt %103 : vector<16x1xf32>
    %105 = vector.broadcast %104 : vector<16x1xf32> to vector<16x32xf32>
    %106 = arith.mulf %96, %105 : vector<16x32xf32>
    %107 = vector.shape_cast %88 : vector<32xf32> to vector<1x32xf32>
    %108 = vector.broadcast %107 : vector<1x32xf32> to vector<16x32xf32>
    %109 = arith.mulf %106, %108 : vector<16x32xf32>
    %110 = vector.shape_cast %90 : vector<32xf32> to vector<1x32xf32>
    %111 = vector.broadcast %110 : vector<1x32xf32> to vector<16x32xf32>
    %112 = arith.addf %109, %111 : vector<16x32xf32>
    %113 = arith.truncf %112 : vector<16x32xf32> to vector<16x32xbf16>
    %c0_39 = arith.constant 0 : index
    %c0_40 = arith.constant 0 : index
    %c0_41 = arith.constant 0 : index
    %114 = vector.load %arg12[%c0_39, %c0_40, %c0_41] : memref<1x16x32xbf16, #tpu.memory_space<vmem>>, vector<1x16x32xbf16>
    %115 = vector.shape_cast %114 : vector<1x16x32xbf16> to vector<16x32xbf16>
    %116 = vector.shape_cast %113 : vector<16x32xbf16> to vector<1x16x32xbf16>
    tpu.vector_store %arg12[%c0_39, %c0_40, %c0_41], %116 {strides = array<i32>} : memref<1x16x32xbf16, #tpu.memory_space<vmem>>, vector<1x16x32xbf16>,
    return
  }
  func.func @transform_0(%arg0: i32, %arg1: i32) -> (i32, i32, i32) {
    %c0_i32 = arith.constant 0 : i32
    %c0_i32_0 = arith.constant 0 : i32
    return %arg0, %arg1, %c0_i32 : i32, i32, i32
  }
  func.func @transform_1(%arg0: i32, %arg1: i32) -> (i32, i32, i32) {
    %c0_i32 = arith.constant 0 : i32
    %c0_i32_0 = arith.constant 0 : i32
    %c0_i32_1 = arith.constant 0 : i32
    return %arg0, %c0_i32, %c0_i32_0 : i32, i32, i32
  }
  func.func @transform_2(%arg0: i32, %arg1: i32) -> (i32, i32) {
    %c0_i32 = arith.constant 0 : i32
    %c0_i32_0 = arith.constant 0 : i32
    %c0_i32_1 = arith.constant 0 : i32
    return %c0_i32, %c0_i32_0 : i32, i32
  }
  func.func @transform_3(%arg0: i32, %arg1: i32) -> (i32, i32) {
    %c0_i32 = arith.constant 0 : i32
    %c0_i32_0 = arith.constant 0 : i32
    %c0_i32_1 = arith.constant 0 : i32
    return %c0_i32, %c0_i32_0 : i32, i32
  }
  func.func @transform_4(%arg0: i32, %arg1: i32) -> (i32, i32) {
    %c0_i32 = arith.constant 0 : i32
    %c0_i32_0 = arith.constant 0 : i32
    %c0_i32_1 = arith.constant 0 : i32
    return %c0_i32, %c0_i32_0 : i32, i32
  }
  func.func @transform_5(%arg0: i32, %arg1: i32) -> (i32, i32) {
    %c0_i32 = arith.constant 0 : i32
    %c0_i32_0 = arith.constant 0 : i32
    %c0_i32_1 = arith.constant 0 : i32
    return %c0_i32, %c0_i32_0 : i32, i32
  }
  func.func @transform_6(%arg0: i32, %arg1: i32) -> (i32, i32) {
    %c0_i32 = arith.constant 0 : i32
    %c0_i32_0 = arith.constant 0 : i32
    %c0_i32_1 = arith.constant 0 : i32
    return %c0_i32, %c0_i32_0 : i32, i32
  }
  func.func @transform_7(%arg0: i32, %arg1: i32) -> (i32, i32) {
    %c0_i32 = arith.constant 0 : i32
    %c0_i32_0 = arith.constant 0 : i32
    %c0_i32_1 = arith.constant 0 : i32
    return %c0_i32, %c0_i32_0 : i32, i32
  }
  func.func @transform_8(%arg0: i32, %arg1: i32) -> (i32, i32) {
    %c0_i32 = arith.constant 0 : i32
    %c0_i32_0 = arith.constant 0 : i32
    %c0_i32_1 = arith.constant 0 : i32
    return %c0_i32, %c0_i32_0 : i32, i32
  }
  func.func @transform_9(%arg0: i32, %arg1: i32) -> (i32, i32) {
    %c0_i32 = arith.constant 0 : i32
    %c0_i32_0 = arith.constant 0 : i32
    %c0_i32_1 = arith.constant 0 : i32
    return %c0_i32, %c0_i32_0 : i32, i32
  }
  func.func @transform_10(%arg0: i32, %arg1: i32) -> (i32, i32, i32) {
    %c0_i32 = arith.constant 0 : i32
    %c0_i32_0 = arith.constant 0 : i32
    return %arg0, %arg1, %c0_i32 : i32, i32, i32
  }
}

module attributes {stable_mosaic.version = 11 : i64} {
  func.func @_ffn_ln_kernel(%arg0: i32, %arg1: memref<32x32xbf16, #tpu.memory_space<vmem>>, %arg2: memref<32x64xbf16, #tpu.memory_space<vmem>>, %arg3: memref<1x64xf32, #tpu.memory_space<vmem>>, %arg4: memref<64x32xbf16, #tpu.memory_space<vmem>>, %arg5: memref<1x32xf32, #tpu.memory_space<vmem>>, %arg6: memref<1x32xf32, #tpu.memory_space<vmem>>, %arg7: memref<1x32xf32, #tpu.memory_space<vmem>>, %arg8: memref<32x32xbf16, #tpu.memory_space<vmem>>) attributes {dimension_semantics = [#tpu.dimension_semantics<parallel>], iteration_bounds = array<i64: 1>, scalar_prefetch = 0 : i64, scratch_operands = 0 : i64, tpu.core_type = #tpu.core_type<tc>, window_params = [{transform_indices = @transform_0, window_bounds = array<i64: 32, 32>}, {pipeline_mode = #tpu.pipeline_mode<synchronous>, transform_indices = @transform_1, window_bounds = array<i64: 32, 64>}, {pipeline_mode = #tpu.pipeline_mode<synchronous>, transform_indices = @transform_2, window_bounds = array<i64: 1, 64>}, {pipeline_mode = #tpu.pipeline_mode<synchronous>, transform_indices = @transform_3, window_bounds = array<i64: 64, 32>}, {pipeline_mode = #tpu.pipeline_mode<synchronous>, transform_indices = @transform_4, window_bounds = array<i64: 1, 32>}, {pipeline_mode = #tpu.pipeline_mode<synchronous>, transform_indices = @transform_5, window_bounds = array<i64: 1, 32>}, {pipeline_mode = #tpu.pipeline_mode<synchronous>, transform_indices = @transform_6, window_bounds = array<i64: 1, 32>}, {transform_indices = @transform_7, window_bounds = array<i64: 32, 32>}]} {
    %c0 = arith.constant 0 : index
    %c0_0 = arith.constant 0 : index
    %0 = vector.load %arg1[%c0, %c0_0] : memref<32x32xbf16, #tpu.memory_space<vmem>>, vector<32x32xbf16>
    %1 = arith.extf %0 : vector<32x32xbf16> to vector<32x32xf32>
    %2 = arith.truncf %1 : vector<32x32xf32> to vector<32x32xbf16>
    %c0_1 = arith.constant 0 : index
    %c0_2 = arith.constant 0 : index
    %3 = vector.load %arg2[%c0_1, %c0_2] : memref<32x64xbf16, #tpu.memory_space<vmem>>, vector<32x64xbf16>
    %cst = arith.constant dense<0.000000e+00> : vector<32x64xf32>
    %4 = tpu.matmul %2, %3, %cst {dimension_numbers = #tpu.dot_dimension_numbers<[1], [0], [0], [1], [0, 0, 1, 1], [], []>} : vector<32x32xbf16>, vector<32x64xbf16>, vector<32x64xf32> -> vector<32x64xf32>
    %c0_3 = arith.constant 0 : index
    %c0_4 = arith.constant 0 : index
    %5 = vector.load %arg3[%c0_3, %c0_4] : memref<1x64xf32, #tpu.memory_space<vmem>>, vector<1x64xf32>
    %6 = vector.broadcast %5 : vector<1x64xf32> to vector<32x64xf32>
    %7 = arith.addf %4, %6 : vector<32x64xf32>
    %cst_5 = arith.constant 0.000000e+00 : f32
    %8 = vector.broadcast %cst_5 : f32 to vector<32x64xf32>
    %9 = arith.maximumf %7, %8 : vector<32x64xf32>
    %10 = arith.truncf %9 : vector<32x64xf32> to vector<32x64xbf16>
    %c0_6 = arith.constant 0 : index
    %c0_7 = arith.constant 0 : index
    %11 = vector.load %arg4[%c0_6, %c0_7] : memref<64x32xbf16, #tpu.memory_space<vmem>>, vector<64x32xbf16>
    %cst_8 = arith.constant dense<0.000000e+00> : vector<32x32xf32>
    %12 = tpu.matmul %10, %11, %cst_8 {dimension_numbers = #tpu.dot_dimension_numbers<[1], [0], [0], [1], [0, 0, 1, 1], [], []>} : vector<32x64xbf16>, vector<64x32xbf16>, vector<32x32xf32> -> vector<32x32xf32>
    %c0_9 = arith.constant 0 : index
    %c0_10 = arith.constant 0 : index
    %13 = vector.load %arg5[%c0_9, %c0_10] : memref<1x32xf32, #tpu.memory_space<vmem>>, vector<1x32xf32>
    %14 = vector.broadcast %13 : vector<1x32xf32> to vector<32x32xf32>
    %15 = arith.addf %12, %14 : vector<32x32xf32>
    %16 = arith.addf %1, %15 : vector<32x32xf32>
    %c0_11 = arith.constant 0 : index
    %c0_12 = arith.constant 0 : index
    %17 = vector.load %arg6[%c0_11, %c0_12] : memref<1x32xf32, #tpu.memory_space<vmem>>, vector<1x32xf32>
    %18 = vector.shape_cast %17 : vector<1x32xf32> to vector<32xf32>
    %c0_13 = arith.constant 0 : index
    %c0_14 = arith.constant 0 : index
    %19 = vector.load %arg7[%c0_13, %c0_14] : memref<1x32xf32, #tpu.memory_space<vmem>>, vector<1x32xf32>
    %20 = vector.shape_cast %19 : vector<1x32xf32> to vector<32xf32>
    %cst_15 = arith.constant dense<0.000000e+00> : vector<32xf32>
    %21 = vector.multi_reduction <add>, %16, %cst_15 [1] : vector<32x32xf32> to vector<32xf32>
    %22 = vector.shape_cast %21 : vector<32xf32> to vector<32x1xf32>
    %cst_16 = arith.constant 3.200000e+01 : f32
    %23 = vector.broadcast %cst_16 : f32 to vector<32x1xf32>
    %24 = arith.divf %22, %23 : vector<32x1xf32>
    %25 = vector.broadcast %24 : vector<32x1xf32> to vector<32x32xf32>
    %26 = arith.subf %16, %25 : vector<32x32xf32>
    %27 = arith.mulf %26, %26 : vector<32x32xf32>
    %cst_17 = arith.constant dense<0.000000e+00> : vector<32xf32>
    %28 = vector.multi_reduction <add>, %27, %cst_17 [1] : vector<32x32xf32> to vector<32xf32>
    %29 = vector.shape_cast %28 : vector<32xf32> to vector<32x1xf32>
    %cst_18 = arith.constant 3.200000e+01 : f32
    %30 = vector.broadcast %cst_18 : f32 to vector<32x1xf32>
    %31 = arith.divf %29, %30 : vector<32x1xf32>
    %cst_19 = arith.constant 9.99999974E-6 : f32
    %32 = vector.broadcast %cst_19 : f32 to vector<32x1xf32>
    %33 = arith.addf %31, %32 : vector<32x1xf32>
    %34 = math.rsqrt %33 : vector<32x1xf32>
    %35 = vector.broadcast %34 : vector<32x1xf32> to vector<32x32xf32>
    %36 = arith.mulf %26, %35 : vector<32x32xf32>
    %37 = vector.shape_cast %18 : vector<32xf32> to vector<1x32xf32>
    %38 = vector.broadcast %37 : vector<1x32xf32> to vector<32x32xf32>
    %39 = arith.mulf %36, %38 : vector<32x32xf32>
    %40 = vector.shape_cast %20 : vector<32xf32> to vector<1x32xf32>
    %41 = vector.broadcast %40 : vector<1x32xf32> to vector<32x32xf32>
    %42 = arith.addf %39, %41 : vector<32x32xf32>
    %43 = arith.truncf %42 : vector<32x32xf32> to vector<32x32xbf16>
    %c0_20 = arith.constant 0 : index
    %c0_21 = arith.constant 0 : index
    %44 = vector.load %arg8[%c0_20, %c0_21] : memref<32x32xbf16, #tpu.memory_space<vmem>>, vector<32x32xbf16>
    tpu.vector_store %arg8[%c0_20, %c0_21], %43 {strides = array<i32>} : memref<32x32xbf16, #tpu.memory_space<vmem>>, vector<32x32xbf16>,
    return
  }
  func.func @transform_0(%arg0: i32) -> (i32, i32) {
    %c0_i32 = arith.constant 0 : i32
    %c0_i32_0 = arith.constant 0 : i32
    return %arg0, %c0_i32 : i32, i32
  }
  func.func @transform_1(%arg0: i32) -> (i32, i32) {
    %c0_i32 = arith.constant 0 : i32
    %c0_i32_0 = arith.constant 0 : i32
    %c0_i32_1 = arith.constant 0 : i32
    return %c0_i32, %c0_i32_0 : i32, i32
  }
  func.func @transform_2(%arg0: i32) -> (i32, i32) {
    %c0_i32 = arith.constant 0 : i32
    %c0_i32_0 = arith.constant 0 : i32
    %c0_i32_1 = arith.constant 0 : i32
    return %c0_i32, %c0_i32_0 : i32, i32
  }
  func.func @transform_3(%arg0: i32) -> (i32, i32) {
    %c0_i32 = arith.constant 0 : i32
    %c0_i32_0 = arith.constant 0 : i32
    %c0_i32_1 = arith.constant 0 : i32
    return %c0_i32, %c0_i32_0 : i32, i32
  }
  func.func @transform_4(%arg0: i32) -> (i32, i32) {
    %c0_i32 = arith.constant 0 : i32
    %c0_i32_0 = arith.constant 0 : i32
    %c0_i32_1 = arith.constant 0 : i32
    return %c0_i32, %c0_i32_0 : i32, i32
  }
  func.func @transform_5(%arg0: i32) -> (i32, i32) {
    %c0_i32 = arith.constant 0 : i32
    %c0_i32_0 = arith.constant 0 : i32
    %c0_i32_1 = arith.constant 0 : i32
    return %c0_i32, %c0_i32_0 : i32, i32
  }
  func.func @transform_6(%arg0: i32) -> (i32, i32) {
    %c0_i32 = arith.constant 0 : i32
    %c0_i32_0 = arith.constant 0 : i32
    %c0_i32_1 = arith.constant 0 : i32
    return %c0_i32, %c0_i32_0 : i32, i32
  }
  func.func @transform_7(%arg0: i32) -> (i32, i32) {
    %c0_i32 = arith.constant 0 : i32
    %c0_i32_0 = arith.constant 0 : i32
    return %arg0, %c0_i32 : i32, i32
  }
}

module attributes {stable_mosaic.version = 11 : i64} {
  func.func @_dec_layer_kernel(%arg0: i32, %arg1: memref<1x8x32xbf16, #tpu.memory_space<vmem>>, %arg2: memref<1x8x32xbf16, #tpu.memory_space<vmem>>, %arg3: memref<1x16x32xbf16, #tpu.memory_space<vmem>>, %arg4: memref<32x64xbf16, #tpu.memory_space<vmem>>, %arg5: memref<1x64xf32, #tpu.memory_space<vmem>>, %arg6: memref<32x32xbf16, #tpu.memory_space<vmem>>, %arg7: memref<1x32xf32, #tpu.memory_space<vmem>>, %arg8: memref<32x32xbf16, #tpu.memory_space<vmem>>, %arg9: memref<1x32xf32, #tpu.memory_space<vmem>>, %arg10: memref<1x32xf32, #tpu.memory_space<vmem>>, %arg11: memref<1x32xf32, #tpu.memory_space<vmem>>, %arg12: memref<32x32xbf16, #tpu.memory_space<vmem>>, %arg13: memref<1x32xf32, #tpu.memory_space<vmem>>, %arg14: memref<32x64xbf16, #tpu.memory_space<vmem>>, %arg15: memref<1x64xf32, #tpu.memory_space<vmem>>, %arg16: memref<32x32xbf16, #tpu.memory_space<vmem>>, %arg17: memref<1x32xf32, #tpu.memory_space<vmem>>, %arg18: memref<1x32xf32, #tpu.memory_space<vmem>>, %arg19: memref<1x32xf32, #tpu.memory_space<vmem>>, %arg20: memref<32x64xbf16, #tpu.memory_space<vmem>>, %arg21: memref<1x64xf32, #tpu.memory_space<vmem>>, %arg22: memref<64x32xbf16, #tpu.memory_space<vmem>>, %arg23: memref<1x32xf32, #tpu.memory_space<vmem>>, %arg24: memref<1x32xf32, #tpu.memory_space<vmem>>, %arg25: memref<1x32xf32, #tpu.memory_space<vmem>>, %arg26: memref<1x32xf32, #tpu.memory_space<vmem>>, %arg27: memref<1x32xf32, #tpu.memory_space<vmem>>, %arg28: memref<1x8x32xbf16, #tpu.memory_space<vmem>>) attributes {dimension_semantics = [#tpu.dimension_semantics<parallel>], iteration_bounds = array<i64: 2>, scalar_prefetch = 0 : i64, scratch_operands = 0 : i64, tpu.core_type = #tpu.core_type<tc>, window_params = [{transform_indices = @transform_0, window_bounds = array<i64: 1, 8, 32>}, {transform_indices = @transform_1, window_bounds = array<i64: 1, 8, 32>}, {transform_indices = @transform_2, window_bounds = array<i64: 1, 16, 32>}, {pipeline_mode = #tpu.pipeline_mode<synchronous>, transform_indices = @transform_3, window_bounds = array<i64: 32, 64>}, {pipeline_mode = #tpu.pipeline_mode<synchronous>, transform_indices = @transform_4, window_bounds = array<i64: 1, 64>}, {pipeline_mode = #tpu.pipeline_mode<synchronous>, transform_indices = @transform_5, window_bounds = array<i64: 32, 32>}, {pipeline_mode = #tpu.pipeline_mode<synchronous>, transform_indices = @transform_6, window_bounds = array<i64: 1, 32>}, {pipeline_mode = #tpu.pipeline_mode<synchronous>, transform_indices = @transform_7, window_bounds = array<i64: 32, 32>}, {pipeline_mode = #tpu.pipeline_mode<synchronous>, transform_indices = @transform_8, window_bounds = array<i64: 1, 32>}, {pipeline_mode = #tpu.pipeline_mode<synchronous>, transform_indices = @transform_9, window_bounds = array<i64: 1, 32>}, {pipeline_mode = #tpu.pipeline_mode<synchronous>, transform_indices = @transform_10, window_bounds = array<i64: 1, 32>}, {pipeline_mode = #tpu.pipeline_mode<synchronous>, transform_indices = @transform_11, window_bounds = array<i64: 32, 32>}, {pipeline_mode = #tpu.pipeline_mode<synchronous>, transform_indices = @transform_12, window_bounds = array<i64: 1, 32>}, {pipeline_mode = #tpu.pipeline_mode<synchronous>, transform_indices = @transform_13, window_bounds = array<i64: 32, 64>}, {pipeline_mode = #tpu.pipeline_mode<synchronous>, transform_indices = @transform_14, window_bounds = array<i64: 1, 64>}, {pipeline_mode = #tpu.pipeline_mode<synchronous>, transform_indices = @transform_15, window_bounds = array<i64: 32, 32>}, {pipeline_mode = #tpu.pipeline_mode<synchronous>, transform_indices = @transform_16, window_bounds = array<i64: 1, 32>}, {pipeline_mode = #tpu.pipeline_mode<synchronous>, transform_indices = @transform_17, window_bounds = array<i64: 1, 32>}, {pipeline_mode = #tpu.pipeline_mode<synchronous>, transform_indices = @transform_18, window_bounds = array<i64: 1, 32>}, {pipeline_mode = #tpu.pipeline_mode<synchronous>, transform_indices = @transform_19, window_bounds = array<i64: 32, 64>}, {pipeline_mode = #tpu.pipeline_mode<synchronous>, transform_indices = @transform_20, window_bounds = array<i64: 1, 64>}, {pipeline_mode = #tpu.pipeline_mode<synchronous>, transform_indices = @transform_21, window_bounds = array<i64: 64, 32>}, {pipeline_mode = #tpu.pipeline_mode<synchronous>, transform_indices = @transform_22, window_bounds = array<i64: 1, 32>}, {pipeline_mode = #tpu.pipeline_mode<synchronous>, transform_indices = @transform_23, window_bounds = array<i64: 1, 32>}, {pipeline_mode = #tpu.pipeline_mode<synchronous>, transform_indices = @transform_24, window_bounds = array<i64: 1, 32>}, {pipeline_mode = #tpu.pipeline_mode<synchronous>, transform_indices = @transform_25, window_bounds = array<i64: 1, 32>}, {pipeline_mode = #tpu.pipeline_mode<synchronous>, transform_indices = @transform_26, window_bounds = array<i64: 1, 32>}, {transform_indices = @transform_27, window_bounds = array<i64: 1, 8, 32>}]} {
    %c0 = arith.constant 0 : index
    %c0_0 = arith.constant 0 : index
    %c0_1 = arith.constant 0 : index
    %0 = vector.load %arg1[%c0, %c0_0, %c0_1] : memref<1x8x32xbf16, #tpu.memory_space<vmem>>, vector<1x8x32xbf16>
    %1 = vector.shape_cast %0 : vector<1x8x32xbf16> to vector<8x32xbf16>
    %2 = arith.extf %1 : vector<8x32xbf16> to vector<8x32xf32>
    %c0_2 = arith.constant 0 : index
    %c0_3 = arith.constant 0 : index
    %c0_4 = arith.constant 0 : index
    %3 = vector.load %arg2[%c0_2, %c0_3, %c0_4] : memref<1x8x32xbf16, #tpu.memory_space<vmem>>, vector<1x8x32xbf16>
    %4 = vector.shape_cast %3 : vector<1x8x32xbf16> to vector<8x32xbf16>
    %5 = arith.extf %4 : vector<8x32xbf16> to vector<8x32xf32>
    %6 = arith.addf %2, %5 : vector<8x32xf32>
    %7 = arith.truncf %6 : vector<8x32xf32> to vector<8x32xbf16>
    %c0_5 = arith.constant 0 : index
    %c0_6 = arith.constant 0 : index
    %8 = vector.load %arg4[%c0_5, %c0_6] : memref<32x64xbf16, #tpu.memory_space<vmem>>, vector<32x64xbf16>
    %cst = arith.constant dense<0.000000e+00> : vector<8x64xf32>
    %9 = tpu.matmul %7, %8, %cst {dimension_numbers = #tpu.dot_dimension_numbers<[1], [0], [0], [1], [0, 0, 1, 1], [], []>} : vector<8x32xbf16>, vector<32x64xbf16>, vector<8x64xf32> -> vector<8x64xf32>
    %c0_7 = arith.constant 0 : index
    %c0_8 = arith.constant 0 : index
    %10 = vector.load %arg5[%c0_7, %c0_8] : memref<1x64xf32, #tpu.memory_space<vmem>>, vector<1x64xf32>
    %11 = vector.broadcast %10 : vector<1x64xf32> to vector<8x64xf32>
    %12 = arith.addf %9, %11 : vector<8x64xf32>
    %13 = arith.truncf %12 : vector<8x64xf32> to vector<8x64xbf16>
    %14 = arith.truncf %2 : vector<8x32xf32> to vector<8x32xbf16>
    %c0_9 = arith.constant 0 : index
    %c0_10 = arith.constant 0 : index
    %15 = vector.load %arg6[%c0_9, %c0_10] : memref<32x32xbf16, #tpu.memory_space<vmem>>, vector<32x32xbf16>
    %cst_11 = arith.constant dense<0.000000e+00> : vector<8x32xf32>
    %16 = tpu.matmul %14, %15, %cst_11 {dimension_numbers = #tpu.dot_dimension_numbers<[1], [0], [0], [1], [0, 0, 1, 1], [], []>} : vector<8x32xbf16>, vector<32x32xbf16>, vector<8x32xf32> -> vector<8x32xf32>
    %c0_12 = arith.constant 0 : index
    %c0_13 = arith.constant 0 : index
    %17 = vector.load %arg7[%c0_12, %c0_13] : memref<1x32xf32, #tpu.memory_space<vmem>>, vector<1x32xf32>
    %18 = vector.broadcast %17 : vector<1x32xf32> to vector<8x32xf32>
    %19 = arith.addf %16, %18 : vector<8x32xf32>
    %20 = arith.truncf %19 : vector<8x32xf32> to vector<8x32xbf16>
    %21 = vector.extract_strided_slice %13 {offsets = [0, 0], sizes = [8, 32], strides = [1, 1]} : vector<8x64xbf16> to vector<8x32xbf16>
    %22 = vector.extract_strided_slice %13 {offsets = [0, 32], sizes = [8, 32], strides = [1, 1]} : vector<8x64xbf16> to vector<8x32xbf16>
    %23 = vector.extract_strided_slice %21 {offsets = [0, 0], sizes = [8, 8], strides = [1, 1]} : vector<8x32xbf16> to vector<8x8xbf16>
    %24 = vector.extract_strided_slice %22 {offsets = [0, 0], sizes = [8, 8], strides = [1, 1]} : vector<8x32xbf16> to vector<8x8xbf16>
    %cst_14 = arith.constant dense<0.000000e+00> : vector<8x8xf32>
    %25 = tpu.matmul %23, %24, %cst_14 {dimension_numbers = #tpu.dot_dimension_numbers<[1], [1], [0], [0], [0, 0, 1, 0], [], []>} : vector<8x8xbf16>, vector<8x8xbf16>, vector<8x8xf32> -> vector<8x8xf32>
    %cst_15 = arith.constant dense<0xFF800000> : vector<8xf32>
    %26 = vector.multi_reduction <maximumf>, %25, %cst_15 [1] : vector<8x8xf32> to vector<8xf32>
    %27 = vector.shape_cast %26 : vector<8xf32> to vector<8x1xf32>
    %28 = vector.broadcast %27 : vector<8x1xf32> to vector<8x8xf32>
    %29 = arith.subf %25, %28 : vector<8x8xf32>
    %30 = math.exp %29 : vector<8x8xf32>
    %cst_16 = arith.constant dense<0.000000e+00> : vector<8xf32>
    %31 = vector.multi_reduction <add>, %30, %cst_16 [1] : vector<8x8xf32> to vector<8xf32>
    %32 = vector.shape_cast %31 : vector<8xf32> to vector<8x1xf32>
    %33 = tpu.reciprocal %32 {approx = true} : vector<8x1xf32> -> vector<8x1xf32>
    %34 = vector.broadcast %33 : vector<8x1xf32> to vector<8x8xf32>
    %35 = arith.mulf %30, %34 : vector<8x8xf32>
    %36 = arith.truncf %35 : vector<8x8xf32> to vector<8x8xbf16>
    %37 = vector.extract_strided_slice %20 {offsets = [0, 0], sizes = [8, 8], strides = [1, 1]} : vector<8x32xbf16> to vector<8x8xbf16>
    %cst_17 = arith.constant dense<0.000000e+00> : vector<8x8xf32>
    %38 = tpu.matmul %36, %37, %cst_17 {dimension_numbers = #tpu.dot_dimension_numbers<[1], [0], [0], [1], [0, 0, 1, 1], [], []>} : vector<8x8xbf16>, vector<8x8xbf16>, vector<8x8xf32> -> vector<8x8xf32>
    %39 = vector.extract_strided_slice %21 {offsets = [0, 8], sizes = [8, 8], strides = [1, 1]} : vector<8x32xbf16> to vector<8x8xbf16>
    %40 = vector.extract_strided_slice %22 {offsets = [0, 8], sizes = [8, 8], strides = [1, 1]} : vector<8x32xbf16> to vector<8x8xbf16>
    %cst_18 = arith.constant dense<0.000000e+00> : vector<8x8xf32>
    %41 = tpu.matmul %39, %40, %cst_18 {dimension_numbers = #tpu.dot_dimension_numbers<[1], [1], [0], [0], [0, 0, 1, 0], [], []>} : vector<8x8xbf16>, vector<8x8xbf16>, vector<8x8xf32> -> vector<8x8xf32>
    %cst_19 = arith.constant dense<0xFF800000> : vector<8xf32>
    %42 = vector.multi_reduction <maximumf>, %41, %cst_19 [1] : vector<8x8xf32> to vector<8xf32>
    %43 = vector.shape_cast %42 : vector<8xf32> to vector<8x1xf32>
    %44 = vector.broadcast %43 : vector<8x1xf32> to vector<8x8xf32>
    %45 = arith.subf %41, %44 : vector<8x8xf32>
    %46 = math.exp %45 : vector<8x8xf32>
    %cst_20 = arith.constant dense<0.000000e+00> : vector<8xf32>
    %47 = vector.multi_reduction <add>, %46, %cst_20 [1] : vector<8x8xf32> to vector<8xf32>
    %48 = vector.shape_cast %47 : vector<8xf32> to vector<8x1xf32>
    %49 = tpu.reciprocal %48 {approx = true} : vector<8x1xf32> -> vector<8x1xf32>
    %50 = vector.broadcast %49 : vector<8x1xf32> to vector<8x8xf32>
    %51 = arith.mulf %46, %50 : vector<8x8xf32>
    %52 = arith.truncf %51 : vector<8x8xf32> to vector<8x8xbf16>
    %53 = vector.extract_strided_slice %20 {offsets = [0, 8], sizes = [8, 8], strides = [1, 1]} : vector<8x32xbf16> to vector<8x8xbf16>
    %cst_21 = arith.constant dense<0.000000e+00> : vector<8x8xf32>
    %54 = tpu.matmul %52, %53, %cst_21 {dimension_numbers = #tpu.dot_dimension_numbers<[1], [0], [0], [1], [0, 0, 1, 1], [], []>} : vector<8x8xbf16>, vector<8x8xbf16>, vector<8x8xf32> -> vector<8x8xf32>
    %55 = vector.extract_strided_slice %21 {offsets = [0, 16], sizes = [8, 8], strides = [1, 1]} : vector<8x32xbf16> to vector<8x8xbf16>
    %56 = vector.extract_strided_slice %22 {offsets = [0, 16], sizes = [8, 8], strides = [1, 1]} : vector<8x32xbf16> to vector<8x8xbf16>
    %cst_22 = arith.constant dense<0.000000e+00> : vector<8x8xf32>
    %57 = tpu.matmul %55, %56, %cst_22 {dimension_numbers = #tpu.dot_dimension_numbers<[1], [1], [0], [0], [0, 0, 1, 0], [], []>} : vector<8x8xbf16>, vector<8x8xbf16>, vector<8x8xf32> -> vector<8x8xf32>
    %cst_23 = arith.constant dense<0xFF800000> : vector<8xf32>
    %58 = vector.multi_reduction <maximumf>, %57, %cst_23 [1] : vector<8x8xf32> to vector<8xf32>
    %59 = vector.shape_cast %58 : vector<8xf32> to vector<8x1xf32>
    %60 = vector.broadcast %59 : vector<8x1xf32> to vector<8x8xf32>
    %61 = arith.subf %57, %60 : vector<8x8xf32>
    %62 = math.exp %61 : vector<8x8xf32>
    %cst_24 = arith.constant dense<0.000000e+00> : vector<8xf32>
    %63 = vector.multi_reduction <add>, %62, %cst_24 [1] : vector<8x8xf32> to vector<8xf32>
    %64 = vector.shape_cast %63 : vector<8xf32> to vector<8x1xf32>
    %65 = tpu.reciprocal %64 {approx = true} : vector<8x1xf32> -> vector<8x1xf32>
    %66 = vector.broadcast %65 : vector<8x1xf32> to vector<8x8xf32>
    %67 = arith.mulf %62, %66 : vector<8x8xf32>
    %68 = arith.truncf %67 : vector<8x8xf32> to vector<8x8xbf16>
    %69 = vector.extract_strided_slice %20 {offsets = [0, 16], sizes = [8, 8], strides = [1, 1]} : vector<8x32xbf16> to vector<8x8xbf16>
    %cst_25 = arith.constant dense<0.000000e+00> : vector<8x8xf32>
    %70 = tpu.matmul %68, %69, %cst_25 {dimension_numbers = #tpu.dot_dimension_numbers<[1], [0], [0], [1], [0, 0, 1, 1], [], []>} : vector<8x8xbf16>, vector<8x8xbf16>, vector<8x8xf32> -> vector<8x8xf32>
    %71 = vector.extract_strided_slice %21 {offsets = [0, 24], sizes = [8, 8], strides = [1, 1]} : vector<8x32xbf16> to vector<8x8xbf16>
    %72 = vector.extract_strided_slice %22 {offsets = [0, 24], sizes = [8, 8], strides = [1, 1]} : vector<8x32xbf16> to vector<8x8xbf16>
    %cst_26 = arith.constant dense<0.000000e+00> : vector<8x8xf32>
    %73 = tpu.matmul %71, %72, %cst_26 {dimension_numbers = #tpu.dot_dimension_numbers<[1], [1], [0], [0], [0, 0, 1, 0], [], []>} : vector<8x8xbf16>, vector<8x8xbf16>, vector<8x8xf32> -> vector<8x8xf32>
    %cst_27 = arith.constant dense<0xFF800000> : vector<8xf32>
    %74 = vector.multi_reduction <maximumf>, %73, %cst_27 [1] : vector<8x8xf32> to vector<8xf32>
    %75 = vector.shape_cast %74 : vector<8xf32> to vector<8x1xf32>
    %76 = vector.broadcast %75 : vector<8x1xf32> to vector<8x8xf32>
    %77 = arith.subf %73, %76 : vector<8x8xf32>
    %78 = math.exp %77 : vector<8x8xf32>
    %cst_28 = arith.constant dense<0.000000e+00> : vector<8xf32>
    %79 = vector.multi_reduction <add>, %78, %cst_28 [1] : vector<8x8xf32> to vector<8xf32>
    %80 = vector.shape_cast %79 : vector<8xf32> to vector<8x1xf32>
    %81 = tpu.reciprocal %80 {approx = true} : vector<8x1xf32> -> vector<8x1xf32>
    %82 = vector.broadcast %81 : vector<8x1xf32> to vector<8x8xf32>
    %83 = arith.mulf %78, %82 : vector<8x8xf32>
    %84 = arith.truncf %83 : vector<8x8xf32> to vector<8x8xbf16>
    %85 = vector.extract_strided_slice %20 {offsets = [0, 24], sizes = [8, 8], strides = [1, 1]} : vector<8x32xbf16> to vector<8x8xbf16>
    %cst_29 = arith.constant dense<0.000000e+00> : vector<8x8xf32>
    %86 = tpu.matmul %84, %85, %cst_29 {dimension_numbers = #tpu.dot_dimension_numbers<[1], [0], [0], [1], [0, 0, 1, 1], [], []>} : vector<8x8xbf16>, vector<8x8xbf16>, vector<8x8xf32> -> vector<8x8xf32>
    %87 = tpu.concatenate %38, %54, %70, %86 in 1 : vector<8x8xf32>, vector<8x8xf32>, vector<8x8xf32>, vector<8x8xf32> -> vector<8x32xf32>
    %88 = arith.truncf %87 : vector<8x32xf32> to vector<8x32xbf16>
    %c0_30 = arith.constant 0 : index
    %c0_31 = arith.constant 0 : index
    %89 = vector.load %arg8[%c0_30, %c0_31] : memref<32x32xbf16, #tpu.memory_space<vmem>>, vector<32x32xbf16>
    %cst_32 = arith.constant dense<0.000000e+00> : vector<8x32xf32>
    %90 = tpu.matmul %88, %89, %cst_32 {dimension_numbers = #tpu.dot_dimension_numbers<[1], [0], [0], [1], [0, 0, 1, 1], [], []>} : vector<8x32xbf16>, vector<32x32xbf16>, vector<8x32xf32> -> vector<8x32xf32>
    %c0_33 = arith.constant 0 : index
    %c0_34 = arith.constant 0 : index
    %91 = vector.load %arg9[%c0_33, %c0_34] : memref<1x32xf32, #tpu.memory_space<vmem>>, vector<1x32xf32>
    %92 = vector.broadcast %91 : vector<1x32xf32> to vector<8x32xf32>
    %93 = arith.addf %90, %92 : vector<8x32xf32>
    %94 = arith.addf %2, %93 : vector<8x32xf32>
    %c0_35 = arith.constant 0 : index
    %c0_36 = arith.constant 0 : index
    %95 = vector.load %arg10[%c0_35, %c0_36] : memref<1x32xf32, #tpu.memory_space<vmem>>, vector<1x32xf32>
    %96 = vector.shape_cast %95 : vector<1x32xf32> to vector<32xf32>
    %c0_37 = arith.constant 0 : index
    %c0_38 = arith.constant 0 : index
    %97 = vector.load %arg11[%c0_37, %c0_38] : memref<1x32xf32, #tpu.memory_space<vmem>>, vector<1x32xf32>
    %98 = vector.shape_cast %97 : vector<1x32xf32> to vector<32xf32>
    %cst_39 = arith.constant dense<0.000000e+00> : vector<8xf32>
    %99 = vector.multi_reduction <add>, %94, %cst_39 [1] : vector<8x32xf32> to vector<8xf32>
    %100 = vector.shape_cast %99 : vector<8xf32> to vector<8x1xf32>
    %cst_40 = arith.constant 3.200000e+01 : f32
    %101 = vector.broadcast %cst_40 : f32 to vector<8x1xf32>
    %102 = arith.divf %100, %101 : vector<8x1xf32>
    %103 = vector.broadcast %102 : vector<8x1xf32> to vector<8x32xf32>
    %104 = arith.subf %94, %103 : vector<8x32xf32>
    %105 = arith.mulf %104, %104 : vector<8x32xf32>
    %cst_41 = arith.constant dense<0.000000e+00> : vector<8xf32>
    %106 = vector.multi_reduction <add>, %105, %cst_41 [1] : vector<8x32xf32> to vector<8xf32>
    %107 = vector.shape_cast %106 : vector<8xf32> to vector<8x1xf32>
    %cst_42 = arith.constant 3.200000e+01 : f32
    %108 = vector.broadcast %cst_42 : f32 to vector<8x1xf32>
    %109 = arith.divf %107, %108 : vector<8x1xf32>
    %cst_43 = arith.constant 9.99999974E-6 : f32
    %110 = vector.broadcast %cst_43 : f32 to vector<8x1xf32>
    %111 = arith.addf %109, %110 : vector<8x1xf32>
    %112 = math.rsqrt %111 : vector<8x1xf32>
    %113 = vector.broadcast %112 : vector<8x1xf32> to vector<8x32xf32>
    %114 = arith.mulf %104, %113 : vector<8x32xf32>
    %115 = vector.shape_cast %96 : vector<32xf32> to vector<1x32xf32>
    %116 = vector.broadcast %115 : vector<1x32xf32> to vector<8x32xf32>
    %117 = arith.mulf %114, %116 : vector<8x32xf32>
    %118 = vector.shape_cast %98 : vector<32xf32> to vector<1x32xf32>
    %119 = vector.broadcast %118 : vector<1x32xf32> to vector<8x32xf32>
    %120 = arith.addf %117, %119 : vector<8x32xf32>
    %121 = arith.addf %120, %5 : vector<8x32xf32>
    %122 = arith.truncf %121 : vector<8x32xf32> to vector<8x32xbf16>
    %c0_44 = arith.constant 0 : index
    %c0_45 = arith.constant 0 : index
    %123 = vector.load %arg12[%c0_44, %c0_45] : memref<32x32xbf16, #tpu.memory_space<vmem>>, vector<32x32xbf16>
    %cst_46 = arith.constant dense<0.000000e+00> : vector<8x32xf32>
    %124 = tpu.matmul %122, %123, %cst_46 {dimension_numbers = #tpu.dot_dimension_numbers<[1], [0], [0], [1], [0, 0, 1, 1], [], []>} : vector<8x32xbf16>, vector<32x32xbf16>, vector<8x32xf32> -> vector<8x32xf32>
    %c0_47 = arith.constant 0 : index
    %c0_48 = arith.constant 0 : index
    %125 = vector.load %arg13[%c0_47, %c0_48] : memref<1x32xf32, #tpu.memory_space<vmem>>, vector<1x32xf32>
    %126 = vector.broadcast %125 : vector<1x32xf32> to vector<8x32xf32>
    %127 = arith.addf %124, %126 : vector<8x32xf32>
    %128 = arith.truncf %127 : vector<8x32xf32> to vector<8x32xbf16>
    %c0_49 = arith.constant 0 : index
    %c0_50 = arith.constant 0 : index
    %c0_51 = arith.constant 0 : index
    %129 = vector.load %arg3[%c0_49, %c0_50, %c0_51] : memref<1x16x32xbf16, #tpu.memory_space<vmem>>, vector<1x16x32xbf16>
    %130 = vector.shape_cast %129 : vector<1x16x32xbf16> to vector<16x32xbf16>
    %c0_52 = arith.constant 0 : index
    %c0_53 = arith.constant 0 : index
    %131 = vector.load %arg14[%c0_52, %c0_53] : memref<32x64xbf16, #tpu.memory_space<vmem>>, vector<32x64xbf16>
    %cst_54 = arith.constant dense<0.000000e+00> : vector<16x64xf32>
    %132 = tpu.matmul %130, %131, %cst_54 {dimension_numbers = #tpu.dot_dimension_numbers<[1], [0], [0], [1], [0, 0, 1, 1], [], []>} : vector<16x32xbf16>, vector<32x64xbf16>, vector<16x64xf32> -> vector<16x64xf32>
    %c0_55 = arith.constant 0 : index
    %c0_56 = arith.constant 0 : index
    %133 = vector.load %arg15[%c0_55, %c0_56] : memref<1x64xf32, #tpu.memory_space<vmem>>, vector<1x64xf32>
    %134 = vector.broadcast %133 : vector<1x64xf32> to vector<16x64xf32>
    %135 = arith.addf %132, %134 : vector<16x64xf32>
    %136 = arith.truncf %135 : vector<16x64xf32> to vector<16x64xbf16>
    %137 = vector.extract_strided_slice %136 {offsets = [0, 0], sizes = [16, 32], strides = [1, 1]} : vector<16x64xbf16> to vector<16x32xbf16>
    %138 = vector.extract_strided_slice %136 {offsets = [0, 32], sizes = [16, 32], strides = [1, 1]} : vector<16x64xbf16> to vector<16x32xbf16>
    %139 = vector.extract_strided_slice %128 {offsets = [0, 0], sizes = [8, 8], strides = [1, 1]} : vector<8x32xbf16> to vector<8x8xbf16>
    %140 = vector.extract_strided_slice %137 {offsets = [0, 0], sizes = [16, 8], strides = [1, 1]} : vector<16x32xbf16> to vector<16x8xbf16>
    %cst_57 = arith.constant dense<0.000000e+00> : vector<8x16xf32>
    %141 = tpu.matmul %139, %140, %cst_57 {dimension_numbers = #tpu.dot_dimension_numbers<[1], [1], [0], [0], [0, 0, 1, 0], [], []>} : vector<8x8xbf16>, vector<16x8xbf16>, vector<8x16xf32> -> vector<8x16xf32>
    %cst_58 = arith.constant dense<0xFF800000> : vector<8xf32>
    %142 = vector.multi_reduction <maximumf>, %141, %cst_58 [1] : vector<8x16xf32> to vector<8xf32>
    %143 = vector.shape_cast %142 : vector<8xf32> to vector<8x1xf32>
    %144 = vector.broadcast %143 : vector<8x1xf32> to vector<8x16xf32>
    %145 = arith.subf %141, %144 : vector<8x16xf32>
    %146 = math.exp %145 : vector<8x16xf32>
    %cst_59 = arith.constant dense<0.000000e+00> : vector<8xf32>
    %147 = vector.multi_reduction <add>, %146, %cst_59 [1] : vector<8x16xf32> to vector<8xf32>
    %148 = vector.shape_cast %147 : vector<8xf32> to vector<8x1xf32>
    %149 = tpu.reciprocal %148 {approx = true} : vector<8x1xf32> -> vector<8x1xf32>
    %150 = vector.broadcast %149 : vector<8x1xf32> to vector<8x16xf32>
    %151 = arith.mulf %146, %150 : vector<8x16xf32>
    %152 = arith.truncf %151 : vector<8x16xf32> to vector<8x16xbf16>
    %153 = vector.extract_strided_slice %138 {offsets = [0, 0], sizes = [16, 8], strides = [1, 1]} : vector<16x32xbf16> to vector<16x8xbf16>
    %cst_60 = arith.constant dense<0.000000e+00> : vector<8x8xf32>
    %154 = tpu.matmul %152, %153, %cst_60 {dimension_numbers = #tpu.dot_dimension_numbers<[1], [0], [0], [1], [0, 0, 1, 1], [], []>} : vector<8x16xbf16>, vector<16x8xbf16>, vector<8x8xf32> -> vector<8x8xf32>
    %155 = vector.extract_strided_slice %128 {offsets = [0, 8], sizes = [8, 8], strides = [1, 1]} : vector<8x32xbf16> to vector<8x8xbf16>
    %156 = vector.extract_strided_slice %137 {offsets = [0, 8], sizes = [16, 8], strides = [1, 1]} : vector<16x32xbf16> to vector<16x8xbf16>
    %cst_61 = arith.constant dense<0.000000e+00> : vector<8x16xf32>
    %157 = tpu.matmul %155, %156, %cst_61 {dimension_numbers = #tpu.dot_dimension_numbers<[1], [1], [0], [0], [0, 0, 1, 0], [], []>} : vector<8x8xbf16>, vector<16x8xbf16>, vector<8x16xf32> -> vector<8x16xf32>
    %cst_62 = arith.constant dense<0xFF800000> : vector<8xf32>
    %158 = vector.multi_reduction <maximumf>, %157, %cst_62 [1] : vector<8x16xf32> to vector<8xf32>
    %159 = vector.shape_cast %158 : vector<8xf32> to vector<8x1xf32>
    %160 = vector.broadcast %159 : vector<8x1xf32> to vector<8x16xf32>
    %161 = arith.subf %157, %160 : vector<8x16xf32>
    %162 = math.exp %161 : vector<8x16xf32>
    %cst_63 = arith.constant dense<0.000000e+00> : vector<8xf32>
    %163 = vector.multi_reduction <add>, %162, %cst_63 [1] : vector<8x16xf32> to vector<8xf32>
    %164 = vector.shape_cast %163 : vector<8xf32> to vector<8x1xf32>
    %165 = tpu.reciprocal %164 {approx = true} : vector<8x1xf32> -> vector<8x1xf32>
    %166 = vector.broadcast %165 : vector<8x1xf32> to vector<8x16xf32>
    %167 = arith.mulf %162, %166 : vector<8x16xf32>
    %168 = arith.truncf %167 : vector<8x16xf32> to vector<8x16xbf16>
    %169 = vector.extract_strided_slice %138 {offsets = [0, 8], sizes = [16, 8], strides = [1, 1]} : vector<16x32xbf16> to vector<16x8xbf16>
    %cst_64 = arith.constant dense<0.000000e+00> : vector<8x8xf32>
    %170 = tpu.matmul %168, %169, %cst_64 {dimension_numbers = #tpu.dot_dimension_numbers<[1], [0], [0], [1], [0, 0, 1, 1], [], []>} : vector<8x16xbf16>, vector<16x8xbf16>, vector<8x8xf32> -> vector<8x8xf32>
    %171 = vector.extract_strided_slice %128 {offsets = [0, 16], sizes = [8, 8], strides = [1, 1]} : vector<8x32xbf16> to vector<8x8xbf16>
    %172 = vector.extract_strided_slice %137 {offsets = [0, 16], sizes = [16, 8], strides = [1, 1]} : vector<16x32xbf16> to vector<16x8xbf16>
    %cst_65 = arith.constant dense<0.000000e+00> : vector<8x16xf32>
    %173 = tpu.matmul %171, %172, %cst_65 {dimension_numbers = #tpu.dot_dimension_numbers<[1], [1], [0], [0], [0, 0, 1, 0], [], []>} : vector<8x8xbf16>, vector<16x8xbf16>, vector<8x16xf32> -> vector<8x16xf32>
    %cst_66 = arith.constant dense<0xFF800000> : vector<8xf32>
    %174 = vector.multi_reduction <maximumf>, %173, %cst_66 [1] : vector<8x16xf32> to vector<8xf32>
    %175 = vector.shape_cast %174 : vector<8xf32> to vector<8x1xf32>
    %176 = vector.broadcast %175 : vector<8x1xf32> to vector<8x16xf32>
    %177 = arith.subf %173, %176 : vector<8x16xf32>
    %178 = math.exp %177 : vector<8x16xf32>
    %cst_67 = arith.constant dense<0.000000e+00> : vector<8xf32>
    %179 = vector.multi_reduction <add>, %178, %cst_67 [1] : vector<8x16xf32> to vector<8xf32>
    %180 = vector.shape_cast %179 : vector<8xf32> to vector<8x1xf32>
    %181 = tpu.reciprocal %180 {approx = true} : vector<8x1xf32> -> vector<8x1xf32>
    %182 = vector.broadcast %181 : vector<8x1xf32> to vector<8x16xf32>
    %183 = arith.mulf %178, %182 : vector<8x16xf32>
    %184 = arith.truncf %183 : vector<8x16xf32> to vector<8x16xbf16>
    %185 = vector.extract_strided_slice %138 {offsets = [0, 16], sizes = [16, 8], strides = [1, 1]} : vector<16x32xbf16> to vector<16x8xbf16>
    %cst_68 = arith.constant dense<0.000000e+00> : vector<8x8xf32>
    %186 = tpu.matmul %184, %185, %cst_68 {dimension_numbers = #tpu.dot_dimension_numbers<[1], [0], [0], [1], [0, 0, 1, 1], [], []>} : vector<8x16xbf16>, vector<16x8xbf16>, vector<8x8xf32> -> vector<8x8xf32>
    %187 = vector.extract_strided_slice %128 {offsets = [0, 24], sizes = [8, 8], strides = [1, 1]} : vector<8x32xbf16> to vector<8x8xbf16>
    %188 = vector.extract_strided_slice %137 {offsets = [0, 24], sizes = [16, 8], strides = [1, 1]} : vector<16x32xbf16> to vector<16x8xbf16>
    %cst_69 = arith.constant dense<0.000000e+00> : vector<8x16xf32>
    %189 = tpu.matmul %187, %188, %cst_69 {dimension_numbers = #tpu.dot_dimension_numbers<[1], [1], [0], [0], [0, 0, 1, 0], [], []>} : vector<8x8xbf16>, vector<16x8xbf16>, vector<8x16xf32> -> vector<8x16xf32>
    %cst_70 = arith.constant dense<0xFF800000> : vector<8xf32>
    %190 = vector.multi_reduction <maximumf>, %189, %cst_70 [1] : vector<8x16xf32> to vector<8xf32>
    %191 = vector.shape_cast %190 : vector<8xf32> to vector<8x1xf32>
    %192 = vector.broadcast %191 : vector<8x1xf32> to vector<8x16xf32>
    %193 = arith.subf %189, %192 : vector<8x16xf32>
    %194 = math.exp %193 : vector<8x16xf32>
    %cst_71 = arith.constant dense<0.000000e+00> : vector<8xf32>
    %195 = vector.multi_reduction <add>, %194, %cst_71 [1] : vector<8x16xf32> to vector<8xf32>
    %196 = vector.shape_cast %195 : vector<8xf32> to vector<8x1xf32>
    %197 = tpu.reciprocal %196 {approx = true} : vector<8x1xf32> -> vector<8x1xf32>
    %198 = vector.broadcast %197 : vector<8x1xf32> to vector<8x16xf32>
    %199 = arith.mulf %194, %198 : vector<8x16xf32>
    %200 = arith.truncf %199 : vector<8x16xf32> to vector<8x16xbf16>
    %201 = vector.extract_strided_slice %138 {offsets = [0, 24], sizes = [16, 8], strides = [1, 1]} : vector<16x32xbf16> to vector<16x8xbf16>
    %cst_72 = arith.constant dense<0.000000e+00> : vector<8x8xf32>
    %202 = tpu.matmul %200, %201, %cst_72 {dimension_numbers = #tpu.dot_dimension_numbers<[1], [0], [0], [1], [0, 0, 1, 1], [], []>} : vector<8x16xbf16>, vector<16x8xbf16>, vector<8x8xf32> -> vector<8x8xf32>
    %203 = tpu.concatenate %154, %170, %186, %202 in 1 : vector<8x8xf32>, vector<8x8xf32>, vector<8x8xf32>, vector<8x8xf32> -> vector<8x32xf32>
    %204 = arith.truncf %203 : vector<8x32xf32> to vector<8x32xbf16>
    %c0_73 = arith.constant 0 : index
    %c0_74 = arith.constant 0 : index
    %205 = vector.load %arg16[%c0_73, %c0_74] : memref<32x32xbf16, #tpu.memory_space<vmem>>, vector<32x32xbf16>
    %cst_75 = arith.constant dense<0.000000e+00> : vector<8x32xf32>
    %206 = tpu.matmul %204, %205, %cst_75 {dimension_numbers = #tpu.dot_dimension_numbers<[1], [0], [0], [1], [0, 0, 1, 1], [], []>} : vector<8x32xbf16>, vector<32x32xbf16>, vector<8x32xf32> -> vector<8x32xf32>
    %c0_76 = arith.constant 0 : index
    %c0_77 = arith.constant 0 : index
    %207 = vector.load %arg17[%c0_76, %c0_77] : memref<1x32xf32, #tpu.memory_space<vmem>>, vector<1x32xf32>
    %208 = vector.broadcast %207 : vector<1x32xf32> to vector<8x32xf32>
    %209 = arith.addf %206, %208 : vector<8x32xf32>
    %210 = arith.addf %120, %209 : vector<8x32xf32>
    %c0_78 = arith.constant 0 : index
    %c0_79 = arith.constant 0 : index
    %211 = vector.load %arg18[%c0_78, %c0_79] : memref<1x32xf32, #tpu.memory_space<vmem>>, vector<1x32xf32>
    %212 = vector.shape_cast %211 : vector<1x32xf32> to vector<32xf32>
    %c0_80 = arith.constant 0 : index
    %c0_81 = arith.constant 0 : index
    %213 = vector.load %arg19[%c0_80, %c0_81] : memref<1x32xf32, #tpu.memory_space<vmem>>, vector<1x32xf32>
    %214 = vector.shape_cast %213 : vector<1x32xf32> to vector<32xf32>
    %cst_82 = arith.constant dense<0.000000e+00> : vector<8xf32>
    %215 = vector.multi_reduction <add>, %210, %cst_82 [1] : vector<8x32xf32> to vector<8xf32>
    %216 = vector.shape_cast %215 : vector<8xf32> to vector<8x1xf32>
    %cst_83 = arith.constant 3.200000e+01 : f32
    %217 = vector.broadcast %cst_83 : f32 to vector<8x1xf32>
    %218 = arith.divf %216, %217 : vector<8x1xf32>
    %219 = vector.broadcast %218 : vector<8x1xf32> to vector<8x32xf32>
    %220 = arith.subf %210, %219 : vector<8x32xf32>
    %221 = arith.mulf %220, %220 : vector<8x32xf32>
    %cst_84 = arith.constant dense<0.000000e+00> : vector<8xf32>
    %222 = vector.multi_reduction <add>, %221, %cst_84 [1] : vector<8x32xf32> to vector<8xf32>
    %223 = vector.shape_cast %222 : vector<8xf32> to vector<8x1xf32>
    %cst_85 = arith.constant 3.200000e+01 : f32
    %224 = vector.broadcast %cst_85 : f32 to vector<8x1xf32>
    %225 = arith.divf %223, %224 : vector<8x1xf32>
    %cst_86 = arith.constant 9.99999974E-6 : f32
    %226 = vector.broadcast %cst_86 : f32 to vector<8x1xf32>
    %227 = arith.addf %225, %226 : vector<8x1xf32>
    %228 = math.rsqrt %227 : vector<8x1xf32>
    %229 = vector.broadcast %228 : vector<8x1xf32> to vector<8x32xf32>
    %230 = arith.mulf %220, %229 : vector<8x32xf32>
    %231 = vector.shape_cast %212 : vector<32xf32> to vector<1x32xf32>
    %232 = vector.broadcast %231 : vector<1x32xf32> to vector<8x32xf32>
    %233 = arith.mulf %230, %232 : vector<8x32xf32>
    %234 = vector.shape_cast %214 : vector<32xf32> to vector<1x32xf32>
    %235 = vector.broadcast %234 : vector<1x32xf32> to vector<8x32xf32>
    %236 = arith.addf %233, %235 : vector<8x32xf32>
    %237 = arith.truncf %236 : vector<8x32xf32> to vector<8x32xbf16>
    %c0_87 = arith.constant 0 : index
    %c0_88 = arith.constant 0 : index
    %238 = vector.load %arg20[%c0_87, %c0_88] : memref<32x64xbf16, #tpu.memory_space<vmem>>, vector<32x64xbf16>
    %cst_89 = arith.constant dense<0.000000e+00> : vector<8x64xf32>
    %239 = tpu.matmul %237, %238, %cst_89 {dimension_numbers = #tpu.dot_dimension_numbers<[1], [0], [0], [1], [0, 0, 1, 1], [], []>} : vector<8x32xbf16>, vector<32x64xbf16>, vector<8x64xf32> -> vector<8x64xf32>
    %c0_90 = arith.constant 0 : index
    %c0_91 = arith.constant 0 : index
    %240 = vector.load %arg21[%c0_90, %c0_91] : memref<1x64xf32, #tpu.memory_space<vmem>>, vector<1x64xf32>
    %241 = vector.broadcast %240 : vector<1x64xf32> to vector<8x64xf32>
    %242 = arith.addf %239, %241 : vector<8x64xf32>
    %cst_92 = arith.constant 0.000000e+00 : f32
    %243 = vector.broadcast %cst_92 : f32 to vector<8x64xf32>
    %244 = arith.maximumf %242, %243 : vector<8x64xf32>
    %245 = arith.truncf %244 : vector<8x64xf32> to vector<8x64xbf16>
    %c0_93 = arith.constant 0 : index
    %c0_94 = arith.constant 0 : index
    %246 = vector.load %arg22[%c0_93, %c0_94] : memref<64x32xbf16, #tpu.memory_space<vmem>>, vector<64x32xbf16>
    %cst_95 = arith.constant dense<0.000000e+00> : vector<8x32xf32>
    %247 = tpu.matmul %245, %246, %cst_95 {dimension_numbers = #tpu.dot_dimension_numbers<[1], [0], [0], [1], [0, 0, 1, 1], [], []>} : vector<8x64xbf16>, vector<64x32xbf16>, vector<8x32xf32> -> vector<8x32xf32>
    %c0_96 = arith.constant 0 : index
    %c0_97 = arith.constant 0 : index
    %248 = vector.load %arg23[%c0_96, %c0_97] : memref<1x32xf32, #tpu.memory_space<vmem>>, vector<1x32xf32>
    %249 = vector.broadcast %248 : vector<1x32xf32> to vector<8x32xf32>
    %250 = arith.addf %247, %249 : vector<8x32xf32>
    %251 = arith.addf %236, %250 : vector<8x32xf32>
    %c0_98 = arith.constant 0 : index
    %c0_99 = arith.constant 0 : index
    %252 = vector.load %arg24[%c0_98, %c0_99] : memref<1x32xf32, #tpu.memory_space<vmem>>, vector<1x32xf32>
    %253 = vector.shape_cast %252 : vector<1x32xf32> to vector<32xf32>
    %c0_100 = arith.constant 0 : index
    %c0_101 = arith.constant 0 : index
    %254 = vector.load %arg25[%c0_100, %c0_101] : memref<1x32xf32, #tpu.memory_space<vmem>>, vector<1x32xf32>
    %255 = vector.shape_cast %254 : vector<1x32xf32> to vector<32xf32>
    %cst_102 = arith.constant dense<0.000000e+00> : vector<8xf32>
    %256 = vector.multi_reduction <add>, %251, %cst_102 [1] : vector<8x32xf32> to vector<8xf32>
    %257 = vector.shape_cast %256 : vector<8xf32> to vector<8x1xf32>
    %cst_103 = arith.constant 3.200000e+01 : f32
    %258 = vector.broadcast %cst_103 : f32 to vector<8x1xf32>
    %259 = arith.divf %257, %258 : vector<8x1xf32>
    %260 = vector.broadcast %259 : vector<8x1xf32> to vector<8x32xf32>
    %261 = arith.subf %251, %260 : vector<8x32xf32>
    %262 = arith.mulf %261, %261 : vector<8x32xf32>
    %cst_104 = arith.constant dense<0.000000e+00> : vector<8xf32>
    %263 = vector.multi_reduction <add>, %262, %cst_104 [1] : vector<8x32xf32> to vector<8xf32>
    %264 = vector.shape_cast %263 : vector<8xf32> to vector<8x1xf32>
    %cst_105 = arith.constant 3.200000e+01 : f32
    %265 = vector.broadcast %cst_105 : f32 to vector<8x1xf32>
    %266 = arith.divf %264, %265 : vector<8x1xf32>
    %cst_106 = arith.constant 9.99999974E-6 : f32
    %267 = vector.broadcast %cst_106 : f32 to vector<8x1xf32>
    %268 = arith.addf %266, %267 : vector<8x1xf32>
    %269 = math.rsqrt %268 : vector<8x1xf32>
    %270 = vector.broadcast %269 : vector<8x1xf32> to vector<8x32xf32>
    %271 = arith.mulf %261, %270 : vector<8x32xf32>
    %272 = vector.shape_cast %253 : vector<32xf32> to vector<1x32xf32>
    %273 = vector.broadcast %272 : vector<1x32xf32> to vector<8x32xf32>
    %274 = arith.mulf %271, %273 : vector<8x32xf32>
    %275 = vector.shape_cast %255 : vector<32xf32> to vector<1x32xf32>
    %276 = vector.broadcast %275 : vector<1x32xf32> to vector<8x32xf32>
    %277 = arith.addf %274, %276 : vector<8x32xf32>
    %278 = arith.truncf %277 : vector<8x32xf32> to vector<8x32xbf16>
    %c0_107 = arith.constant 0 : index
    %c0_108 = arith.constant 0 : index
    %c0_109 = arith.constant 0 : index
    %279 = vector.load %arg28[%c0_107, %c0_108, %c0_109] : memref<1x8x32xbf16, #tpu.memory_space<vmem>>, vector<1x8x32xbf16>
    %280 = vector.shape_cast %279 : vector<1x8x32xbf16> to vector<8x32xbf16>
    %281 = vector.shape_cast %278 : vector<8x32xbf16> to vector<1x8x32xbf16>
    tpu.vector_store %arg28[%c0_107, %c0_108, %c0_109], %281 {strides = array<i32>} : memref<1x8x32xbf16, #tpu.memory_space<vmem>>, vector<1x8x32xbf16>,
    return
  }
  func.func @transform_0(%arg0: i32) -> (i32, i32, i32) {
    %c0_i32 = arith.constant 0 : i32
    %c0_i32_0 = arith.constant 0 : i32
    %c0_i32_1 = arith.constant 0 : i32
    return %arg0, %c0_i32, %c0_i32_0 : i32, i32, i32
  }
  func.func @transform_1(%arg0: i32) -> (i32, i32, i32) {
    %c0_i32 = arith.constant 0 : i32
    %c0_i32_0 = arith.constant 0 : i32
    %c0_i32_1 = arith.constant 0 : i32
    return %arg0, %c0_i32, %c0_i32_0 : i32, i32, i32
  }
  func.func @transform_2(%arg0: i32) -> (i32, i32, i32) {
    %c0_i32 = arith.constant 0 : i32
    %c0_i32_0 = arith.constant 0 : i32
    %c0_i32_1 = arith.constant 0 : i32
    return %arg0, %c0_i32, %c0_i32_0 : i32, i32, i32
  }
  func.func @transform_3(%arg0: i32) -> (i32, i32) {
    %c0_i32 = arith.constant 0 : i32
    %c0_i32_0 = arith.constant 0 : i32
    %c0_i32_1 = arith.constant 0 : i32
    return %c0_i32, %c0_i32_0 : i32, i32
  }
  func.func @transform_4(%arg0: i32) -> (i32, i32) {
    %c0_i32 = arith.constant 0 : i32
    %c0_i32_0 = arith.constant 0 : i32
    %c0_i32_1 = arith.constant 0 : i32
    return %c0_i32, %c0_i32_0 : i32, i32
  }
  func.func @transform_5(%arg0: i32) -> (i32, i32) {
    %c0_i32 = arith.constant 0 : i32
    %c0_i32_0 = arith.constant 0 : i32
    %c0_i32_1 = arith.constant 0 : i32
    return %c0_i32, %c0_i32_0 : i32, i32
  }
  func.func @transform_6(%arg0: i32) -> (i32, i32) {
    %c0_i32 = arith.constant 0 : i32
    %c0_i32_0 = arith.constant 0 : i32
    %c0_i32_1 = arith.constant 0 : i32
    return %c0_i32, %c0_i32_0 : i32, i32
  }
  func.func @transform_7(%arg0: i32) -> (i32, i32) {
    %c0_i32 = arith.constant 0 : i32
    %c0_i32_0 = arith.constant 0 : i32
    %c0_i32_1 = arith.constant 0 : i32
    return %c0_i32, %c0_i32_0 : i32, i32
  }
  func.func @transform_8(%arg0: i32) -> (i32, i32) {
    %c0_i32 = arith.constant 0 : i32
    %c0_i32_0 = arith.constant 0 : i32
    %c0_i32_1 = arith.constant 0 : i32
    return %c0_i32, %c0_i32_0 : i32, i32
  }
  func.func @transform_9(%arg0: i32) -> (i32, i32) {
    %c0_i32 = arith.constant 0 : i32
    %c0_i32_0 = arith.constant 0 : i32
    %c0_i32_1 = arith.constant 0 : i32
    return %c0_i32, %c0_i32_0 : i32, i32
  }
  func.func @transform_10(%arg0: i32) -> (i32, i32) {
    %c0_i32 = arith.constant 0 : i32
    %c0_i32_0 = arith.constant 0 : i32
    %c0_i32_1 = arith.constant 0 : i32
    return %c0_i32, %c0_i32_0 : i32, i32
  }
  func.func @transform_11(%arg0: i32) -> (i32, i32) {
    %c0_i32 = arith.constant 0 : i32
    %c0_i32_0 = arith.constant 0 : i32
    %c0_i32_1 = arith.constant 0 : i32
    return %c0_i32, %c0_i32_0 : i32, i32
  }
  func.func @transform_12(%arg0: i32) -> (i32, i32) {
    %c0_i32 = arith.constant 0 : i32
    %c0_i32_0 = arith.constant 0 : i32
    %c0_i32_1 = arith.constant 0 : i32
    return %c0_i32, %c0_i32_0 : i32, i32
  }
  func.func @transform_13(%arg0: i32) -> (i32, i32) {
    %c0_i32 = arith.constant 0 : i32
    %c0_i32_0 = arith.constant 0 : i32
    %c0_i32_1 = arith.constant 0 : i32
    return %c0_i32, %c0_i32_0 : i32, i32
  }
  func.func @transform_14(%arg0: i32) -> (i32, i32) {
    %c0_i32 = arith.constant 0 : i32
    %c0_i32_0 = arith.constant 0 : i32
    %c0_i32_1 = arith.constant 0 : i32
    return %c0_i32, %c0_i32_0 : i32, i32
  }
  func.func @transform_15(%arg0: i32) -> (i32, i32) {
    %c0_i32 = arith.constant 0 : i32
    %c0_i32_0 = arith.constant 0 : i32
    %c0_i32_1 = arith.constant 0 : i32
    return %c0_i32, %c0_i32_0 : i32, i32
  }
  func.func @transform_16(%arg0: i32) -> (i32, i32) {
    %c0_i32 = arith.constant 0 : i32
    %c0_i32_0 = arith.constant 0 : i32
    %c0_i32_1 = arith.constant 0 : i32
    return %c0_i32, %c0_i32_0 : i32, i32
  }
  func.func @transform_17(%arg0: i32) -> (i32, i32) {
    %c0_i32 = arith.constant 0 : i32
    %c0_i32_0 = arith.constant 0 : i32
    %c0_i32_1 = arith.constant 0 : i32
    return %c0_i32, %c0_i32_0 : i32, i32
  }
  func.func @transform_18(%arg0: i32) -> (i32, i32) {
    %c0_i32 = arith.constant 0 : i32
    %c0_i32_0 = arith.constant 0 : i32
    %c0_i32_1 = arith.constant 0 : i32
    return %c0_i32, %c0_i32_0 : i32, i32
  }
  func.func @transform_19(%arg0: i32) -> (i32, i32) {
    %c0_i32 = arith.constant 0 : i32
    %c0_i32_0 = arith.constant 0 : i32
    %c0_i32_1 = arith.constant 0 : i32
    return %c0_i32, %c0_i32_0 : i32, i32
  }
  func.func @transform_20(%arg0: i32) -> (i32, i32) {
    %c0_i32 = arith.constant 0 : i32
    %c0_i32_0 = arith.constant 0 : i32
    %c0_i32_1 = arith.constant 0 : i32
    return %c0_i32, %c0_i32_0 : i32, i32
  }
  func.func @transform_21(%arg0: i32) -> (i32, i32) {
    %c0_i32 = arith.constant 0 : i32
    %c0_i32_0 = arith.constant 0 : i32
    %c0_i32_1 = arith.constant 0 : i32
    return %c0_i32, %c0_i32_0 : i32, i32
  }
  func.func @transform_22(%arg0: i32) -> (i32, i32) {
    %c0_i32 = arith.constant 0 : i32
    %c0_i32_0 = arith.constant 0 : i32
    %c0_i32_1 = arith.constant 0 : i32
    return %c0_i32, %c0_i32_0 : i32, i32
  }
  func.func @transform_23(%arg0: i32) -> (i32, i32) {
    %c0_i32 = arith.constant 0 : i32
    %c0_i32_0 = arith.constant 0 : i32
    %c0_i32_1 = arith.constant 0 : i32
    return %c0_i32, %c0_i32_0 : i32, i32
  }
  func.func @transform_24(%arg0: i32) -> (i32, i32) {
    %c0_i32 = arith.constant 0 : i32
    %c0_i32_0 = arith.constant 0 : i32
    %c0_i32_1 = arith.constant 0 : i32
    return %c0_i32, %c0_i32_0 : i32, i32
  }
  func.func @transform_25(%arg0: i32) -> (i32, i32) {
    %c0_i32 = arith.constant 0 : i32
    %c0_i32_0 = arith.constant 0 : i32
    %c0_i32_1 = arith.constant 0 : i32
    return %c0_i32, %c0_i32_0 : i32, i32
  }
  func.func @transform_26(%arg0: i32) -> (i32, i32) {
    %c0_i32 = arith.constant 0 : i32
    %c0_i32_0 = arith.constant 0 : i32
    %c0_i32_1 = arith.constant 0 : i32
    return %c0_i32, %c0_i32_0 : i32, i32
  }
  func.func @transform_27(%arg0: i32) -> (i32, i32, i32) {
    %c0_i32 = arith.constant 0 : i32
    %c0_i32_0 = arith.constant 0 : i32
    %c0_i32_1 = arith.constant 0 : i32
    return %arg0, %c0_i32, %c0_i32_0 : i32, i32, i32
  }
}

module attributes {stable_mosaic.version = 11 : i64} {
  func.func @_dec_layer_kernel(%arg0: i32, %arg1: memref<1x8x32xbf16, #tpu.memory_space<vmem>>, %arg2: memref<1x8x32xbf16, #tpu.memory_space<vmem>>, %arg3: memref<1x16x32xbf16, #tpu.memory_space<vmem>>, %arg4: memref<32x64xbf16, #tpu.memory_space<vmem>>, %arg5: memref<1x64xf32, #tpu.memory_space<vmem>>, %arg6: memref<32x32xbf16, #tpu.memory_space<vmem>>, %arg7: memref<1x32xf32, #tpu.memory_space<vmem>>, %arg8: memref<32x32xbf16, #tpu.memory_space<vmem>>, %arg9: memref<1x32xf32, #tpu.memory_space<vmem>>, %arg10: memref<1x32xf32, #tpu.memory_space<vmem>>, %arg11: memref<1x32xf32, #tpu.memory_space<vmem>>, %arg12: memref<32x32xbf16, #tpu.memory_space<vmem>>, %arg13: memref<1x32xf32, #tpu.memory_space<vmem>>, %arg14: memref<32x64xbf16, #tpu.memory_space<vmem>>, %arg15: memref<1x64xf32, #tpu.memory_space<vmem>>, %arg16: memref<32x32xbf16, #tpu.memory_space<vmem>>, %arg17: memref<1x32xf32, #tpu.memory_space<vmem>>, %arg18: memref<1x32xf32, #tpu.memory_space<vmem>>, %arg19: memref<1x32xf32, #tpu.memory_space<vmem>>, %arg20: memref<32x64xbf16, #tpu.memory_space<vmem>>, %arg21: memref<1x64xf32, #tpu.memory_space<vmem>>, %arg22: memref<64x32xbf16, #tpu.memory_space<vmem>>, %arg23: memref<1x32xf32, #tpu.memory_space<vmem>>, %arg24: memref<1x32xf32, #tpu.memory_space<vmem>>, %arg25: memref<1x32xf32, #tpu.memory_space<vmem>>, %arg26: memref<1x32xf32, #tpu.memory_space<vmem>>, %arg27: memref<1x32xf32, #tpu.memory_space<vmem>>, %arg28: memref<1x8x32xf32, #tpu.memory_space<vmem>>) attributes {dimension_semantics = [#tpu.dimension_semantics<parallel>], iteration_bounds = array<i64: 2>, scalar_prefetch = 0 : i64, scratch_operands = 0 : i64, tpu.core_type = #tpu.core_type<tc>, window_params = [{transform_indices = @transform_0, window_bounds = array<i64: 1, 8, 32>}, {transform_indices = @transform_1, window_bounds = array<i64: 1, 8, 32>}, {transform_indices = @transform_2, window_bounds = array<i64: 1, 16, 32>}, {pipeline_mode = #tpu.pipeline_mode<synchronous>, transform_indices = @transform_3, window_bounds = array<i64: 32, 64>}, {pipeline_mode = #tpu.pipeline_mode<synchronous>, transform_indices = @transform_4, window_bounds = array<i64: 1, 64>}, {pipeline_mode = #tpu.pipeline_mode<synchronous>, transform_indices = @transform_5, window_bounds = array<i64: 32, 32>}, {pipeline_mode = #tpu.pipeline_mode<synchronous>, transform_indices = @transform_6, window_bounds = array<i64: 1, 32>}, {pipeline_mode = #tpu.pipeline_mode<synchronous>, transform_indices = @transform_7, window_bounds = array<i64: 32, 32>}, {pipeline_mode = #tpu.pipeline_mode<synchronous>, transform_indices = @transform_8, window_bounds = array<i64: 1, 32>}, {pipeline_mode = #tpu.pipeline_mode<synchronous>, transform_indices = @transform_9, window_bounds = array<i64: 1, 32>}, {pipeline_mode = #tpu.pipeline_mode<synchronous>, transform_indices = @transform_10, window_bounds = array<i64: 1, 32>}, {pipeline_mode = #tpu.pipeline_mode<synchronous>, transform_indices = @transform_11, window_bounds = array<i64: 32, 32>}, {pipeline_mode = #tpu.pipeline_mode<synchronous>, transform_indices = @transform_12, window_bounds = array<i64: 1, 32>}, {pipeline_mode = #tpu.pipeline_mode<synchronous>, transform_indices = @transform_13, window_bounds = array<i64: 32, 64>}, {pipeline_mode = #tpu.pipeline_mode<synchronous>, transform_indices = @transform_14, window_bounds = array<i64: 1, 64>}, {pipeline_mode = #tpu.pipeline_mode<synchronous>, transform_indices = @transform_15, window_bounds = array<i64: 32, 32>}, {pipeline_mode = #tpu.pipeline_mode<synchronous>, transform_indices = @transform_16, window_bounds = array<i64: 1, 32>}, {pipeline_mode = #tpu.pipeline_mode<synchronous>, transform_indices = @transform_17, window_bounds = array<i64: 1, 32>}, {pipeline_mode = #tpu.pipeline_mode<synchronous>, transform_indices = @transform_18, window_bounds = array<i64: 1, 32>}, {pipeline_mode = #tpu.pipeline_mode<synchronous>, transform_indices = @transform_19, window_bounds = array<i64: 32, 64>}, {pipeline_mode = #tpu.pipeline_mode<synchronous>, transform_indices = @transform_20, window_bounds = array<i64: 1, 64>}, {pipeline_mode = #tpu.pipeline_mode<synchronous>, transform_indices = @transform_21, window_bounds = array<i64: 64, 32>}, {pipeline_mode = #tpu.pipeline_mode<synchronous>, transform_indices = @transform_22, window_bounds = array<i64: 1, 32>}, {pipeline_mode = #tpu.pipeline_mode<synchronous>, transform_indices = @transform_23, window_bounds = array<i64: 1, 32>}, {pipeline_mode = #tpu.pipeline_mode<synchronous>, transform_indices = @transform_24, window_bounds = array<i64: 1, 32>}, {pipeline_mode = #tpu.pipeline_mode<synchronous>, transform_indices = @transform_25, window_bounds = array<i64: 1, 32>}, {pipeline_mode = #tpu.pipeline_mode<synchronous>, transform_indices = @transform_26, window_bounds = array<i64: 1, 32>}, {transform_indices = @transform_27, window_bounds = array<i64: 1, 8, 32>}]} {
    %c0 = arith.constant 0 : index
    %c0_0 = arith.constant 0 : index
    %c0_1 = arith.constant 0 : index
    %0 = vector.load %arg1[%c0, %c0_0, %c0_1] : memref<1x8x32xbf16, #tpu.memory_space<vmem>>, vector<1x8x32xbf16>
    %1 = vector.shape_cast %0 : vector<1x8x32xbf16> to vector<8x32xbf16>
    %2 = arith.extf %1 : vector<8x32xbf16> to vector<8x32xf32>
    %c0_2 = arith.constant 0 : index
    %c0_3 = arith.constant 0 : index
    %c0_4 = arith.constant 0 : index
    %3 = vector.load %arg2[%c0_2, %c0_3, %c0_4] : memref<1x8x32xbf16, #tpu.memory_space<vmem>>, vector<1x8x32xbf16>
    %4 = vector.shape_cast %3 : vector<1x8x32xbf16> to vector<8x32xbf16>
    %5 = arith.extf %4 : vector<8x32xbf16> to vector<8x32xf32>
    %6 = arith.addf %2, %5 : vector<8x32xf32>
    %7 = arith.truncf %6 : vector<8x32xf32> to vector<8x32xbf16>
    %c0_5 = arith.constant 0 : index
    %c0_6 = arith.constant 0 : index
    %8 = vector.load %arg4[%c0_5, %c0_6] : memref<32x64xbf16, #tpu.memory_space<vmem>>, vector<32x64xbf16>
    %cst = arith.constant dense<0.000000e+00> : vector<8x64xf32>
    %9 = tpu.matmul %7, %8, %cst {dimension_numbers = #tpu.dot_dimension_numbers<[1], [0], [0], [1], [0, 0, 1, 1], [], []>} : vector<8x32xbf16>, vector<32x64xbf16>, vector<8x64xf32> -> vector<8x64xf32>
    %c0_7 = arith.constant 0 : index
    %c0_8 = arith.constant 0 : index
    %10 = vector.load %arg5[%c0_7, %c0_8] : memref<1x64xf32, #tpu.memory_space<vmem>>, vector<1x64xf32>
    %11 = vector.broadcast %10 : vector<1x64xf32> to vector<8x64xf32>
    %12 = arith.addf %9, %11 : vector<8x64xf32>
    %13 = arith.truncf %12 : vector<8x64xf32> to vector<8x64xbf16>
    %14 = arith.truncf %2 : vector<8x32xf32> to vector<8x32xbf16>
    %c0_9 = arith.constant 0 : index
    %c0_10 = arith.constant 0 : index
    %15 = vector.load %arg6[%c0_9, %c0_10] : memref<32x32xbf16, #tpu.memory_space<vmem>>, vector<32x32xbf16>
    %cst_11 = arith.constant dense<0.000000e+00> : vector<8x32xf32>
    %16 = tpu.matmul %14, %15, %cst_11 {dimension_numbers = #tpu.dot_dimension_numbers<[1], [0], [0], [1], [0, 0, 1, 1], [], []>} : vector<8x32xbf16>, vector<32x32xbf16>, vector<8x32xf32> -> vector<8x32xf32>
    %c0_12 = arith.constant 0 : index
    %c0_13 = arith.constant 0 : index
    %17 = vector.load %arg7[%c0_12, %c0_13] : memref<1x32xf32, #tpu.memory_space<vmem>>, vector<1x32xf32>
    %18 = vector.broadcast %17 : vector<1x32xf32> to vector<8x32xf32>
    %19 = arith.addf %16, %18 : vector<8x32xf32>
    %20 = arith.truncf %19 : vector<8x32xf32> to vector<8x32xbf16>
    %21 = vector.extract_strided_slice %13 {offsets = [0, 0], sizes = [8, 32], strides = [1, 1]} : vector<8x64xbf16> to vector<8x32xbf16>
    %22 = vector.extract_strided_slice %13 {offsets = [0, 32], sizes = [8, 32], strides = [1, 1]} : vector<8x64xbf16> to vector<8x32xbf16>
    %23 = vector.extract_strided_slice %21 {offsets = [0, 0], sizes = [8, 8], strides = [1, 1]} : vector<8x32xbf16> to vector<8x8xbf16>
    %24 = vector.extract_strided_slice %22 {offsets = [0, 0], sizes = [8, 8], strides = [1, 1]} : vector<8x32xbf16> to vector<8x8xbf16>
    %cst_14 = arith.constant dense<0.000000e+00> : vector<8x8xf32>
    %25 = tpu.matmul %23, %24, %cst_14 {dimension_numbers = #tpu.dot_dimension_numbers<[1], [1], [0], [0], [0, 0, 1, 0], [], []>} : vector<8x8xbf16>, vector<8x8xbf16>, vector<8x8xf32> -> vector<8x8xf32>
    %cst_15 = arith.constant dense<0xFF800000> : vector<8xf32>
    %26 = vector.multi_reduction <maximumf>, %25, %cst_15 [1] : vector<8x8xf32> to vector<8xf32>
    %27 = vector.shape_cast %26 : vector<8xf32> to vector<8x1xf32>
    %28 = vector.broadcast %27 : vector<8x1xf32> to vector<8x8xf32>
    %29 = arith.subf %25, %28 : vector<8x8xf32>
    %30 = math.exp %29 : vector<8x8xf32>
    %cst_16 = arith.constant dense<0.000000e+00> : vector<8xf32>
    %31 = vector.multi_reduction <add>, %30, %cst_16 [1] : vector<8x8xf32> to vector<8xf32>
    %32 = vector.shape_cast %31 : vector<8xf32> to vector<8x1xf32>
    %33 = tpu.reciprocal %32 {approx = true} : vector<8x1xf32> -> vector<8x1xf32>
    %34 = vector.broadcast %33 : vector<8x1xf32> to vector<8x8xf32>
    %35 = arith.mulf %30, %34 : vector<8x8xf32>
    %36 = arith.truncf %35 : vector<8x8xf32> to vector<8x8xbf16>
    %37 = vector.extract_strided_slice %20 {offsets = [0, 0], sizes = [8, 8], strides = [1, 1]} : vector<8x32xbf16> to vector<8x8xbf16>
    %cst_17 = arith.constant dense<0.000000e+00> : vector<8x8xf32>
    %38 = tpu.matmul %36, %37, %cst_17 {dimension_numbers = #tpu.dot_dimension_numbers<[1], [0], [0], [1], [0, 0, 1, 1], [], []>} : vector<8x8xbf16>, vector<8x8xbf16>, vector<8x8xf32> -> vector<8x8xf32>
    %39 = vector.extract_strided_slice %21 {offsets = [0, 8], sizes = [8, 8], strides = [1, 1]} : vector<8x32xbf16> to vector<8x8xbf16>
    %40 = vector.extract_strided_slice %22 {offsets = [0, 8], sizes = [8, 8], strides = [1, 1]} : vector<8x32xbf16> to vector<8x8xbf16>
    %cst_18 = arith.constant dense<0.000000e+00> : vector<8x8xf32>
    %41 = tpu.matmul %39, %40, %cst_18 {dimension_numbers = #tpu.dot_dimension_numbers<[1], [1], [0], [0], [0, 0, 1, 0], [], []>} : vector<8x8xbf16>, vector<8x8xbf16>, vector<8x8xf32> -> vector<8x8xf32>
    %cst_19 = arith.constant dense<0xFF800000> : vector<8xf32>
    %42 = vector.multi_reduction <maximumf>, %41, %cst_19 [1] : vector<8x8xf32> to vector<8xf32>
    %43 = vector.shape_cast %42 : vector<8xf32> to vector<8x1xf32>
    %44 = vector.broadcast %43 : vector<8x1xf32> to vector<8x8xf32>
    %45 = arith.subf %41, %44 : vector<8x8xf32>
    %46 = math.exp %45 : vector<8x8xf32>
    %cst_20 = arith.constant dense<0.000000e+00> : vector<8xf32>
    %47 = vector.multi_reduction <add>, %46, %cst_20 [1] : vector<8x8xf32> to vector<8xf32>
    %48 = vector.shape_cast %47 : vector<8xf32> to vector<8x1xf32>
    %49 = tpu.reciprocal %48 {approx = true} : vector<8x1xf32> -> vector<8x1xf32>
    %50 = vector.broadcast %49 : vector<8x1xf32> to vector<8x8xf32>
    %51 = arith.mulf %46, %50 : vector<8x8xf32>
    %52 = arith.truncf %51 : vector<8x8xf32> to vector<8x8xbf16>
    %53 = vector.extract_strided_slice %20 {offsets = [0, 8], sizes = [8, 8], strides = [1, 1]} : vector<8x32xbf16> to vector<8x8xbf16>
    %cst_21 = arith.constant dense<0.000000e+00> : vector<8x8xf32>
    %54 = tpu.matmul %52, %53, %cst_21 {dimension_numbers = #tpu.dot_dimension_numbers<[1], [0], [0], [1], [0, 0, 1, 1], [], []>} : vector<8x8xbf16>, vector<8x8xbf16>, vector<8x8xf32> -> vector<8x8xf32>
    %55 = vector.extract_strided_slice %21 {offsets = [0, 16], sizes = [8, 8], strides = [1, 1]} : vector<8x32xbf16> to vector<8x8xbf16>
    %56 = vector.extract_strided_slice %22 {offsets = [0, 16], sizes = [8, 8], strides = [1, 1]} : vector<8x32xbf16> to vector<8x8xbf16>
    %cst_22 = arith.constant dense<0.000000e+00> : vector<8x8xf32>
    %57 = tpu.matmul %55, %56, %cst_22 {dimension_numbers = #tpu.dot_dimension_numbers<[1], [1], [0], [0], [0, 0, 1, 0], [], []>} : vector<8x8xbf16>, vector<8x8xbf16>, vector<8x8xf32> -> vector<8x8xf32>
    %cst_23 = arith.constant dense<0xFF800000> : vector<8xf32>
    %58 = vector.multi_reduction <maximumf>, %57, %cst_23 [1] : vector<8x8xf32> to vector<8xf32>
    %59 = vector.shape_cast %58 : vector<8xf32> to vector<8x1xf32>
    %60 = vector.broadcast %59 : vector<8x1xf32> to vector<8x8xf32>
    %61 = arith.subf %57, %60 : vector<8x8xf32>
    %62 = math.exp %61 : vector<8x8xf32>
    %cst_24 = arith.constant dense<0.000000e+00> : vector<8xf32>
    %63 = vector.multi_reduction <add>, %62, %cst_24 [1] : vector<8x8xf32> to vector<8xf32>
    %64 = vector.shape_cast %63 : vector<8xf32> to vector<8x1xf32>
    %65 = tpu.reciprocal %64 {approx = true} : vector<8x1xf32> -> vector<8x1xf32>
    %66 = vector.broadcast %65 : vector<8x1xf32> to vector<8x8xf32>
    %67 = arith.mulf %62, %66 : vector<8x8xf32>
    %68 = arith.truncf %67 : vector<8x8xf32> to vector<8x8xbf16>
    %69 = vector.extract_strided_slice %20 {offsets = [0, 16], sizes = [8, 8], strides = [1, 1]} : vector<8x32xbf16> to vector<8x8xbf16>
    %cst_25 = arith.constant dense<0.000000e+00> : vector<8x8xf32>
    %70 = tpu.matmul %68, %69, %cst_25 {dimension_numbers = #tpu.dot_dimension_numbers<[1], [0], [0], [1], [0, 0, 1, 1], [], []>} : vector<8x8xbf16>, vector<8x8xbf16>, vector<8x8xf32> -> vector<8x8xf32>
    %71 = vector.extract_strided_slice %21 {offsets = [0, 24], sizes = [8, 8], strides = [1, 1]} : vector<8x32xbf16> to vector<8x8xbf16>
    %72 = vector.extract_strided_slice %22 {offsets = [0, 24], sizes = [8, 8], strides = [1, 1]} : vector<8x32xbf16> to vector<8x8xbf16>
    %cst_26 = arith.constant dense<0.000000e+00> : vector<8x8xf32>
    %73 = tpu.matmul %71, %72, %cst_26 {dimension_numbers = #tpu.dot_dimension_numbers<[1], [1], [0], [0], [0, 0, 1, 0], [], []>} : vector<8x8xbf16>, vector<8x8xbf16>, vector<8x8xf32> -> vector<8x8xf32>
    %cst_27 = arith.constant dense<0xFF800000> : vector<8xf32>
    %74 = vector.multi_reduction <maximumf>, %73, %cst_27 [1] : vector<8x8xf32> to vector<8xf32>
    %75 = vector.shape_cast %74 : vector<8xf32> to vector<8x1xf32>
    %76 = vector.broadcast %75 : vector<8x1xf32> to vector<8x8xf32>
    %77 = arith.subf %73, %76 : vector<8x8xf32>
    %78 = math.exp %77 : vector<8x8xf32>
    %cst_28 = arith.constant dense<0.000000e+00> : vector<8xf32>
    %79 = vector.multi_reduction <add>, %78, %cst_28 [1] : vector<8x8xf32> to vector<8xf32>
    %80 = vector.shape_cast %79 : vector<8xf32> to vector<8x1xf32>
    %81 = tpu.reciprocal %80 {approx = true} : vector<8x1xf32> -> vector<8x1xf32>
    %82 = vector.broadcast %81 : vector<8x1xf32> to vector<8x8xf32>
    %83 = arith.mulf %78, %82 : vector<8x8xf32>
    %84 = arith.truncf %83 : vector<8x8xf32> to vector<8x8xbf16>
    %85 = vector.extract_strided_slice %20 {offsets = [0, 24], sizes = [8, 8], strides = [1, 1]} : vector<8x32xbf16> to vector<8x8xbf16>
    %cst_29 = arith.constant dense<0.000000e+00> : vector<8x8xf32>
    %86 = tpu.matmul %84, %85, %cst_29 {dimension_numbers = #tpu.dot_dimension_numbers<[1], [0], [0], [1], [0, 0, 1, 1], [], []>} : vector<8x8xbf16>, vector<8x8xbf16>, vector<8x8xf32> -> vector<8x8xf32>
    %87 = tpu.concatenate %38, %54, %70, %86 in 1 : vector<8x8xf32>, vector<8x8xf32>, vector<8x8xf32>, vector<8x8xf32> -> vector<8x32xf32>
    %88 = arith.truncf %87 : vector<8x32xf32> to vector<8x32xbf16>
    %c0_30 = arith.constant 0 : index
    %c0_31 = arith.constant 0 : index
    %89 = vector.load %arg8[%c0_30, %c0_31] : memref<32x32xbf16, #tpu.memory_space<vmem>>, vector<32x32xbf16>
    %cst_32 = arith.constant dense<0.000000e+00> : vector<8x32xf32>
    %90 = tpu.matmul %88, %89, %cst_32 {dimension_numbers = #tpu.dot_dimension_numbers<[1], [0], [0], [1], [0, 0, 1, 1], [], []>} : vector<8x32xbf16>, vector<32x32xbf16>, vector<8x32xf32> -> vector<8x32xf32>
    %c0_33 = arith.constant 0 : index
    %c0_34 = arith.constant 0 : index
    %91 = vector.load %arg9[%c0_33, %c0_34] : memref<1x32xf32, #tpu.memory_space<vmem>>, vector<1x32xf32>
    %92 = vector.broadcast %91 : vector<1x32xf32> to vector<8x32xf32>
    %93 = arith.addf %90, %92 : vector<8x32xf32>
    %94 = arith.addf %2, %93 : vector<8x32xf32>
    %c0_35 = arith.constant 0 : index
    %c0_36 = arith.constant 0 : index
    %95 = vector.load %arg10[%c0_35, %c0_36] : memref<1x32xf32, #tpu.memory_space<vmem>>, vector<1x32xf32>
    %96 = vector.shape_cast %95 : vector<1x32xf32> to vector<32xf32>
    %c0_37 = arith.constant 0 : index
    %c0_38 = arith.constant 0 : index
    %97 = vector.load %arg11[%c0_37, %c0_38] : memref<1x32xf32, #tpu.memory_space<vmem>>, vector<1x32xf32>
    %98 = vector.shape_cast %97 : vector<1x32xf32> to vector<32xf32>
    %cst_39 = arith.constant dense<0.000000e+00> : vector<8xf32>
    %99 = vector.multi_reduction <add>, %94, %cst_39 [1] : vector<8x32xf32> to vector<8xf32>
    %100 = vector.shape_cast %99 : vector<8xf32> to vector<8x1xf32>
    %cst_40 = arith.constant 3.200000e+01 : f32
    %101 = vector.broadcast %cst_40 : f32 to vector<8x1xf32>
    %102 = arith.divf %100, %101 : vector<8x1xf32>
    %103 = vector.broadcast %102 : vector<8x1xf32> to vector<8x32xf32>
    %104 = arith.subf %94, %103 : vector<8x32xf32>
    %105 = arith.mulf %104, %104 : vector<8x32xf32>
    %cst_41 = arith.constant dense<0.000000e+00> : vector<8xf32>
    %106 = vector.multi_reduction <add>, %105, %cst_41 [1] : vector<8x32xf32> to vector<8xf32>
    %107 = vector.shape_cast %106 : vector<8xf32> to vector<8x1xf32>
    %cst_42 = arith.constant 3.200000e+01 : f32
    %108 = vector.broadcast %cst_42 : f32 to vector<8x1xf32>
    %109 = arith.divf %107, %108 : vector<8x1xf32>
    %cst_43 = arith.constant 9.99999974E-6 : f32
    %110 = vector.broadcast %cst_43 : f32 to vector<8x1xf32>
    %111 = arith.addf %109, %110 : vector<8x1xf32>
    %112 = math.rsqrt %111 : vector<8x1xf32>
    %113 = vector.broadcast %112 : vector<8x1xf32> to vector<8x32xf32>
    %114 = arith.mulf %104, %113 : vector<8x32xf32>
    %115 = vector.shape_cast %96 : vector<32xf32> to vector<1x32xf32>
    %116 = vector.broadcast %115 : vector<1x32xf32> to vector<8x32xf32>
    %117 = arith.mulf %114, %116 : vector<8x32xf32>
    %118 = vector.shape_cast %98 : vector<32xf32> to vector<1x32xf32>
    %119 = vector.broadcast %118 : vector<1x32xf32> to vector<8x32xf32>
    %120 = arith.addf %117, %119 : vector<8x32xf32>
    %121 = arith.addf %120, %5 : vector<8x32xf32>
    %122 = arith.truncf %121 : vector<8x32xf32> to vector<8x32xbf16>
    %c0_44 = arith.constant 0 : index
    %c0_45 = arith.constant 0 : index
    %123 = vector.load %arg12[%c0_44, %c0_45] : memref<32x32xbf16, #tpu.memory_space<vmem>>, vector<32x32xbf16>
    %cst_46 = arith.constant dense<0.000000e+00> : vector<8x32xf32>
    %124 = tpu.matmul %122, %123, %cst_46 {dimension_numbers = #tpu.dot_dimension_numbers<[1], [0], [0], [1], [0, 0, 1, 1], [], []>} : vector<8x32xbf16>, vector<32x32xbf16>, vector<8x32xf32> -> vector<8x32xf32>
    %c0_47 = arith.constant 0 : index
    %c0_48 = arith.constant 0 : index
    %125 = vector.load %arg13[%c0_47, %c0_48] : memref<1x32xf32, #tpu.memory_space<vmem>>, vector<1x32xf32>
    %126 = vector.broadcast %125 : vector<1x32xf32> to vector<8x32xf32>
    %127 = arith.addf %124, %126 : vector<8x32xf32>
    %128 = arith.truncf %127 : vector<8x32xf32> to vector<8x32xbf16>
    %c0_49 = arith.constant 0 : index
    %c0_50 = arith.constant 0 : index
    %c0_51 = arith.constant 0 : index
    %129 = vector.load %arg3[%c0_49, %c0_50, %c0_51] : memref<1x16x32xbf16, #tpu.memory_space<vmem>>, vector<1x16x32xbf16>
    %130 = vector.shape_cast %129 : vector<1x16x32xbf16> to vector<16x32xbf16>
    %c0_52 = arith.constant 0 : index
    %c0_53 = arith.constant 0 : index
    %131 = vector.load %arg14[%c0_52, %c0_53] : memref<32x64xbf16, #tpu.memory_space<vmem>>, vector<32x64xbf16>
    %cst_54 = arith.constant dense<0.000000e+00> : vector<16x64xf32>
    %132 = tpu.matmul %130, %131, %cst_54 {dimension_numbers = #tpu.dot_dimension_numbers<[1], [0], [0], [1], [0, 0, 1, 1], [], []>} : vector<16x32xbf16>, vector<32x64xbf16>, vector<16x64xf32> -> vector<16x64xf32>
    %c0_55 = arith.constant 0 : index
    %c0_56 = arith.constant 0 : index
    %133 = vector.load %arg15[%c0_55, %c0_56] : memref<1x64xf32, #tpu.memory_space<vmem>>, vector<1x64xf32>
    %134 = vector.broadcast %133 : vector<1x64xf32> to vector<16x64xf32>
    %135 = arith.addf %132, %134 : vector<16x64xf32>
    %136 = arith.truncf %135 : vector<16x64xf32> to vector<16x64xbf16>
    %137 = vector.extract_strided_slice %136 {offsets = [0, 0], sizes = [16, 32], strides = [1, 1]} : vector<16x64xbf16> to vector<16x32xbf16>
    %138 = vector.extract_strided_slice %136 {offsets = [0, 32], sizes = [16, 32], strides = [1, 1]} : vector<16x64xbf16> to vector<16x32xbf16>
    %139 = vector.extract_strided_slice %128 {offsets = [0, 0], sizes = [8, 8], strides = [1, 1]} : vector<8x32xbf16> to vector<8x8xbf16>
    %140 = vector.extract_strided_slice %137 {offsets = [0, 0], sizes = [16, 8], strides = [1, 1]} : vector<16x32xbf16> to vector<16x8xbf16>
    %cst_57 = arith.constant dense<0.000000e+00> : vector<8x16xf32>
    %141 = tpu.matmul %139, %140, %cst_57 {dimension_numbers = #tpu.dot_dimension_numbers<[1], [1], [0], [0], [0, 0, 1, 0], [], []>} : vector<8x8xbf16>, vector<16x8xbf16>, vector<8x16xf32> -> vector<8x16xf32>
    %cst_58 = arith.constant dense<0xFF800000> : vector<8xf32>
    %142 = vector.multi_reduction <maximumf>, %141, %cst_58 [1] : vector<8x16xf32> to vector<8xf32>
    %143 = vector.shape_cast %142 : vector<8xf32> to vector<8x1xf32>
    %144 = vector.broadcast %143 : vector<8x1xf32> to vector<8x16xf32>
    %145 = arith.subf %141, %144 : vector<8x16xf32>
    %146 = math.exp %145 : vector<8x16xf32>
    %cst_59 = arith.constant dense<0.000000e+00> : vector<8xf32>
    %147 = vector.multi_reduction <add>, %146, %cst_59 [1] : vector<8x16xf32> to vector<8xf32>
    %148 = vector.shape_cast %147 : vector<8xf32> to vector<8x1xf32>
    %149 = tpu.reciprocal %148 {approx = true} : vector<8x1xf32> -> vector<8x1xf32>
    %150 = vector.broadcast %149 : vector<8x1xf32> to vector<8x16xf32>
    %151 = arith.mulf %146, %150 : vector<8x16xf32>
    %152 = arith.truncf %151 : vector<8x16xf32> to vector<8x16xbf16>
    %153 = vector.extract_strided_slice %138 {offsets = [0, 0], sizes = [16, 8], strides = [1, 1]} : vector<16x32xbf16> to vector<16x8xbf16>
    %cst_60 = arith.constant dense<0.000000e+00> : vector<8x8xf32>
    %154 = tpu.matmul %152, %153, %cst_60 {dimension_numbers = #tpu.dot_dimension_numbers<[1], [0], [0], [1], [0, 0, 1, 1], [], []>} : vector<8x16xbf16>, vector<16x8xbf16>, vector<8x8xf32> -> vector<8x8xf32>
    %155 = vector.extract_strided_slice %128 {offsets = [0, 8], sizes = [8, 8], strides = [1, 1]} : vector<8x32xbf16> to vector<8x8xbf16>
    %156 = vector.extract_strided_slice %137 {offsets = [0, 8], sizes = [16, 8], strides = [1, 1]} : vector<16x32xbf16> to vector<16x8xbf16>
    %cst_61 = arith.constant dense<0.000000e+00> : vector<8x16xf32>
    %157 = tpu.matmul %155, %156, %cst_61 {dimension_numbers = #tpu.dot_dimension_numbers<[1], [1], [0], [0], [0, 0, 1, 0], [], []>} : vector<8x8xbf16>, vector<16x8xbf16>, vector<8x16xf32> -> vector<8x16xf32>
    %cst_62 = arith.constant dense<0xFF800000> : vector<8xf32>
    %158 = vector.multi_reduction <maximumf>, %157, %cst_62 [1] : vector<8x16xf32> to vector<8xf32>
    %159 = vector.shape_cast %158 : vector<8xf32> to vector<8x1xf32>
    %160 = vector.broadcast %159 : vector<8x1xf32> to vector<8x16xf32>
    %161 = arith.subf %157, %160 : vector<8x16xf32>
    %162 = math.exp %161 : vector<8x16xf32>
    %cst_63 = arith.constant dense<0.000000e+00> : vector<8xf32>
    %163 = vector.multi_reduction <add>, %162, %cst_63 [1] : vector<8x16xf32> to vector<8xf32>
    %164 = vector.shape_cast %163 : vector<8xf32> to vector<8x1xf32>
    %165 = tpu.reciprocal %164 {approx = true} : vector<8x1xf32> -> vector<8x1xf32>
    %166 = vector.broadcast %165 : vector<8x1xf32> to vector<8x16xf32>
    %167 = arith.mulf %162, %166 : vector<8x16xf32>
    %168 = arith.truncf %167 : vector<8x16xf32> to vector<8x16xbf16>
    %169 = vector.extract_strided_slice %138 {offsets = [0, 8], sizes = [16, 8], strides = [1, 1]} : vector<16x32xbf16> to vector<16x8xbf16>
    %cst_64 = arith.constant dense<0.000000e+00> : vector<8x8xf32>
    %170 = tpu.matmul %168, %169, %cst_64 {dimension_numbers = #tpu.dot_dimension_numbers<[1], [0], [0], [1], [0, 0, 1, 1], [], []>} : vector<8x16xbf16>, vector<16x8xbf16>, vector<8x8xf32> -> vector<8x8xf32>
    %171 = vector.extract_strided_slice %128 {offsets = [0, 16], sizes = [8, 8], strides = [1, 1]} : vector<8x32xbf16> to vector<8x8xbf16>
    %172 = vector.extract_strided_slice %137 {offsets = [0, 16], sizes = [16, 8], strides = [1, 1]} : vector<16x32xbf16> to vector<16x8xbf16>
    %cst_65 = arith.constant dense<0.000000e+00> : vector<8x16xf32>
    %173 = tpu.matmul %171, %172, %cst_65 {dimension_numbers = #tpu.dot_dimension_numbers<[1], [1], [0], [0], [0, 0, 1, 0], [], []>} : vector<8x8xbf16>, vector<16x8xbf16>, vector<8x16xf32> -> vector<8x16xf32>
    %cst_66 = arith.constant dense<0xFF800000> : vector<8xf32>
    %174 = vector.multi_reduction <maximumf>, %173, %cst_66 [1] : vector<8x16xf32> to vector<8xf32>
    %175 = vector.shape_cast %174 : vector<8xf32> to vector<8x1xf32>
    %176 = vector.broadcast %175 : vector<8x1xf32> to vector<8x16xf32>
    %177 = arith.subf %173, %176 : vector<8x16xf32>
    %178 = math.exp %177 : vector<8x16xf32>
    %cst_67 = arith.constant dense<0.000000e+00> : vector<8xf32>
    %179 = vector.multi_reduction <add>, %178, %cst_67 [1] : vector<8x16xf32> to vector<8xf32>
    %180 = vector.shape_cast %179 : vector<8xf32> to vector<8x1xf32>
    %181 = tpu.reciprocal %180 {approx = true} : vector<8x1xf32> -> vector<8x1xf32>
    %182 = vector.broadcast %181 : vector<8x1xf32> to vector<8x16xf32>
    %183 = arith.mulf %178, %182 : vector<8x16xf32>
    %184 = arith.truncf %183 : vector<8x16xf32> to vector<8x16xbf16>
    %185 = vector.extract_strided_slice %138 {offsets = [0, 16], sizes = [16, 8], strides = [1, 1]} : vector<16x32xbf16> to vector<16x8xbf16>
    %cst_68 = arith.constant dense<0.000000e+00> : vector<8x8xf32>
    %186 = tpu.matmul %184, %185, %cst_68 {dimension_numbers = #tpu.dot_dimension_numbers<[1], [0], [0], [1], [0, 0, 1, 1], [], []>} : vector<8x16xbf16>, vector<16x8xbf16>, vector<8x8xf32> -> vector<8x8xf32>
    %187 = vector.extract_strided_slice %128 {offsets = [0, 24], sizes = [8, 8], strides = [1, 1]} : vector<8x32xbf16> to vector<8x8xbf16>
    %188 = vector.extract_strided_slice %137 {offsets = [0, 24], sizes = [16, 8], strides = [1, 1]} : vector<16x32xbf16> to vector<16x8xbf16>
    %cst_69 = arith.constant dense<0.000000e+00> : vector<8x16xf32>
    %189 = tpu.matmul %187, %188, %cst_69 {dimension_numbers = #tpu.dot_dimension_numbers<[1], [1], [0], [0], [0, 0, 1, 0], [], []>} : vector<8x8xbf16>, vector<16x8xbf16>, vector<8x16xf32> -> vector<8x16xf32>
    %cst_70 = arith.constant dense<0xFF800000> : vector<8xf32>
    %190 = vector.multi_reduction <maximumf>, %189, %cst_70 [1] : vector<8x16xf32> to vector<8xf32>
    %191 = vector.shape_cast %190 : vector<8xf32> to vector<8x1xf32>
    %192 = vector.broadcast %191 : vector<8x1xf32> to vector<8x16xf32>
    %193 = arith.subf %189, %192 : vector<8x16xf32>
    %194 = math.exp %193 : vector<8x16xf32>
    %cst_71 = arith.constant dense<0.000000e+00> : vector<8xf32>
    %195 = vector.multi_reduction <add>, %194, %cst_71 [1] : vector<8x16xf32> to vector<8xf32>
    %196 = vector.shape_cast %195 : vector<8xf32> to vector<8x1xf32>
    %197 = tpu.reciprocal %196 {approx = true} : vector<8x1xf32> -> vector<8x1xf32>
    %198 = vector.broadcast %197 : vector<8x1xf32> to vector<8x16xf32>
    %199 = arith.mulf %194, %198 : vector<8x16xf32>
    %200 = arith.truncf %199 : vector<8x16xf32> to vector<8x16xbf16>
    %201 = vector.extract_strided_slice %138 {offsets = [0, 24], sizes = [16, 8], strides = [1, 1]} : vector<16x32xbf16> to vector<16x8xbf16>
    %cst_72 = arith.constant dense<0.000000e+00> : vector<8x8xf32>
    %202 = tpu.matmul %200, %201, %cst_72 {dimension_numbers = #tpu.dot_dimension_numbers<[1], [0], [0], [1], [0, 0, 1, 1], [], []>} : vector<8x16xbf16>, vector<16x8xbf16>, vector<8x8xf32> -> vector<8x8xf32>
    %203 = tpu.concatenate %154, %170, %186, %202 in 1 : vector<8x8xf32>, vector<8x8xf32>, vector<8x8xf32>, vector<8x8xf32> -> vector<8x32xf32>
    %204 = arith.truncf %203 : vector<8x32xf32> to vector<8x32xbf16>
    %c0_73 = arith.constant 0 : index
    %c0_74 = arith.constant 0 : index
    %205 = vector.load %arg16[%c0_73, %c0_74] : memref<32x32xbf16, #tpu.memory_space<vmem>>, vector<32x32xbf16>
    %cst_75 = arith.constant dense<0.000000e+00> : vector<8x32xf32>
    %206 = tpu.matmul %204, %205, %cst_75 {dimension_numbers = #tpu.dot_dimension_numbers<[1], [0], [0], [1], [0, 0, 1, 1], [], []>} : vector<8x32xbf16>, vector<32x32xbf16>, vector<8x32xf32> -> vector<8x32xf32>
    %c0_76 = arith.constant 0 : index
    %c0_77 = arith.constant 0 : index
    %207 = vector.load %arg17[%c0_76, %c0_77] : memref<1x32xf32, #tpu.memory_space<vmem>>, vector<1x32xf32>
    %208 = vector.broadcast %207 : vector<1x32xf32> to vector<8x32xf32>
    %209 = arith.addf %206, %208 : vector<8x32xf32>
    %210 = arith.addf %120, %209 : vector<8x32xf32>
    %c0_78 = arith.constant 0 : index
    %c0_79 = arith.constant 0 : index
    %211 = vector.load %arg18[%c0_78, %c0_79] : memref<1x32xf32, #tpu.memory_space<vmem>>, vector<1x32xf32>
    %212 = vector.shape_cast %211 : vector<1x32xf32> to vector<32xf32>
    %c0_80 = arith.constant 0 : index
    %c0_81 = arith.constant 0 : index
    %213 = vector.load %arg19[%c0_80, %c0_81] : memref<1x32xf32, #tpu.memory_space<vmem>>, vector<1x32xf32>
    %214 = vector.shape_cast %213 : vector<1x32xf32> to vector<32xf32>
    %cst_82 = arith.constant dense<0.000000e+00> : vector<8xf32>
    %215 = vector.multi_reduction <add>, %210, %cst_82 [1] : vector<8x32xf32> to vector<8xf32>
    %216 = vector.shape_cast %215 : vector<8xf32> to vector<8x1xf32>
    %cst_83 = arith.constant 3.200000e+01 : f32
    %217 = vector.broadcast %cst_83 : f32 to vector<8x1xf32>
    %218 = arith.divf %216, %217 : vector<8x1xf32>
    %219 = vector.broadcast %218 : vector<8x1xf32> to vector<8x32xf32>
    %220 = arith.subf %210, %219 : vector<8x32xf32>
    %221 = arith.mulf %220, %220 : vector<8x32xf32>
    %cst_84 = arith.constant dense<0.000000e+00> : vector<8xf32>
    %222 = vector.multi_reduction <add>, %221, %cst_84 [1] : vector<8x32xf32> to vector<8xf32>
    %223 = vector.shape_cast %222 : vector<8xf32> to vector<8x1xf32>
    %cst_85 = arith.constant 3.200000e+01 : f32
    %224 = vector.broadcast %cst_85 : f32 to vector<8x1xf32>
    %225 = arith.divf %223, %224 : vector<8x1xf32>
    %cst_86 = arith.constant 9.99999974E-6 : f32
    %226 = vector.broadcast %cst_86 : f32 to vector<8x1xf32>
    %227 = arith.addf %225, %226 : vector<8x1xf32>
    %228 = math.rsqrt %227 : vector<8x1xf32>
    %229 = vector.broadcast %228 : vector<8x1xf32> to vector<8x32xf32>
    %230 = arith.mulf %220, %229 : vector<8x32xf32>
    %231 = vector.shape_cast %212 : vector<32xf32> to vector<1x32xf32>
    %232 = vector.broadcast %231 : vector<1x32xf32> to vector<8x32xf32>
    %233 = arith.mulf %230, %232 : vector<8x32xf32>
    %234 = vector.shape_cast %214 : vector<32xf32> to vector<1x32xf32>
    %235 = vector.broadcast %234 : vector<1x32xf32> to vector<8x32xf32>
    %236 = arith.addf %233, %235 : vector<8x32xf32>
    %237 = arith.truncf %236 : vector<8x32xf32> to vector<8x32xbf16>
    %c0_87 = arith.constant 0 : index
    %c0_88 = arith.constant 0 : index
    %238 = vector.load %arg20[%c0_87, %c0_88] : memref<32x64xbf16, #tpu.memory_space<vmem>>, vector<32x64xbf16>
    %cst_89 = arith.constant dense<0.000000e+00> : vector<8x64xf32>
    %239 = tpu.matmul %237, %238, %cst_89 {dimension_numbers = #tpu.dot_dimension_numbers<[1], [0], [0], [1], [0, 0, 1, 1], [], []>} : vector<8x32xbf16>, vector<32x64xbf16>, vector<8x64xf32> -> vector<8x64xf32>
    %c0_90 = arith.constant 0 : index
    %c0_91 = arith.constant 0 : index
    %240 = vector.load %arg21[%c0_90, %c0_91] : memref<1x64xf32, #tpu.memory_space<vmem>>, vector<1x64xf32>
    %241 = vector.broadcast %240 : vector<1x64xf32> to vector<8x64xf32>
    %242 = arith.addf %239, %241 : vector<8x64xf32>
    %cst_92 = arith.constant 0.000000e+00 : f32
    %243 = vector.broadcast %cst_92 : f32 to vector<8x64xf32>
    %244 = arith.maximumf %242, %243 : vector<8x64xf32>
    %245 = arith.truncf %244 : vector<8x64xf32> to vector<8x64xbf16>
    %c0_93 = arith.constant 0 : index
    %c0_94 = arith.constant 0 : index
    %246 = vector.load %arg22[%c0_93, %c0_94] : memref<64x32xbf16, #tpu.memory_space<vmem>>, vector<64x32xbf16>
    %cst_95 = arith.constant dense<0.000000e+00> : vector<8x32xf32>
    %247 = tpu.matmul %245, %246, %cst_95 {dimension_numbers = #tpu.dot_dimension_numbers<[1], [0], [0], [1], [0, 0, 1, 1], [], []>} : vector<8x64xbf16>, vector<64x32xbf16>, vector<8x32xf32> -> vector<8x32xf32>
    %c0_96 = arith.constant 0 : index
    %c0_97 = arith.constant 0 : index
    %248 = vector.load %arg23[%c0_96, %c0_97] : memref<1x32xf32, #tpu.memory_space<vmem>>, vector<1x32xf32>
    %249 = vector.broadcast %248 : vector<1x32xf32> to vector<8x32xf32>
    %250 = arith.addf %247, %249 : vector<8x32xf32>
    %251 = arith.addf %236, %250 : vector<8x32xf32>
    %c0_98 = arith.constant 0 : index
    %c0_99 = arith.constant 0 : index
    %252 = vector.load %arg24[%c0_98, %c0_99] : memref<1x32xf32, #tpu.memory_space<vmem>>, vector<1x32xf32>
    %253 = vector.shape_cast %252 : vector<1x32xf32> to vector<32xf32>
    %c0_100 = arith.constant 0 : index
    %c0_101 = arith.constant 0 : index
    %254 = vector.load %arg25[%c0_100, %c0_101] : memref<1x32xf32, #tpu.memory_space<vmem>>, vector<1x32xf32>
    %255 = vector.shape_cast %254 : vector<1x32xf32> to vector<32xf32>
    %cst_102 = arith.constant dense<0.000000e+00> : vector<8xf32>
    %256 = vector.multi_reduction <add>, %251, %cst_102 [1] : vector<8x32xf32> to vector<8xf32>
    %257 = vector.shape_cast %256 : vector<8xf32> to vector<8x1xf32>
    %cst_103 = arith.constant 3.200000e+01 : f32
    %258 = vector.broadcast %cst_103 : f32 to vector<8x1xf32>
    %259 = arith.divf %257, %258 : vector<8x1xf32>
    %260 = vector.broadcast %259 : vector<8x1xf32> to vector<8x32xf32>
    %261 = arith.subf %251, %260 : vector<8x32xf32>
    %262 = arith.mulf %261, %261 : vector<8x32xf32>
    %cst_104 = arith.constant dense<0.000000e+00> : vector<8xf32>
    %263 = vector.multi_reduction <add>, %262, %cst_104 [1] : vector<8x32xf32> to vector<8xf32>
    %264 = vector.shape_cast %263 : vector<8xf32> to vector<8x1xf32>
    %cst_105 = arith.constant 3.200000e+01 : f32
    %265 = vector.broadcast %cst_105 : f32 to vector<8x1xf32>
    %266 = arith.divf %264, %265 : vector<8x1xf32>
    %cst_106 = arith.constant 9.99999974E-6 : f32
    %267 = vector.broadcast %cst_106 : f32 to vector<8x1xf32>
    %268 = arith.addf %266, %267 : vector<8x1xf32>
    %269 = math.rsqrt %268 : vector<8x1xf32>
    %270 = vector.broadcast %269 : vector<8x1xf32> to vector<8x32xf32>
    %271 = arith.mulf %261, %270 : vector<8x32xf32>
    %272 = vector.shape_cast %253 : vector<32xf32> to vector<1x32xf32>
    %273 = vector.broadcast %272 : vector<1x32xf32> to vector<8x32xf32>
    %274 = arith.mulf %271, %273 : vector<8x32xf32>
    %275 = vector.shape_cast %255 : vector<32xf32> to vector<1x32xf32>
    %276 = vector.broadcast %275 : vector<1x32xf32> to vector<8x32xf32>
    %277 = arith.addf %274, %276 : vector<8x32xf32>
    %c0_107 = arith.constant 0 : index
    %c0_108 = arith.constant 0 : index
    %278 = vector.load %arg26[%c0_107, %c0_108] : memref<1x32xf32, #tpu.memory_space<vmem>>, vector<1x32xf32>
    %279 = vector.shape_cast %278 : vector<1x32xf32> to vector<32xf32>
    %c0_109 = arith.constant 0 : index
    %c0_110 = arith.constant 0 : index
    %280 = vector.load %arg27[%c0_109, %c0_110] : memref<1x32xf32, #tpu.memory_space<vmem>>, vector<1x32xf32>
    %281 = vector.shape_cast %280 : vector<1x32xf32> to vector<32xf32>
    %cst_111 = arith.constant dense<0.000000e+00> : vector<8xf32>
    %282 = vector.multi_reduction <add>, %277, %cst_111 [1] : vector<8x32xf32> to vector<8xf32>
    %283 = vector.shape_cast %282 : vector<8xf32> to vector<8x1xf32>
    %cst_112 = arith.constant 3.200000e+01 : f32
    %284 = vector.broadcast %cst_112 : f32 to vector<8x1xf32>
    %285 = arith.divf %283, %284 : vector<8x1xf32>
    %286 = vector.broadcast %285 : vector<8x1xf32> to vector<8x32xf32>
    %287 = arith.subf %277, %286 : vector<8x32xf32>
    %288 = arith.mulf %287, %287 : vector<8x32xf32>
    %cst_113 = arith.constant dense<0.000000e+00> : vector<8xf32>
    %289 = vector.multi_reduction <add>, %288, %cst_113 [1] : vector<8x32xf32> to vector<8xf32>
    %290 = vector.shape_cast %289 : vector<8xf32> to vector<8x1xf32>
    %cst_114 = arith.constant 3.200000e+01 : f32
    %291 = vector.broadcast %cst_114 : f32 to vector<8x1xf32>
    %292 = arith.divf %290, %291 : vector<8x1xf32>
    %cst_115 = arith.constant 9.99999974E-6 : f32
    %293 = vector.broadcast %cst_115 : f32 to vector<8x1xf32>
    %294 = arith.addf %292, %293 : vector<8x1xf32>
    %295 = math.rsqrt %294 : vector<8x1xf32>
    %296 = vector.broadcast %295 : vector<8x1xf32> to vector<8x32xf32>
    %297 = arith.mulf %287, %296 : vector<8x32xf32>
    %298 = vector.shape_cast %279 : vector<32xf32> to vector<1x32xf32>
    %299 = vector.broadcast %298 : vector<1x32xf32> to vector<8x32xf32>
    %300 = arith.mulf %297, %299 : vector<8x32xf32>
    %301 = vector.shape_cast %281 : vector<32xf32> to vector<1x32xf32>
    %302 = vector.broadcast %301 : vector<1x32xf32> to vector<8x32xf32>
    %303 = arith.addf %300, %302 : vector<8x32xf32>
    %c0_116 = arith.constant 0 : index
    %c0_117 = arith.constant 0 : index
    %c0_118 = arith.constant 0 : index
    %304 = vector.load %arg28[%c0_116, %c0_117, %c0_118] : memref<1x8x32xf32, #tpu.memory_space<vmem>>, vector<1x8x32xf32>
    %305 = vector.shape_cast %304 : vector<1x8x32xf32> to vector<8x32xf32>
    %306 = vector.shape_cast %303 : vector<8x32xf32> to vector<1x8x32xf32>
    tpu.vector_store %arg28[%c0_116, %c0_117, %c0_118], %306 {strides = array<i32>} : memref<1x8x32xf32, #tpu.memory_space<vmem>>, vector<1x8x32xf32>,
    return
  }
  func.func @transform_0(%arg0: i32) -> (i32, i32, i32) {
    %c0_i32 = arith.constant 0 : i32
    %c0_i32_0 = arith.constant 0 : i32
    %c0_i32_1 = arith.constant 0 : i32
    return %arg0, %c0_i32, %c0_i32_0 : i32, i32, i32
  }
  func.func @transform_1(%arg0: i32) -> (i32, i32, i32) {
    %c0_i32 = arith.constant 0 : i32
    %c0_i32_0 = arith.constant 0 : i32
    %c0_i32_1 = arith.constant 0 : i32
    return %arg0, %c0_i32, %c0_i32_0 : i32, i32, i32
  }
  func.func @transform_2(%arg0: i32) -> (i32, i32, i32) {
    %c0_i32 = arith.constant 0 : i32
    %c0_i32_0 = arith.constant 0 : i32
    %c0_i32_1 = arith.constant 0 : i32
    return %arg0, %c0_i32, %c0_i32_0 : i32, i32, i32
  }
  func.func @transform_3(%arg0: i32) -> (i32, i32) {
    %c0_i32 = arith.constant 0 : i32
    %c0_i32_0 = arith.constant 0 : i32
    %c0_i32_1 = arith.constant 0 : i32
    return %c0_i32, %c0_i32_0 : i32, i32
  }
  func.func @transform_4(%arg0: i32) -> (i32, i32) {
    %c0_i32 = arith.constant 0 : i32
    %c0_i32_0 = arith.constant 0 : i32
    %c0_i32_1 = arith.constant 0 : i32
    return %c0_i32, %c0_i32_0 : i32, i32
  }
  func.func @transform_5(%arg0: i32) -> (i32, i32) {
    %c0_i32 = arith.constant 0 : i32
    %c0_i32_0 = arith.constant 0 : i32
    %c0_i32_1 = arith.constant 0 : i32
    return %c0_i32, %c0_i32_0 : i32, i32
  }
  func.func @transform_6(%arg0: i32) -> (i32, i32) {
    %c0_i32 = arith.constant 0 : i32
    %c0_i32_0 = arith.constant 0 : i32
    %c0_i32_1 = arith.constant 0 : i32
    return %c0_i32, %c0_i32_0 : i32, i32
  }
  func.func @transform_7(%arg0: i32) -> (i32, i32) {
    %c0_i32 = arith.constant 0 : i32
    %c0_i32_0 = arith.constant 0 : i32
    %c0_i32_1 = arith.constant 0 : i32
    return %c0_i32, %c0_i32_0 : i32, i32
  }
  func.func @transform_8(%arg0: i32) -> (i32, i32) {
    %c0_i32 = arith.constant 0 : i32
    %c0_i32_0 = arith.constant 0 : i32
    %c0_i32_1 = arith.constant 0 : i32
    return %c0_i32, %c0_i32_0 : i32, i32
  }
  func.func @transform_9(%arg0: i32) -> (i32, i32) {
    %c0_i32 = arith.constant 0 : i32
    %c0_i32_0 = arith.constant 0 : i32
    %c0_i32_1 = arith.constant 0 : i32
    return %c0_i32, %c0_i32_0 : i32, i32
  }
  func.func @transform_10(%arg0: i32) -> (i32, i32) {
    %c0_i32 = arith.constant 0 : i32
    %c0_i32_0 = arith.constant 0 : i32
    %c0_i32_1 = arith.constant 0 : i32
    return %c0_i32, %c0_i32_0 : i32, i32
  }
  func.func @transform_11(%arg0: i32) -> (i32, i32) {
    %c0_i32 = arith.constant 0 : i32
    %c0_i32_0 = arith.constant 0 : i32
    %c0_i32_1 = arith.constant 0 : i32
    return %c0_i32, %c0_i32_0 : i32, i32
  }
  func.func @transform_12(%arg0: i32) -> (i32, i32) {
    %c0_i32 = arith.constant 0 : i32
    %c0_i32_0 = arith.constant 0 : i32
    %c0_i32_1 = arith.constant 0 : i32
    return %c0_i32, %c0_i32_0 : i32, i32
  }
  func.func @transform_13(%arg0: i32) -> (i32, i32) {
    %c0_i32 = arith.constant 0 : i32
    %c0_i32_0 = arith.constant 0 : i32
    %c0_i32_1 = arith.constant 0 : i32
    return %c0_i32, %c0_i32_0 : i32, i32
  }
  func.func @transform_14(%arg0: i32) -> (i32, i32) {
    %c0_i32 = arith.constant 0 : i32
    %c0_i32_0 = arith.constant 0 : i32
    %c0_i32_1 = arith.constant 0 : i32
    return %c0_i32, %c0_i32_0 : i32, i32
  }
  func.func @transform_15(%arg0: i32) -> (i32, i32) {
    %c0_i32 = arith.constant 0 : i32
    %c0_i32_0 = arith.constant 0 : i32
    %c0_i32_1 = arith.constant 0 : i32
    return %c0_i32, %c0_i32_0 : i32, i32
  }
  func.func @transform_16(%arg0: i32) -> (i32, i32) {
    %c0_i32 = arith.constant 0 : i32
    %c0_i32_0 = arith.constant 0 : i32
    %c0_i32_1 = arith.constant 0 : i32
    return %c0_i32, %c0_i32_0 : i32, i32
  }
  func.func @transform_17(%arg0: i32) -> (i32, i32) {
    %c0_i32 = arith.constant 0 : i32
    %c0_i32_0 = arith.constant 0 : i32
    %c0_i32_1 = arith.constant 0 : i32
    return %c0_i32, %c0_i32_0 : i32, i32
  }
  func.func @transform_18(%arg0: i32) -> (i32, i32) {
    %c0_i32 = arith.constant 0 : i32
    %c0_i32_0 = arith.constant 0 : i32
    %c0_i32_1 = arith.constant 0 : i32
    return %c0_i32, %c0_i32_0 : i32, i32
  }
  func.func @transform_19(%arg0: i32) -> (i32, i32) {
    %c0_i32 = arith.constant 0 : i32
    %c0_i32_0 = arith.constant 0 : i32
    %c0_i32_1 = arith.constant 0 : i32
    return %c0_i32, %c0_i32_0 : i32, i32
  }
  func.func @transform_20(%arg0: i32) -> (i32, i32) {
    %c0_i32 = arith.constant 0 : i32
    %c0_i32_0 = arith.constant 0 : i32
    %c0_i32_1 = arith.constant 0 : i32
    return %c0_i32, %c0_i32_0 : i32, i32
  }
  func.func @transform_21(%arg0: i32) -> (i32, i32) {
    %c0_i32 = arith.constant 0 : i32
    %c0_i32_0 = arith.constant 0 : i32
    %c0_i32_1 = arith.constant 0 : i32
    return %c0_i32, %c0_i32_0 : i32, i32
  }
  func.func @transform_22(%arg0: i32) -> (i32, i32) {
    %c0_i32 = arith.constant 0 : i32
    %c0_i32_0 = arith.constant 0 : i32
    %c0_i32_1 = arith.constant 0 : i32
    return %c0_i32, %c0_i32_0 : i32, i32
  }
  func.func @transform_23(%arg0: i32) -> (i32, i32) {
    %c0_i32 = arith.constant 0 : i32
    %c0_i32_0 = arith.constant 0 : i32
    %c0_i32_1 = arith.constant 0 : i32
    return %c0_i32, %c0_i32_0 : i32, i32
  }
  func.func @transform_24(%arg0: i32) -> (i32, i32) {
    %c0_i32 = arith.constant 0 : i32
    %c0_i32_0 = arith.constant 0 : i32
    %c0_i32_1 = arith.constant 0 : i32
    return %c0_i32, %c0_i32_0 : i32, i32
  }
  func.func @transform_25(%arg0: i32) -> (i32, i32) {
    %c0_i32 = arith.constant 0 : i32
    %c0_i32_0 = arith.constant 0 : i32
    %c0_i32_1 = arith.constant 0 : i32
    return %c0_i32, %c0_i32_0 : i32, i32
  }
  func.func @transform_26(%arg0: i32) -> (i32, i32) {
    %c0_i32 = arith.constant 0 : i32
    %c0_i32_0 = arith.constant 0 : i32
    %c0_i32_1 = arith.constant 0 : i32
    return %c0_i32, %c0_i32_0 : i32, i32
  }
  func.func @transform_27(%arg0: i32) -> (i32, i32, i32) {
    %c0_i32 = arith.constant 0 : i32
    %c0_i32_0 = arith.constant 0 : i32
    %c0_i32_1 = arith.constant 0 : i32
    return %arg0, %c0_i32, %c0_i32_0 : i32, i32, i32
  }
}

</mosaic_0001>

<bundles_post_ra>
// kernel: transformer_forward.7
= control target key start
LH: loop header
LB: loop body
LE: loop exit
PB: predicated region body
PF: predicated region fallthrough
CT: control target
= control target key end

     0   :  { %vm68_vm0 = vcmask 261120   ;;  %vm169_vm1 = vcmask 523264   ;;  %vm320_vm2 = vcmask 257024   ;;  %s503_s1 = inlined_call_operand.vmem [shape: bf16[32,64], index: 1, kind: input, shape index: {}]   ;;  %s504_s0 = inlined_call_operand.vmem [shape: bf16[32,32], index: 0, kind: input, shape index: {}]   ;;  %s505_s3 = inlined_call_operand.vmem [shape: bf16[64,32], index: 3, kind: input, shape index: {}]   ;;  %s506_s2 = inlined_call_operand.vmem [shape: f32[1,64], index: 2, kind: input, shape index: {}]   ;;  %s507_s4 = inlined_call_operand.vmem [shape: f32[1,32], index: 4, kind: input, shape index: {}]   ;;  %s508_s5 = inlined_call_operand.vmem [shape: f32[1,32], index: 5, kind: input, shape index: {}]   ;;  %s509_s6 = inlined_call_operand.vmem [shape: f32[1,32], index: 6, kind: input, shape index: {}]   ;;  %s510_s7 = inlined_call_operand.vmem [shape: bf16[32,32], index: 7, kind: output, shape index: {}]  }
   0x1   :  { %v383_v0 = vld [vmem:[%s503_s1] sm:$0xff]   ;;  %v384_v1 = vld [vmem:[%s503_s1 + $0x8] sm:$0xff]   ;;  %v389_v6 = vld [vmem:[%s505_s3 + $0x10] sm:$0xff]  }
   0x2   :  { %363 = vmatprep.subr.bf16.mxu0 %v383_v0  ;;  %v27_v2 = vld [vmem:[%s504_s0] sm:$0xff]   ;;  %v29_v3 = vld [vmem:[%s504_s0 + $0x8] sm:$0xff]   ;;  %v390_v7 = vld [vmem:[%s505_s3 + $0x18] sm:$0xff]  }
   0x3   :  { %364 = vmatpush3.bf16.msra.mxu0 %v383_v0  ;;  %v387_v4 = vld [vmem:[%s505_s3] sm:$0xff]   ;;  %v388_v5 = vld [vmem:[%s505_s3 + $0x8] sm:$0xff]   ;;  %367 = vmatprep.mubr.msk.bf16.mxu0 %vm68_vm0, %v27_v2  ;;  %v33_v24 = vunpack.c.l.bf16 %v29_v3  ;;  %v31_v25 = vunpack.c.l.bf16 %v27_v2  ;;  %v34_v29 = vunpack.c.h.bf16 %v29_v3  ;;  %v32_v30 = vunpack.c.h.bf16 %v27_v2 }
   0x4   :  { %365 = vmatprep.subr.bf16.mxu0 %v384_v1  ;;  %371 = vmatprep.subr.bf16.mxu1 %v387_v4  ;;  %v329_v8 = vld [vmem:[%s506_s2] ss:$0 sm:$0xff] }
   0x5   :  { %372 = vmatpush3.bf16.msra.mxu1 %v387_v4  ;;  %v336_v23 = vld [vmem:[%s507_s4] ss:$0 sm:$0xff] }
   0x6   :  { %373 = vmatprep.subr.bf16.mxu1 %v388_v5 }
   0x7   :  { %366 = vmatpush3.bf16.msra.mxu0 %v384_v1 }
   0x9   :  { %374 = vmatpush3.bf16.msra.mxu1 %v388_v5 }
   0xa   :  { %368 = vmatmul.mubr.msk.bf16.vlgmr.msra.gmra.mrb[0].mxu0 %vm68_vm0, %v29_v3  ;;  %375 = vmatprep.subr.bf16.mxu1 %v389_v6 }
   0xd   :  { %376 = vmatpush3.bf16.msra.mxu1 %v389_v6 }
   0xe   :  { %377 = vmatprep.subr.bf16.mxu1 %v390_v7 }
  0x11   :  { %378 = vmatpush3.bf16.msra.mxu1 %v390_v7 }
  0xdd   :  { %v369_v9 = vpop.f32.mrb[0].mxu0 }
  0xde   :  { %v118_v10 = vadd.f32 %v369_v9, %v329_v8  ;;  %v109_v11 = vpop.f32.mrb[1].mxu0 }
  0xdf   :  { %v110_v12 = vadd.f32 %v329_v8, %v109_v11  ;;  %v370_v13 = vpop.f32.mrb[2].mxu0 }
  0xe0   :  { %v121_v14 = vadd.f32 %v370_v13, %v329_v8  ;;  %v112_v15 = vpop.f32.mrb[3].mxu0  ;;  %v126_v17 = vmax.f32 %v118_v10, 0.0  ;;  %v343_v13 = vld [vmem:[%s508_s5] ss:$0 sm:$0xff] }
  0xe1   :  { %v113_v16 = vadd.f32 %v329_v8, %v112_v15  ;;  %v124_v19 = vmax.f32 %v110_v12, 0.0  ;;  %v344_v15 = vld [vmem:[%s509_s6] ss:$0 sm:$0xff] }
  0xe2   :  { %v127_v18 = vmax.f32 %v121_v14, 0.0 }
  0xe3   :  { %v125_v20 = vmax.f32 %v113_v16, 0.0 }
  0xe4   :  { %v129_v21 = vpack.c.bf16 %v127_v18, %v126_v17 }
  0xe5   :  { %v128_v22 = vpack.c.bf16 %v125_v20, %v124_v19 }
  0xe7   :  { %379 = vmatprep.mubr.msk.bf16.mxu1 %vm169_vm1, %v128_v22 }
  0xe8   :  { %380 = vmatmul.mubr.msk.bf16.vlgmr.msra.gmra.mrb[0].mxu1 %vm169_vm1, %v129_v21 }
 0x1bb   :  { %v381_v26 = vpop.f32.mrb[0].mxu1 }
 0x1bc   :  { %v219_v27 = vadd.f32 %v381_v26, %v336_v23  ;;  %v210_v28 = vpop.f32.mrb[1].mxu1 }
 0x1bd   :  { %v211_v31 = vadd.f32 %v336_v23, %v210_v28  ;;  %v382_v32 = vpop.f32.mrb[2].mxu1 }
 0x1be   :  { %v222_v33 = vadd.f32 %v382_v32, %v336_v23  ;;  %v213_v34 = vpop.f32.mrb[3].mxu1  ;;  %v227_v35 = vadd.f32 %v219_v27, %v33_v24 }
 0x1bf   :  { %v214_v36 = vadd.f32 %v336_v23, %v213_v34  ;;  %v225_v37 = vadd.f32 %v211_v31, %v31_v25 }
 0x1c0   :  { %v237_v38 = vsel %vm68_vm0, %v227_v35, 0.0  ;;  %v228_v39 = vadd.f32 %v222_v33, %v34_v29 }
 0x1c1   :  { %238 = vadd.xlane.f32.xlu1 %v237_v38  ;;  %v231_v40 = vsel %vm68_vm0, %v225_v37, 0.0  ;;  %v226_v41 = vadd.f32 %v214_v36, %v32_v30 }
 0x1c2   :  { %232 = vadd.xlane.f32.xlu0 %v231_v40  ;;  %v240_v42 = vsel %vm68_vm0, %v228_v39, 0.0 }
 0x1c3   :  { %v234_v43 = vsel %vm68_vm0, %v226_v41, 0.0 }
 0x1c5   :  { %241 = vadd.xlane.f32.xlu1 %v240_v42 }
 0x1c6   :  { %235 = vadd.xlane.f32.xlu0 %v234_v43 }
 0x24e   :  { %v239_v44 = vpop.xlane.xlu1 %238 }
 0x24f   :  { %v246_v45 = vmul.f32 0.03125, %v239_v44  ;;  %v233_v46 = vpop.xlane.xlu0 %232 }
 0x250   :  { %v244_v47 = vmul.f32 0.03125, %v233_v46 }
 0x251   :  { %v250_v48 = vsub.f32 %v227_v35, %v246_v45 }
 0x252   :  { %v248_v49 = vsub.f32 %v225_v37, %v244_v47  ;;  %v242_v50 = vpop.xlane.xlu1 %241 }
 0x253   :  { %v247_v51 = vmul.f32 0.03125, %v242_v50  ;;  %v236_v52 = vpop.xlane.xlu0 %235  ;;  %v254_v58 = vmul.f32 %v250_v48, %v250_v48 }
 0x254   :  { %v245_v53 = vmul.f32 0.03125, %v236_v52  ;;  %v252_v54 = vmul.f32 %v248_v49, %v248_v49 }
 0x255   :  { %v251_v55 = vsub.f32 %v228_v39, %v247_v51  ;;  %v262_v60 = vsel %vm68_vm0, %v254_v58, 0.0 }
 0x256   :  { %v249_v56 = vsub.f32 %v226_v41, %v245_v53  ;;  %v256_v57 = vsel %vm68_vm0, %v252_v54, 0.0 }
 0x257   :  { %257 = vadd.xlane.f32.xlu0 %v256_v57  ;;  %v255_v62 = vmul.f32 %v251_v55, %v251_v55 }
 0x258   :  { %v253_v59 = vmul.f32 %v249_v56, %v249_v56 }
 0x259   :  { %v265_v63 = vsel %vm68_vm0, %v255_v62, 0.0 }
 0x25a   :  { %v259_v61 = vsel %vm68_vm0, %v253_v59, 0.0 }
 0x25b   :  { %263 = vadd.xlane.f32.xlu0 %v262_v60  ;;  %260 = vadd.xlane.f32.xlu1 %v259_v61 }
 0x25f   :  { %266 = vadd.xlane.f32.xlu1 %v265_v63 }
 0x2e4   :  { %v258_v0 = vpop.xlane.xlu0 %257 }
 0x2e5   :  { %v268_v1 = vmul.f32 0.03125, %v258_v0 }
 0x2e7   :  { %v272_v2 = vadd.f32 1e-05, %v268_v1 }
 0x2e8   :  { %v261_v3 = vpop.xlane.xlu1 %260  ;;  %v264_v4 = vpop.xlane.xlu0 %263 }
 0x2e9   :  { %393 = vrsqrt.f32 %v272_v2  ;;  %v269_v5 = vmul.f32 0.03125, %v261_v3  ;;  %v270_v6 = vmul.f32 0.03125, %v264_v4 }
 0x2eb   :  { %v273_v7 = vadd.f32 1e-05, %v269_v5  ;;  %v274_v8 = vadd.f32 1e-05, %v270_v6 }
 0x2ec   :  { %v267_v9 = vpop.xlane.xlu1 %266 }
 0x2ed   :  { %395 = vrsqrt.f32 %v273_v7  ;;  %v271_v10 = vmul.f32 0.03125, %v267_v9 }
 0x2ee   :  { %397 = vrsqrt.f32 %v274_v8 }
 0x2ef   :  { %v275_v11 = vadd.f32 1e-05, %v271_v10 }
 0x2f1   :  { %399 = vrsqrt.f32 %v275_v11 }
 0x2f3   :  { %v394_v12 = vpop.eup %393 }
 0x2f4   :  { %v280_v14 = vmul.f32 %v394_v12, %v248_v49 }
 0x2f6   :  { %v290_v16 = vmul.f32 %v343_v13, %v280_v14 }
 0x2f7   :  { %v396_v17 = vpop.eup %395 }
 0x2f8   :  { %v398_v18 = vpop.eup %397  ;;  %v300_v19 = vadd.f32 %v344_v15, %v290_v16  ;;  %v281_v20 = vmul.f32 %v396_v17, %v249_v56 }
 0x2f9   :  { %v282_v21 = vmul.f32 %v398_v18, %v250_v48 }
 0x2fa   :  { %v349_v22 = vpack.c.bf16 %v300_v19, %v300_v19  ;;  %v291_v23 = vmul.f32 %v343_v13, %v281_v20 }
 0x2fb   :  { %v400_v24 = vpop.eup %399  ;;  %v292_v25 = vmul.f32 %v343_v13, %v282_v21 }
 0x2fc   :  { %321 = vst.msk [vmem:[%s510_s7] sm:$0xf] %vm320_vm2, %v349_v22  ;;  %v301_v26 = vadd.f32 %v344_v15, %v291_v23  ;;  %v283_v27 = vmul.f32 %v400_v24, %v251_v55 }
 0x2fd   :  { %v302_v28 = vadd.f32 %v344_v15, %v292_v25 }
 0x2fe   :  { %v350_v29 = vpack.c.bf16 %v301_v26, %v301_v26  ;;  %v293_v30 = vmul.f32 %v343_v13, %v283_v27 }
 0x2ff   :  { %v351_v31 = vpack.c.bf16 %v302_v28, %v302_v28 }
 0x300   :  { %322 = vst.msk [vmem:[%s510_s7 + $0x4] sm:$0xf] %vm320_vm2, %v350_v29  ;;  %v303_v32 = vadd.f32 %v344_v15, %v293_v30 }
 0x301   :  { %323 = vst.msk [vmem:[%s510_s7 + $0x8] sm:$0xf] %vm320_vm2, %v351_v31 }
 0x302   :  { %v352_v33 = vpack.c.bf16 %v303_v32, %v303_v32 }
 0x304   :  { %324 = vst.msk [vmem:[%s510_s7 + $0xc] sm:$0xf] %vm320_vm2, %v352_v33 }

// kernel: transformer_forward.6
= control target key start
LH: loop header
LB: loop body
LE: loop exit
PB: predicated region body
PF: predicated region fallthrough
CT: control target
= control target key end

     0   :  { %s1649_s13 = smov 0   ;;  %s1651_s14 = smov 0   ;;  %s1817_s0 = inlined_call_operand.vmem [shape: bf16[2,16,32], index: 0, kind: input, shape index: {}, may-alias: {0,1}]   ;;  %s1818_s1 = inlined_call_operand.vmem [shape: bf16[2,16,32], index: 1, kind: input, shape index: {}, may-alias: {0,1}]   ;;  %s1819_s2 = inlined_call_operand.vmem [shape: bf16[32,32], index: 2, kind: input, shape index: {}]   ;;  %s1820_s3 = inlined_call_operand.vmem [shape: f32[1,32], index: 3, kind: input, shape index: {}]   ;;  %s1821_s4 = inlined_call_operand.vmem [shape: bf16[32,64], index: 4, kind: input, shape index: {}]   ;;  %s1822_s5 = inlined_call_operand.vmem [shape: f32[1,64], index: 5, kind: input, shape index: {}]   ;;  %s1823_s6 = inlined_call_operand.vmem [shape: bf16[32,32], index: 6, kind: input, shape index: {}]   ;;  %s1824_s7 = inlined_call_operand.vmem [shape: f32[1,32], index: 7, kind: input, shape index: {}]   ;;  %s1825_s8 = inlined_call_operand.vmem [shape: f32[1,32], index: 8, kind: input, shape index: {}]   ;;  %s1826_s9 = inlined_call_operand.vmem [shape: f32[1,32], index: 9, kind: input, shape index: {}]   ;;  %s1827_s10 = inlined_call_operand.vmem [shape: bf16[2,16,32], index: 10, kind: output, shape index: {}]  }
   0x1   :  { %s1653_s15 = smov 0  }
   0x2 LB: > { %s32_s16 = sadd.s32 1, %s1576_s14  ;;  %p1325_p0 = scmp.ge.s32.totalorder %s1580_s15, 1  ;;  %s1580_s15 = sphi %s1653_s15, %s20_s15   ;;  %s1576_s14 = sphi %s1651_s14, %s1829_s14   ;;  %s1572_s13 = sphi %s1649_s13, %s1828_s13  }
   0x3   : > { %p34_p1 = scmp.ge.s32.totalorder %s32_s16, 2  ;;  %p343_p2 = scmp.lt.s32.totalorder %s1580_s15, 3 }
   0x5   : > { %s1831_s16 = smov (%p34_p1, %s32_s16), 0  ;;  %p344_p3 = pnand %p1325_p0, %p343_p2 }
   0x6   : > { %v1513_v0 = vld [vmem:[%s1821_s4] sm:$0xff] (!%p344_p3)   ;;  %v1582_v1 = vmov (!%p344_p3), 0.0   ;;  %v1514_v2 = vld [vmem:[%s1821_s4 + $0x8] sm:$0xff] (!%p344_p3)   ;;  %vm1583_vm0 = vmmov (!%p344_p3), 0   ;;  %p395_p4 = scmp.lt.s32.totalorder (!%p344_p3), %s1572_s13, 1  ;;  %vm454_vm1 = vcmask (!%p344_p3), 261120  }
   0x7   : > { %347 = sbr.rel (%p344_p3) target bundleno = 1791 (0x6ff), region = 60  ;;  %1390 = vmatprep.subr.bf16.mxu0 (!%p344_p3), %v1582_v1  ;;  %1398 = vmatprep.subr.bf16.mxu1 (!%p344_p3), %v1582_v1  ;;  %v1516_v3 = vld [vmem:[%s1819_s2] sm:$0xff] (!%p344_p3)   ;;  %v1517_v4 = vld [vmem:[%s1819_s2 + $0x8] sm:$0xff] (!%p344_p3)   ;;  %vm500_vm2 = vcmask (!%p344_p3), 523264   ;;  %vm579_vm3 = vcmask (!%p344_p3), 64512   ;;  %s1584_s19 = smov (!%p344_p3), 112  }
   0x8   : > { %1391 = vmatpush3.bf16.msra.mxu0 (!%p344_p3), %v1513_v0  ;;  %1394 = vmatprep.mubr.msk.bf16.mxu0 (!%p344_p3), %vm1583_vm0, %v1582_v1  ;;  %v1332_v7 = vld [vmem:[%s1822_s5] ss:$0 sm:$0xff] (!%p344_p3)  ;;  %s1585_s20 = smov (!%p344_p3), 120   ;;  %s1586_s21 = smov (!%p344_p3), 104   ;;  %vm627_vm4 = vcmask (!%p344_p3), 130048   ;;  %vm1091_vm5 = vcmask (!%p344_p3), 195584  }
   0x9   : > { %1392 = vmatprep.subr.bf16.mxu0 (!%p344_p3), %v1582_v1  ;;  %1402 = vmatprep.mubr.msk.bf16.mxu1 (!%p344_p3), %vm1583_vm0, %v1582_v1  ;;  %v1337_v9 = vld [vmem:[%s1820_s3] ss:$0 sm:$0xff] (!%p344_p3)  ;;  %s1587_s22 = smov (!%p344_p3), 96   ;;  %s1588_s23 = smov (!%p344_p3), 80   ;;  %vm1219_vm6 = vcmask (!%p344_p3), 257024  }
   0xa   : > { %1399 = vmatpush3.bf16.msra.mxu1 (!%p344_p3), %v1516_v3  ;;  %s1589_s24 = smov (!%p344_p3), 72   ;;  %s1590_s26 = smov (!%p344_p3), 88  }
   0xb   : > { %1400 = vmatprep.subr.bf16.mxu1 (!%p344_p3), %v1582_v1  ;;  %s1591_s29 = smov (!%p344_p3), 8   ;;  %s1592_s12 = smov (!%p344_p3), 16  }
   0xc   : > { %1393 = vmatpush3.bf16.msra.mxu0 (!%p344_p3), %v1514_v2 }
   0xd   : > { %1406 = vmatprep.subr.bf16.mxu0 (!%p344_p3), %v1582_v1 }
   0xe   : > { %s1833_s13 = smov (!%p395_p4, %s1572_s13), 1  ;;  %1401 = vmatpush3.bf16.msra.mxu1 %v1517_v4 }
   0xf   : > { %s1686_s25 = sshll.u32 %s1833_s13, 3  ;;  %1412 = vmatprep.subr.bf16.mxu1 %v1582_v1  ;;  %s1593_s13 = smov 24  }
  0x10   : > { %s408_s28 = scalar_lea.vmem %s1818_s1, %s1686_s25  ;;  %s402_s11 = scalar_lea.vmem %s1817_s0, %s1686_s25 }
  0x11   : > { %v1515_v5 = vld [vmem:[%s408_s28] sm:$0xff]  }
  0x12   : > { %v1698_v6 = vld [vmem:[%s402_s11] sm:$0xff]   ;;  %1395 = vmatmul.mubr.msk.bf16.vlgmr.msra.gmra.mrb[0].mxu0 %vm454_vm1, %v1515_v5 }
  0x13   : > { %1408 = vmatprep.mubr.msk.bf16.mxu0 %vm1583_vm0, %v1582_v1  ;;  %1403 = vmatmul.mubr.msk.bf16.vlgmr.msra.gmra.mrb[0].mxu1 %vm454_vm1, %v1698_v6 }
  0x14   : > { %1414 = vmatprep.mubr.msk.bf16.mxu1 %vm1583_vm0, %v1582_v1 }
  0xe5   : > { %v492_v8 = vpop.f32.mrb[0].mxu0 }
  0xe6   : > { %v1396_v10 = vpop.f32.mrb[1].mxu0  ;;  %v570_v12 = vpop.f32.mrb[0].mxu1  ;;  %v493_v13 = vadd.f32 %v1332_v7, %v492_v8 }
  0xe7   : > { %v495_v11 = vpop.f32.mrb[2].mxu0  ;;  %v571_v16 = vadd.f32 %v1337_v9, %v570_v12  ;;  %v1404_v17 = vpop.f32.mrb[1].mxu1 }
  0xe8   : > { %v496_v14 = vadd.f32 %v1332_v7, %v495_v11  ;;  %v1397_v15 = vpop.f32.mrb[3].mxu0  ;;  %v573_v18 = vpop.f32.mrb[2].mxu1 }
  0xe9   : > { %v574_v20 = vadd.f32 %v1337_v9, %v573_v18  ;;  %v1405_v21 = vpop.f32.mrb[3].mxu1 }
  0xea   : > { %v499_v19 = vpack.c.bf16 %v496_v14, %v493_v13 }
  0xeb   : > { %v578_v22 = vpack.c.bf16 %v574_v20, %v571_v16 }
  0xec   : > { %501 = vst.msk [vmem:[#allocation2] sm:$0xff] %vm500_vm2, %v499_v19 }
  0xf3   : > { %v1714_v23 = vld [vmem:[#allocation2] sm:$0xff] }
  0xf4   : > { %823 = vrot.lane.b32.xlu1 %v1714_v23, %s1584_s19  ;;  %702 = vrot.lane.b32.xlu0 %v1714_v23, %s1585_s20  ;;  %v584_v24 = vsel %vm579_vm3, %v1714_v23, 0 }
  0xf5   : > { %1407 = vmatpush3.bf16.xpose.msra.mxu0 %v584_v24 }
  0xf6   : > { %1418 = vmatprep.subr.bf16.mxu0 %v1582_v1 }
  0xf8   : > { %821 = vrot.lane.b32.xlu1 %v578_v22, %s1584_s19  ;;  %700 = vrot.lane.b32.xlu0 %v578_v22, %s1585_s20 }
  0xfc   : > { %942 = vrot.lane.b32.xlu1 %v578_v22, %s1586_s21  ;;  %944 = vrot.lane.b32.xlu0 %v1714_v23, %s1586_s21 }
  0xfd   : > { %1409 = vmatmul.mubr.msk.bf16.vlgmr.msra.gmra.mrb[4].mxu0 %vm579_vm3, %v578_v22 }
  0xfe   : > { %1420 = vmatprep.mubr.msk.bf16.mxu0 %vm1583_vm0, %v1582_v1 }
 0x166   : > { %v703_v25 = vpop.permute.xlu0 %702  ;;  %v824_v27 = vpop.permute.xlu1 %823 }
 0x167   : > { %v708_v26 = vsel %vm579_vm3, %v703_v25, 0  ;;  %v829_v29 = vsel %vm579_vm3, %v824_v27, 0 }
 0x168   : > { %1419 = vmatpush3.bf16.xpose.msra.mxu0 %v708_v26 }
 0x169   : > { %1430 = vmatprep.subr.bf16.mxu0 %v1582_v1 }
 0x16a   : > { %v701_v28 = vpop.permute.xlu0 %700  ;;  %v822_v31 = vpop.permute.xlu1 %821 }
 0x16e   : > { %v945_v30 = vpop.permute.xlu0 %944  ;;  %v943_v33 = vpop.permute.xlu1 %942 }
 0x16f   : > { %1421 = vmatmul.mubr.msk.bf16.vlgmr.msra.gmra.mrb[8].mxu0 %vm579_vm3, %v701_v28  ;;  %v950_v32 = vsel %vm579_vm3, %v945_v30, 0 }
 0x170   : > { %1431 = vmatpush3.bf16.xpose.msra.mxu0 %v829_v29  ;;  %1432 = vmatprep.mubr.msk.bf16.mxu0 %vm1583_vm0, %v1582_v1 }
 0x171   : > { %1442 = vmatprep.subr.bf16.mxu0 %v1582_v1 }
 0x177   : > { %1433 = vmatmul.mubr.msk.bf16.vlgmr.msra.gmra.mrb[12].mxu0 %vm579_vm3, %v822_v31 }
 0x178   : > { %1443 = vmatpush3.bf16.xpose.msra.mxu0 %v950_v32  ;;  %1444 = vmatprep.mubr.msk.bf16.mxu0 %vm1583_vm0, %v1582_v1 }
 0x179   : > { %1454 = vmatprep.subr.bf16.mxu0 %v1582_v1 }
 0x17f   : > { %1445 = vmatmul.mubr.msk.bf16.vlgmr.msra.gmra.mrb[16].mxu0 %vm579_vm3, %v943_v33 }
 0x180   : > { %1458 = vmatprep.mubr.msk.bf16.mxu0 %vm1583_vm0, %v1582_v1 }
 0x1d0   : > { %v620_v34 = vpop.f32.mrb[4].mxu0 }
 0x1d1   : > { %v1410_v35 = vpop.f32.mrb[5].mxu0  ;;  %v628_v36 = vsel %vm627_vm4, %v620_v34, -inf }
 0x1d2   : > { %629 = vmax.xlane.f32.xlu0 %v628_v36  ;;  %v623_v37 = vpop.f32.mrb[6].mxu0 }
 0x1d3   : > { %v1411_v38 = vpop.f32.mrb[7].mxu0  ;;  %v631_v39 = vsel %vm627_vm4, %v623_v37, -inf }
 0x1d4   : > { %632 = vmax.xlane.f32.xlu1 %v631_v39 }
 0x242   : > { %v744_v40 = vpop.f32.mrb[8].mxu0 }
 0x243   : > { %v1422_v41 = vpop.f32.mrb[9].mxu0  ;;  %v751_v42 = vsel %vm627_vm4, %v744_v40, -inf }
 0x244   : > { %752 = vmax.xlane.f32.xlu0 %v751_v42  ;;  %v747_v43 = vpop.f32.mrb[10].mxu0 }
 0x245   : > { %v1423_v44 = vpop.f32.mrb[11].mxu0  ;;  %v754_v45 = vsel %vm627_vm4, %v747_v43, -inf }
 0x248   : > { %755 = vmax.xlane.f32.xlu0 %v754_v45 }
 0x24a   : > { %v865_v46 = vpop.f32.mrb[12].mxu0 }
 0x24b   : > { %v1434_v47 = vpop.f32.mrb[13].mxu0  ;;  %v872_v48 = vsel %vm627_vm4, %v865_v46, -inf }
 0x24c   : > { %873 = vmax.xlane.f32.xlu1 %v872_v48  ;;  %v868_v49 = vpop.f32.mrb[14].mxu0 }
 0x24d   : > { %v1435_v50 = vpop.f32.mrb[15].mxu0  ;;  %v875_v51 = vsel %vm627_vm4, %v868_v49, -inf }
 0x24e   : > { %876 = vmax.xlane.f32.xlu0 %v875_v51 }
 0x252   : > { %v986_v52 = vpop.f32.mrb[16].mxu0 }
 0x253   : > { %v1446_v53 = vpop.f32.mrb[17].mxu0  ;;  %v993_v54 = vsel %vm627_vm4, %v986_v52, -inf }
 0x254   : > { %994 = vmax.xlane.f32.xlu1 %v993_v54  ;;  %v989_v55 = vpop.f32.mrb[18].mxu0 }
 0x255   : > { %v1447_v56 = vpop.f32.mrb[19].mxu0  ;;  %v996_v57 = vsel %vm627_vm4, %v989_v55, -inf }
 0x256   : > { %997 = vmax.xlane.f32.xlu0 %v996_v57 }
 0x25f   : > { %v630_v62 = vpop.xlane.xlu0 %629 }
 0x260   : > { %v634_v0 = vsub.f32 %v620_v34, %v630_v62 }
 0x261   : > { %v633_v58 = vpop.xlane.xlu1 %632 }
 0x262   : > { %v635_v59 = vsub.f32 %v623_v37, %v633_v58  ;;  %v636_v2 = vmul.f32 1.442695, %v634_v0 }
 0x264   : > { %v638_v60 = vmul.f32 1.442695, %v635_v59 }
 0x265   : > { %652 = vrot.lane.b32.xlu1 %v1714_v23, %s1587_s22 }
 0x266   : > { %1522 = vpow2.f32 %v638_v60 }
 0x267   : > { %1524 = vpow2.f32 %v636_v2 }
 0x270   : > { %v1749_v61 = vpop.eup %1522 }
 0x271   : > { %v643_v63 = vsel %vm627_vm4, %v1749_v61, 0.0  ;;  %v1525_v3 = vpop.eup %1524 }
 0x272   : > { %644 = vadd.xlane.f32.xlu0 %v643_v63  ;;  %v640_v4 = vsel %vm627_vm4, %v1525_v3, 0.0 }
 0x289   : > { %641 = vadd.xlane.f32.xlu1 %v640_v4 }
 0x2d1   : > { %v753_v5 = vpop.xlane.xlu0 %752 }
 0x2d2   : > { %v757_v7 = vsub.f32 %v744_v40, %v753_v5 }
 0x2d4   : > { %v759_v8 = vmul.f32 1.442695, %v757_v7 }
 0x2d5   : > { %v756_v9 = vpop.xlane.xlu0 %755 }
 0x2d6   : > { %1526 = vpow2.f32 %v759_v8  ;;  %v758_v10 = vsub.f32 %v747_v43, %v756_v9 }
 0x2d8   : > { %v761_v11 = vmul.f32 1.442695, %v758_v10 }
 0x2d9   : > { %v874_v12 = vpop.xlane.xlu1 %873 }
 0x2da   : > { %1528 = vpow2.f32 %v761_v11  ;;  %v878_v13 = vsub.f32 %v865_v46, %v874_v12 }
 0x2db   : > { %v877_v14 = vpop.xlane.xlu0 %876 }
 0x2dc   : > { %v880_v15 = vmul.f32 1.442695, %v878_v13  ;;  %v879_v16 = vsub.f32 %v868_v49, %v877_v14  ;;  %v1519_v13 = vld [vmem:[%s1823_s6] sm:$0xff]  }
 0x2dd   : > { %1455 = vmatpush3.bf16.msra.mxu0 %v1519_v13 }
 0x2de   : > { %1530 = vpow2.f32 %v880_v15  ;;  %v882_v17 = vmul.f32 1.442695, %v879_v16  ;;  %1456 = vmatprep.subr.bf16.mxu0 %v1582_v1 }
 0x2e0   : > { %v1527_v18 = vpop.eup %1526  ;;  %1532 = vpow2.f32 %v882_v17 }
 0x2e1   : > { %v995_v19 = vpop.xlane.xlu1 %994  ;;  %v763_v20 = vsel %vm627_vm4, %v1527_v18, 0.0 }
 0x2e2   : > { %v999_v21 = vsub.f32 %v986_v52, %v995_v19  ;;  %764 = vadd.xlane.f32.xlu1 %v763_v20 }
 0x2e3   : > { %v998_v22 = vpop.xlane.xlu0 %997 }
 0x2e4   : > { %v1529_v24 = vpop.eup %1528  ;;  %v1001_v25 = vmul.f32 1.442695, %v999_v21  ;;  %v1000_v26 = vsub.f32 %v989_v55, %v998_v22 }
 0x2e5   : > { %v653_v27 = vpop.permute.xlu1 %652  ;;  %v766_v28 = vsel %vm627_vm4, %v1529_v24, 0.0 }
 0x2e6   : > { %1534 = vpow2.f32 %v1001_v25  ;;  %v1003_v29 = vmul.f32 1.442695, %v1000_v26  ;;  %1413 = vmatpush3.bf16.msra.mxu1 %v653_v27  ;;  %767 = vadd.xlane.f32.xlu0 %v766_v28 }
 0x2e7   : > { %1424 = vmatprep.subr.bf16.mxu1 %v1582_v1 }
 0x2e8   : > { %v1531_v30 = vpop.eup %1530  ;;  %1536 = vpow2.f32 %v1003_v29 }
 0x2e9   : > { %v884_v31 = vsel %vm627_vm4, %v1531_v30, 0.0 }
 0x2ea   : > { %v1533_v32 = vpop.eup %1532  ;;  %885 = vadd.xlane.f32.xlu1 %v884_v31 }
 0x2eb   : > { %v887_v33 = vsel %vm627_vm4, %v1533_v32, 0.0 }
 0x2ec   : > { %888 = vadd.xlane.f32.xlu0 %v887_v33 }
 0x2f0   : > { %v1535_v34 = vpop.eup %1534 }
 0x2f1   : > { %v1005_v35 = vsel %vm627_vm4, %v1535_v34, 0.0 }
 0x2f2   : > { %v1537_v36 = vpop.eup %1536  ;;  %1006 = vadd.xlane.f32.xlu1 %v1005_v35 }
 0x2f3   : > { %v1008_v37 = vsel %vm627_vm4, %v1537_v36, 0.0 }
 0x2f4   : > { %1009 = vadd.xlane.f32.xlu0 %v1008_v37 }
 0x2ff   : > { %v645_v38 = vpop.xlane.xlu0 %644 }
 0x300   : > { %1538 = vrcp.f32 %v645_v38 }
 0x303   : > { %895 = vrot.lane.b32.xlu1 %v1714_v23, %s1588_s23 }
 0x307   : > { %1016 = vrot.lane.b32.xlu1 %v1714_v23, %s1589_s24 }
 0x30a   : > { %774 = vrot.lane.b32.xlu0 %v1714_v23, %s1590_s26  ;;  %v1539_v40 = vpop.eup %1538  ;;  %s417_s26 = scalar_lea.vmem %s1827_s10, %s1686_s25 }
 0x30b   : > { %v649_v42 = vmul.f32 %v1539_v40, %v1749_v61 }
 0x316   : > { %v642_v39 = vpop.xlane.xlu1 %641 }
 0x317   : > { %1540 = vrcp.f32 %v642_v39 }
 0x321   : > { %v1541_v41 = vpop.eup %1540 }
 0x322   : > { %v648_v43 = vmul.f32 %v1541_v41, %v1525_v3 }
 0x324   : > { %v650_v44 = vpack.c.bf16 %v649_v42, %v648_v43  ;;  %v1350_v43 = vld [vmem:[%s1824_s7] ss:$0 sm:$0xff] }
 0x326   : > { %1415 = vmatmul.mubr.msk.bf16.vlgmr.msra.gmra.mrb[4].mxu1 %vm627_vm4, %v650_v44  ;;  %v1162_v44 = vunpack.c.l.bf16 %v1698_v6 }
 0x327   : > { %1426 = vmatprep.mubr.msk.bf16.mxu1 %vm1583_vm0, %v1582_v1 }
 0x36f   : > { %v765_v46 = vpop.xlane.xlu1 %764 }
 0x373   : > { %v768_v45 = vpop.xlane.xlu0 %767 }
 0x374   : > { %1542 = vrcp.f32 %v768_v45 }
 0x375   : > { %1544 = vrcp.f32 %v765_v46 }
 0x377   : > { %v886_v47 = vpop.xlane.xlu1 %885 }
 0x379   : > { %v889_v23 = vpop.xlane.xlu0 %888 }
 0x37a   : > { %1546 = vrcp.f32 %v889_v23 }
 0x37b   : > { %1548 = vrcp.f32 %v886_v47  ;;  %v1163_v47 = vunpack.c.h.bf16 %v1698_v6 }
 0x37e   : > { %v1543_v48 = vpop.eup %1542 }
 0x37f   : > { %v1545_v50 = vpop.eup %1544  ;;  %v772_v51 = vmul.f32 %v1543_v48, %v1529_v24  ;;  %v1007_v52 = vpop.xlane.xlu1 %1006 }
 0x380   : > { %v771_v53 = vmul.f32 %v1545_v50, %v1527_v18  ;;  %v1520_v18 = vld [vmem:[%s1823_s6 + $0x8] sm:$0xff]  }
 0x381   : > { %v1010_v49 = vpop.xlane.xlu0 %1009  ;;  %1457 = vmatpush3.bf16.msra.mxu0 %v1520_v18 }
 0x382   : > { %1550 = vrcp.f32 %v1010_v49  ;;  %v773_v55 = vpack.c.bf16 %v772_v51, %v771_v53 }
 0x383   : > { %1552 = vrcp.f32 %v1007_v52  ;;  %v896_v57 = vpop.permute.xlu1 %895 }
 0x384   : > { %v1547_v56 = vpop.eup %1546 }
 0x385   : > { %v775_v54 = vpop.permute.xlu0 %774  ;;  %v1549_v58 = vpop.eup %1548  ;;  %v893_v59 = vmul.f32 %v1547_v56, %v1533_v32 }
 0x386   : > { %1425 = vmatpush3.bf16.msra.mxu1 %v775_v54  ;;  %v892_v60 = vmul.f32 %v1549_v58, %v1531_v30 }
 0x387   : > { %1436 = vmatprep.subr.bf16.mxu1 %v1582_v1  ;;  %v1017_v63 = vpop.permute.xlu1 %1016 }
 0x388   : > { %v894_v61 = vpack.c.bf16 %v893_v59, %v892_v60 }
 0x389   : > { %1427 = vmatmul.mubr.msk.bf16.vlgmr.msra.gmra.mrb[8].mxu1 %vm627_vm4, %v773_v55 }
 0x38a   : > { %1437 = vmatpush3.bf16.msra.mxu1 %v896_v57  ;;  %1438 = vmatprep.mubr.msk.bf16.mxu1 %vm1583_vm0, %v1582_v1 }
 0x38b   : > { %1448 = vmatprep.subr.bf16.mxu1 %v1582_v1 }
 0x38c   : > { %v1551_v62 = vpop.eup %1550 }
 0x38d   : > { %v1553_v0 = vpop.eup %1552  ;;  %v1014_v2 = vmul.f32 %v1551_v62, %v1537_v36 }
 0x38e   : > { %v1013_v3 = vmul.f32 %v1553_v0, %v1535_v34 }
 0x390   : > { %v1015_v4 = vpack.c.bf16 %v1014_v2, %v1013_v3 }
 0x391   : > { %1439 = vmatmul.mubr.msk.bf16.vlgmr.msra.gmra.mrb[12].mxu1 %vm627_vm4, %v894_v61 }
 0x392   : > { %1449 = vmatpush3.bf16.msra.mxu1 %v1017_v63  ;;  %1450 = vmatprep.mubr.msk.bf16.mxu1 %vm1583_vm0, %v1582_v1 }
 0x399   : > { %1451 = vmatmul.mubr.msk.bf16.vlgmr.msra.gmra.mrb[16].mxu1 %vm627_vm4, %v1015_v4 }
 0x3f9   : > { %v692_v5 = vpop.f32.mrb[4].mxu1 }
 0x3fa   : > { %v1416_v7 = vpop.f32.mrb[5].mxu1 }
 0x3fb   : > { %v695_v8 = vpop.f32.mrb[6].mxu1 }
 0x3fc   : > { %v1417_v9 = vpop.f32.mrb[7].mxu1 }
 0x3fd   : > { %v1354_v9 = vld [vmem:[%s1825_s8] ss:$0 sm:$0xff] }
 0x45c   : > { %v814_v10 = vpop.f32.mrb[8].mxu1 }
 0x45d   : > { %v1428_v11 = vpop.f32.mrb[9].mxu1 }
 0x45e   : > { %v817_v12 = vpop.f32.mrb[10].mxu1 }
 0x45f   : > { %v1498_v14 = vpack.i.bf16 %v817_v12, %v814_v10  ;;  %v1429_v15 = vpop.f32.mrb[11].mxu1  ;;  %v1355_v12 = vld [vmem:[%s1826_s9] ss:$0 sm:$0xff] }
 0x461   : > { %1499 = vrot.lane.b32.xlu0 %v1498_v14, %s1591_s29 }
 0x464   : > { %v935_v16 = vpop.f32.mrb[12].mxu1 }
 0x465   : > { %v1440_v17 = vpop.f32.mrb[13].mxu1 }
 0x466   : > { %v938_v19 = vpop.f32.mrb[14].mxu1 }
 0x467   : > { %v1503_v20 = vpack.i.bf16 %v938_v19, %v935_v16  ;;  %v1441_v21 = vpop.f32.mrb[15].mxu1 }
 0x469   : > { %1504 = vrot.lane.b32.xlu1 %v1503_v20, %s1592_s12 }
 0x46c   : > { %v1056_v22 = vpop.f32.mrb[16].mxu1 }
 0x46d   : > { %v1452_v24 = vpop.f32.mrb[17].mxu1 }
 0x46e   : > { %v1059_v25 = vpop.f32.mrb[18].mxu1 }
 0x46f   : > { %v1508_v26 = vpack.i.bf16 %v1059_v25, %v1056_v22  ;;  %v1453_v27 = vpop.f32.mrb[19].mxu1 }
 0x471   : > { %1509 = vrot.lane.b32.xlu0 %v1508_v26, %s1593_s13 }
 0x4d3   : > { %v1500_v1 = vpop.permute.xlu0 %1499 }
 0x4d4   : > { %v1502_v29 = vunpack.i.h.bf16 %v1500_v1  ;;  %v1501_v30 = vunpack.i.l.bf16 %v1500_v1 }
 0x4d6   : > { %v1088_v34 = vsel %vm579_vm3, %v695_v8, %v1502_v29  ;;  %v1087_v35 = vsel %vm579_vm3, %v692_v5, %v1501_v30 }
 0x4db   : > { %v1505_v28 = vpop.permute.xlu1 %1504 }
 0x4dc   : > { %v1507_v31 = vunpack.i.h.bf16 %v1505_v28  ;;  %v1506_v32 = vunpack.i.l.bf16 %v1505_v28 }
 0x4de   : > { %v1090_v38 = vsel %vm627_vm4, %v1088_v34, %v1507_v31  ;;  %v1089_v39 = vsel %vm627_vm4, %v1087_v35, %v1506_v32 }
 0x4e3   : > { %v1510_v33 = vpop.permute.xlu0 %1509 }
 0x4e4   : > { %v1512_v36 = vunpack.i.h.bf16 %v1510_v33  ;;  %v1511_v37 = vunpack.i.l.bf16 %v1510_v33 }
 0x4e6   : > { %v1093_v40 = vsel %vm1091_vm5, %v1090_v38, %v1512_v36  ;;  %v1092_v41 = vsel %vm1091_vm5, %v1089_v39, %v1511_v37 }
 0x4e7   : > { %v1094_v42 = vpack.c.bf16 %v1093_v40, %v1092_v41 }
 0x4e9   : > { %1459 = vmatmul.mubr.msk.bf16.vlgmr.msra.gmra.mrb[20].mxu0 %vm454_vm1, %v1094_v42 }
 0x5bc   : > { %v1155_v45 = vpop.f32.mrb[20].mxu0 }
 0x5bd   : > { %v1156_v46 = vadd.f32 %v1350_v43, %v1155_v45  ;;  %v1460_v23 = vpop.f32.mrb[21].mxu0 }
 0x5be   : > { %v1158_v48 = vpop.f32.mrb[22].mxu0 }
 0x5bf   : > { %v1159_v49 = vadd.f32 %v1350_v43, %v1158_v48  ;;  %v1461_v50 = vpop.f32.mrb[23].mxu0  ;;  %v1164_v51 = vadd.f32 %v1162_v44, %v1156_v46 }
 0x5c1   : > { %v1168_v52 = vsel %vm454_vm1, %v1164_v51, 0.0  ;;  %v1165_v53 = vadd.f32 %v1163_v47, %v1159_v49 }
 0x5c2   : > { %1169 = vadd.xlane.f32.xlu1 %v1168_v52 }
 0x5c3   : > { %v1171_v54 = vsel %vm454_vm1, %v1165_v53, 0.0 }
 0x5c4   : > { %1172 = vadd.xlane.f32.xlu0 %v1171_v54 }
 0x64f   : > { %v1170_v55 = vpop.xlane.xlu1 %1169 }
 0x650   : > { %v1175_v56 = vmul.f32 0.03125, %v1170_v55 }
 0x651   : > { %v1173_v57 = vpop.xlane.xlu0 %1172 }
 0x652   : > { %v1177_v58 = vsub.f32 %v1164_v51, %v1175_v56  ;;  %v1176_v59 = vmul.f32 0.03125, %v1173_v57 }
 0x654   : > { %v1178_v60 = vsub.f32 %v1165_v53, %v1176_v59  ;;  %v1179_v61 = vmul.f32 %v1177_v58, %v1177_v58 }
 0x656   : > { %v1181_v6 = vsel %vm454_vm1, %v1179_v61, 0.0  ;;  %v1180_v62 = vmul.f32 %v1178_v60, %v1178_v60 }
 0x657   : > { %1182 = vadd.xlane.f32.xlu0 %v1181_v6 }
 0x658   : > { %v1184_v63 = vsel %vm454_vm1, %v1180_v62, 0.0 }
 0x659   : > { %1185 = vadd.xlane.f32.xlu1 %v1184_v63 }
 0x6e4   : > { %v1183_v0 = vpop.xlane.xlu0 %1182 }
 0x6e5   : > { %v1187_v2 = vmul.f32 0.03125, %v1183_v0 }
 0x6e6   : > { %v1186_v3 = vpop.xlane.xlu1 %1185 }
 0x6e7   : > { %v1189_v4 = vadd.f32 1e-05, %v1187_v2  ;;  %v1188_v5 = vmul.f32 0.03125, %v1186_v3 }
 0x6e9   : > { %1554 = vrsqrt.f32 %v1189_v4  ;;  %v1190_v7 = vadd.f32 1e-05, %v1188_v5 }
 0x6eb   : > { %1556 = vrsqrt.f32 %v1190_v7 }
 0x6f3   : > { %v1555_v8 = vpop.eup %1554 }
 0x6f4   : > { %v1193_v10 = vmul.f32 %v1555_v8, %v1177_v58 }
 0x6f5   : > { %v1557_v11 = vpop.eup %1556 }
 0x6f6   : > { %v1201_v13 = vmul.f32 %v1354_v9, %v1193_v10  ;;  %v1194_v14 = vmul.f32 %v1557_v11, %v1178_v60 }
 0x6f8   : > { %v1209_v15 = vadd.f32 %v1355_v12, %v1201_v13  ;;  %v1202_v16 = vmul.f32 %v1354_v9, %v1194_v14 }
 0x6fa   : > { %v1363_v17 = vpack.c.bf16 %v1209_v15, %v1209_v15  ;;  %v1210_v18 = vadd.f32 %v1355_v12, %v1202_v16 }
 0x6fc   : > { %1220 = vst.msk [vmem:[%s417_s26] sm:$0xf] %vm1219_vm6, %v1363_v17  ;;  %v1364_v19 = vpack.c.bf16 %v1210_v18, %v1210_v18 }
 0x6fe   : > { %1221 = vst.msk [vmem:[%s417_s26 + $0x4] sm:$0xf] %vm1219_vm6, %v1364_v19 }
 0x6ff PF: > { %s20_s15 = sadd.s32 1, %s1580_s15   ;;  %s1828_s13 = smov %s1576_s14 }
 0x700   : > { %p17_p5 = scmp.ge.s32.totalorder %s20_s15, 4   ;;  %s1829_s14 = smov %s1831_s16 }
 0x702   :  { %19 = sbr.rel (!%p17_p5) target bundleno = 2 (0x2), region = 97 }

// kernel: transformer_forward.10
= control target key start
LH: loop header
LB: loop body
LE: loop exit
PB: predicated region body
PF: predicated region fallthrough
CT: control target
= control target key end

     0   :  { %s3353_s0 = inlined_call_operand.vmem [shape: bf16[2,8,32], index: 0, kind: input, shape index: {}]   ;;  %s3354_s1 = inlined_call_operand.vmem [shape: bf16[2,8,32], index: 1, kind: input, shape index: {}]   ;;  %s3355_s2 = inlined_call_operand.vmem [shape: bf16[2,16,32], index: 2, kind: input, shape index: {}]   ;;  %s3356_s3 = inlined_call_operand.vmem [shape: bf16[32,64], index: 3, kind: input, shape index: {}]   ;;  %s3357_s4 = inlined_call_operand.vmem [shape: f32[1,64], index: 4, kind: input, shape index: {}]   ;;  %s3358_s5 = inlined_call_operand.vmem [shape: bf16[32,32], index: 5, kind: input, shape index: {}]   ;;  %s3359_s6 = inlined_call_operand.vmem [shape: f32[1,32], index: 6, kind: input, shape index: {}]   ;;  %s3360_s7 = inlined_call_operand.vmem [shape: bf16[32,32], index: 7, kind: input, shape index: {}]   ;;  %s3361_s8 = inlined_call_operand.vmem [shape: f32[1,32], index: 8, kind: input, shape index: {}]   ;;  %s3362_s9 = inlined_call_operand.vmem [shape: f32[1,32], index: 9, kind: input, shape index: {}]   ;;  %s3363_s10 = inlined_call_operand.vmem [shape: f32[1,32], index: 10, kind: input, shape index: {}]   ;;  %s3364_s11 = inlined_call_operand.vmem [shape: bf16[32,32], index: 11, kind: input, shape index: {}]   ;;  %s3365_s12 = inlined_call_operand.vmem [shape: f32[1,32], index: 12, kind: input, shape index: {}]   ;;  %s3366_s13 = inlined_call_operand.vmem [shape: bf16[32,64], index: 13, kind: input, shape index: {}]   ;;  %s3367_s14 = inlined_call_operand.vmem [shape: f32[1,64], index: 14, kind: input, shape index: {}]   ;;  %s3368_s15 = inlined_call_operand.vmem [shape: bf16[32,32], index: 15, kind: input, shape index: {}]   ;;  %s3369_s16 = inlined_call_operand.vmem [shape: f32[1,32], index: 16, kind: input, shape index: {}]   ;;  %s3370_s17 = inlined_call_operand.vmem [shape: f32[1,32], index: 17, kind: input, shape index: {}]   ;;  %s3371_s18 = inlined_call_operand.vmem [shape: f32[1,32], index: 18, kind: input, shape index: {}]   ;;  %s3372_s19 = inlined_call_operand.vmem [shape: bf16[32,64], index: 19, kind: input, shape index: {}]   ;;  %s3373_s20 = inlined_call_operand.vmem [shape: f32[1,64], index: 20, kind: input, shape index: {}]   ;;  %s3374_s21 = inlined_call_operand.vmem [shape: bf16[64,32], index: 21, kind: input, shape index: {}]   ;;  %s3375_s22 = inlined_call_operand.vmem [shape: f32[1,32], index: 22, kind: input, shape index: {}]   ;;  %s3376_s23 = inlined_call_operand.vmem [shape: f32[1,32], index: 23, kind: input, shape index: {}]   ;;  %s3377_s24 = inlined_call_operand.vmem [shape: f32[1,32], index: 24, kind: input, shape index: {}]   ;;  %s3378_s25 = inlined_call_operand.vmem [shape: f32[1,32], index: 25, kind: input, shape index: {}]   ;;  %s3379_s26 = inlined_call_operand.vmem [shape: f32[1,32], index: 26, kind: input, shape index: {}]   ;;  %s3380_s27 = inlined_call_operand.vmem [shape: bf16[2,8,32], index: 27, kind: output, shape index: {}]  }
   0x1   :  { %3396 = sst [smem:[#allocation2_spill]] %s3353_s0 }
   0x2   :  { %3397 = sst [smem:[#allocation3_spill]] %s3354_s1 }
   0x3   :  { %3398 = sst [smem:[#allocation4_spill]] %s3355_s2 }
   0x4   :  { %3399 = sst [smem:[#allocation5_spill]] %s3356_s3 }
   0x5   :  { %3400 = sst [smem:[#allocation6_spill]] %s3357_s4 }
   0x6   :  { %3401 = sst [smem:[#allocation7_spill]] %s3358_s5 }
   0x7   :  { %3402 = sst [smem:[#allocation8_spill]] %s3359_s6 }
   0x8   :  { %3403 = sst [smem:[#allocation9_spill]] %s3360_s7  ;;  %s3025_s7 = smov 0  }
   0x9   :  { %3404 = sst [smem:[#allocation10_spill]] %s3361_s8 }
   0xa   :  { %3405 = sst [smem:[#allocation11_spill]] %s3362_s9 }
   0xb   :  { %3406 = sst [smem:[#allocation12_spill]] %s3363_s10 }
   0xc   :  { %3407 = sst [smem:[#allocation13_spill]] %s3364_s11 }
   0xd LB: > { %s2496_s4 = sadd.s32 4294967295, %s2871_s7   ;;  %p2500_p0 = scmp.ge.s32.totalorder %s2871_s7, 1  ;;  %s2871_s7 = sphi %s3025_s7, %s37_s7  }
   0xe   : > { %p755_p1 = scmp.lt.s32.totalorder %s2871_s7, 3 }
  0x10   : > { %p756_p2 = pnand %p2500_p0, %p755_p1 }
  0x11   : > { %s3408_s8 = sld [smem:[#allocation5_spill]] (!%p756_p2)  ;;  %v2873_v1 = vmov (!%p756_p2), 0.0   ;;  %vm2874_vm0 = vmmov (!%p756_p2), 0   ;;  %p834_p3 = scmp.lt.s32.totalorder (!%p756_p2), %s2496_s4, 1  ;;  %vm881_vm1 = vcmask (!%p756_p2), 261120   ;;  %vm996_vm2 = vcmask (!%p756_p2), 64512  }
  0x12   : > { %759 = sbr.rel (%p756_p2) target bundleno = 4350 (0x10fe), region = 128  ;;  %2624 = vmatprep.subr.bf16.mxu0 (!%p756_p2), %v2873_v1  ;;  %2632 = vmatprep.subr.bf16.mxu1 (!%p756_p2), %v2873_v1  ;;  %s3409_s10 = sld [smem:[#allocation2_spill]] (!%p756_p2)  ;;  %vm1058_vm3 = vcmask (!%p756_p2), 1043456   ;;  %vm1446_vm4 = vcmask (!%p756_p2), 130048   ;;  %vm1448_vm5 = vcmask (!%p756_p2), 195584   ;;  %vm2342_vm6 = vcmask (!%p756_p2), 523264  }
  0x13   : > { %2628 = vmatprep.mubr.msk.bf16.mxu0 (!%p756_p2), %vm2874_vm0, %v2873_v1  ;;  %2636 = vmatprep.mubr.msk.bf16.mxu1 (!%p756_p2), %vm2874_vm0, %v2873_v1  ;;  %s3410_s11 = sld [smem:[#allocation3_spill]] (!%p756_p2)  ;;  %s3411_s26 = sld [smem:[#allocation6_spill]] (!%p756_p2)  ;;  %vm2417_vm7 = vcmask (!%p756_p2), 257024  }
  0x14   : > { %s2875_s30 = smov (!%p756_p2), 120   ;;  %s3390_s9 = smov (!%p756_p2), 96  }
  0x15   : > { %s3385_s28 = smov (!%p756_p2), 80   ;;  %s3391_s0 = smov (!%p756_p2), 88  }
  0x16   : > { %s3392_s1 = smov (!%p756_p2), 104   ;;  %s3388_s6 = smov (!%p756_p2), 8  }
  0x17   : > { %v2808_v0 = vld [vmem:[%s3408_s8] sm:$0xff] (!%p756_p2)   ;;  %v2809_v2 = vld [vmem:[%s3408_s8 + $0x8] sm:$0xff] (!%p756_p2)   ;;  %s3386_s25 = smov (!%p756_p2), 24   ;;  %s3419_s3 = sld [smem:[#allocation12_spill]] (!%p756_p2) }
  0x18   : > { %2625 = vmatpush3.bf16.msra.mxu0 (!%p756_p2), %v2808_v0 }
  0x19   : > { %2626 = vmatprep.subr.bf16.mxu0 %v2873_v1  ;;  %s3430_s4 = smov (!%p834_p3, %s2496_s4), 1  ;;  %v2506_v9 = vld [vmem:[%s3411_s26] ss:$0 sm:$0xff]  ;;  %s3414_s26 = sld [smem:[#allocation9_spill]] }
  0x1a   : > { %s3049_s5 = sshll.u32 %s3430_s4, 2 }
  0x1b   : > { %s837_s29 = scalar_lea.vmem %s3409_s10, %s3049_s5  ;;  %s841_s2 = scalar_lea.vmem %s3410_s11, %s3049_s5 }
  0x1c   : > { %2627 = vmatpush3.bf16.msra.mxu0 %v2809_v2  ;;  %v3060_v3 = vld [vmem:[%s837_s29] sm:$0xf]  ;;  %s3389_s10 = smov 72   ;;  %s3394_s29 = smov 112  }
  0x1d   : > { %2640 = vmatprep.subr.bf16.mxu0 %v2873_v1  ;;  %v3062_v4 = vld [vmem:[%s841_s2] sm:$0xf]  ;;  %v853_v5 = vunpack.c.l.bf16 %v3060_v3  ;;  %s3412_s2 = sld [smem:[#allocation7_spill]]  ;;  %s3413_s11 = sld [smem:[#allocation8_spill]] }
  0x1e   : > { %v855_v6 = vunpack.c.l.bf16 %v3062_v4 }
  0x20   : > { %v856_v7 = vadd.f32 %v855_v6, %v853_v5 }
  0x22   : > { %v857_v8 = vpack.c.bf16 %v856_v7, %v856_v7 }
  0x23   : > { %v2810_v16 = vld [vmem:[%s3412_s2] sm:$0xff]   ;;  %v2811_v17 = vld [vmem:[%s3412_s2 + $0x8] sm:$0xff]  }
  0x24   : > { %2629 = vmatmul.mubr.msk.bf16.vlgmr.msra.gmra.mrb[0].mxu0 %vm881_vm1, %v857_v8  ;;  %2633 = vmatpush3.bf16.msra.mxu1 %v2810_v16  ;;  %v2510_v49 = vld [vmem:[%s3413_s11] ss:$0 sm:$0xff]  ;;  %s3387_s11 = smov 16  }
  0x25   : > { %2642 = vmatprep.mubr.msk.bf16.mxu0 %vm2874_vm0, %v2873_v1  ;;  %2634 = vmatprep.subr.bf16.mxu1 %v2873_v1 }
  0x28   : > { %2635 = vmatpush3.bf16.msra.mxu1 %v2811_v17 }
  0x29   : > { %2646 = vmatprep.subr.bf16.mxu1 %v2873_v1 }
  0x2b   : > { %2637 = vmatmul.mubr.msk.bf16.vlgmr.msra.gmra.mrb[0].mxu1 %vm881_vm1, %v3060_v3  ;;  %v2815_v3 = vld [vmem:[%s3366_s13 + $0x8] sm:$0xff]  }
  0x2c   : > { %2648 = vmatprep.mubr.msk.bf16.mxu1 %vm2874_vm0, %v2873_v1 }
  0xf7   : > { %v919_v10 = vpop.f32.mrb[0].mxu0 }
  0xf8   : > { %v920_v11 = vadd.f32 %v2506_v9, %v919_v10  ;;  %v2630_v12 = vpop.f32.mrb[1].mxu0 }
  0xf9   : > { %v922_v13 = vpop.f32.mrb[2].mxu0 }
  0xfa   : > { %v925_v14 = vpack.c.bf16 %v920_v11, %v920_v11  ;;  %v2631_v15 = vpop.f32.mrb[3].mxu0 }
  0xfc   : > { %1102 = vrot.lane.b32.xlu1 %v925_v14, %s2875_s30  ;;  %994 = vrot.lane.b32.xlu0 %v925_v14, %s3390_s9  ;;  %s3420_s9 = smov 112  }
  0xfe   : > { %v986_v50 = vpop.f32.mrb[0].mxu1 }
  0xff   : > { %v987_v51 = vadd.f32 %v2510_v49, %v986_v50  ;;  %v2638_v52 = vpop.f32.mrb[1].mxu1 }
 0x100   : > { %1215 = vrot.lane.b32.xlu1 %v925_v14, %s3385_s28  ;;  %1104 = vrot.lane.b32.xlu0 %v925_v14, %s3391_s0  ;;  %v989_v53 = vpop.f32.mrb[2].mxu1  ;;  %s3416_s0 = sld [smem:[#allocation4_spill]]  ;;  %s850_s28 = scalar_lea.vmem %s3380_s27, %s3049_s5 }
 0x101   : > { %v2639_v54 = vpop.f32.mrb[3].mxu1  ;;  %v992_v55 = vpack.c.bf16 %v987_v51, %v987_v51  ;;  %v2813_v53 = vld [vmem:[%s3414_s26 + $0x8] sm:$0xff]  }
 0x103   : > { %v1060_v56 = vsel %vm1058_vm3, %v992_v55, 0 }
 0x104   : > { %1325 = vrot.lane.b32.xlu1 %v925_v14, %s3389_s10  ;;  %1213 = vrot.lane.b32.xlu0 %v925_v14, %s3394_s29  ;;  %s3418_s10 = sld [smem:[#allocation11_spill]] }
 0x105   : > { %2647 = vmatpush3.bf16.msra.mxu1 %v1060_v56 }
 0x106   : > { %2658 = vmatprep.subr.bf16.mxu1 %v2873_v1 }
 0x108   : > { %1323 = vrot.lane.b32.xlu0 %v925_v14, %s3392_s1 }
 0x16e   : > { %v995_v18 = vpop.permute.xlu0 %994  ;;  %v1103_v21 = vpop.permute.xlu1 %1102 }
 0x16f   : > { %v1001_v19 = vsel %vm996_vm2, %v995_v18, 0 }
 0x170   : > { %2641 = vmatpush3.bf16.xpose.msra.mxu0 %v1001_v19 }
 0x171   : > { %2652 = vmatprep.subr.bf16.mxu0 %v2873_v1 }
 0x172   : > { %v1105_v20 = vpop.permute.xlu0 %1104  ;;  %v1216_v23 = vpop.permute.xlu1 %1215 }
 0x173   : > { %v1110_v22 = vsel %vm996_vm2, %v1105_v20, 0  ;;  %v1221_v24 = vsel %vm996_vm2, %v1216_v23, 0 }
 0x176   : > { %v1326_v25 = vpop.permute.xlu1 %1325  ;;  %v1214_v26 = vpop.permute.xlu0 %1213 }
 0x177   : > { %2643 = vmatmul.mubr.msk.bf16.vlgmr.msra.gmra.mrb[4].mxu0 %vm996_vm2, %v925_v14  ;;  %v1331_v27 = vsel %vm996_vm2, %v1326_v25, 0 }
 0x178   : > { %2653 = vmatpush3.bf16.xpose.msra.mxu0 %v1110_v22  ;;  %2654 = vmatprep.mubr.msk.bf16.mxu0 %vm2874_vm0, %v2873_v1 }
 0x179   : > { %2664 = vmatprep.subr.bf16.mxu0 %v2873_v1 }
 0x17a   : > { %v1324_v28 = vpop.permute.xlu0 %1323 }
 0x17f   : > { %2655 = vmatmul.mubr.msk.bf16.vlgmr.msra.gmra.mrb[8].mxu0 %vm996_vm2, %v1103_v21 }
 0x180   : > { %2665 = vmatpush3.bf16.xpose.msra.mxu0 %v1221_v24  ;;  %2666 = vmatprep.mubr.msk.bf16.mxu0 %vm2874_vm0, %v2873_v1 }
 0x181   : > { %2676 = vmatprep.subr.bf16.mxu0 %v2873_v1 }
 0x187   : > { %2667 = vmatmul.mubr.msk.bf16.vlgmr.msra.gmra.mrb[12].mxu0 %vm996_vm2, %v1214_v26 }
 0x188   : > { %2677 = vmatpush3.bf16.xpose.msra.mxu0 %v1331_v27  ;;  %2678 = vmatprep.mubr.msk.bf16.mxu0 %vm2874_vm0, %v2873_v1 }
 0x189   : > { %2688 = vmatprep.subr.bf16.mxu0 %v2873_v1 }
 0x18f   : > { %2679 = vmatmul.mubr.msk.bf16.vlgmr.msra.gmra.mrb[16].mxu0 %vm996_vm2, %v1324_v28 }
 0x190   : > { %2692 = vmatprep.mubr.msk.bf16.mxu0 %vm2874_vm0, %v2873_v1 }
 0x24a   : > { %v1037_v29 = vpop.f32.mrb[4].mxu0 }
 0x24b   : > { %v2644_v30 = vpop.f32.mrb[5].mxu0  ;;  %v1043_v31 = vsel %vm996_vm2, %v1037_v29, -inf }
 0x24c   : > { %1044 = vmax.xlane.f32.xlu1 %v1043_v31  ;;  %v1040_v32 = vpop.f32.mrb[6].mxu0 }
 0x24d   : > { %v2645_v33 = vpop.f32.mrb[7].mxu0 }
 0x252   : > { %v1146_v34 = vpop.f32.mrb[8].mxu0 }
 0x253   : > { %v2656_v35 = vpop.f32.mrb[9].mxu0  ;;  %v1152_v36 = vsel %vm996_vm2, %v1146_v34, -inf }
 0x254   : > { %1153 = vmax.xlane.f32.xlu0 %v1152_v36  ;;  %v1149_v37 = vpop.f32.mrb[10].mxu0 }
 0x255   : > { %v2657_v38 = vpop.f32.mrb[11].mxu0 }
 0x25a   : > { %v1257_v39 = vpop.f32.mrb[12].mxu0 }
 0x25b   : > { %v2668_v40 = vpop.f32.mrb[13].mxu0  ;;  %v1263_v41 = vsel %vm996_vm2, %v1257_v39, -inf }
 0x25c   : > { %1264 = vmax.xlane.f32.xlu0 %v1263_v41  ;;  %v1260_v42 = vpop.f32.mrb[14].mxu0 }
 0x25d   : > { %v2669_v43 = vpop.f32.mrb[15].mxu0 }
 0x262   : > { %v1367_v44 = vpop.f32.mrb[16].mxu0 }
 0x263   : > { %v2680_v45 = vpop.f32.mrb[17].mxu0  ;;  %v1373_v46 = vsel %vm996_vm2, %v1367_v44, -inf }
 0x264   : > { %1374 = vmax.xlane.f32.xlu1 %v1373_v46  ;;  %v1370_v47 = vpop.f32.mrb[18].mxu0 }
 0x265   : > { %v2681_v48 = vpop.f32.mrb[19].mxu0 }
 0x2d9   : > { %v1045_v57 = vpop.xlane.xlu1 %1044 }
 0x2da   : > { %v1046_v58 = vsub.f32 %v1037_v29, %v1045_v57 }
 0x2dc   : > { %v1047_v59 = vmul.f32 1.442695, %v1046_v58 }
 0x2de   : > { %2827 = vpow2.f32 %v1047_v59 }
 0x2e1   : > { %v1154_v60 = vpop.xlane.xlu0 %1153 }
 0x2e2   : > { %v1155_v61 = vsub.f32 %v1146_v34, %v1154_v60 }
 0x2e4   : > { %v1156_v62 = vmul.f32 1.442695, %v1155_v61 }
 0x2e6   : > { %2829 = vpow2.f32 %v1156_v62 }
 0x2e8   : > { %v2828_v63 = vpop.eup %2827 }
 0x2e9   : > { %v1265_v0 = vpop.xlane.xlu0 %1264  ;;  %v1049_v2 = vsel %vm996_vm2, %v2828_v63, 0.0 }
 0x2ea   : > { %v1266_v7 = vsub.f32 %v1257_v39, %v1265_v0  ;;  %1050 = vadd.xlane.f32.xlu0 %v1049_v2 }
 0x2ec   : > { %v1267_v8 = vmul.f32 1.442695, %v1266_v7 }
 0x2ee   : > { %2831 = vpow2.f32 %v1267_v8 }
 0x2f0   : > { %v2830_v9 = vpop.eup %2829 }
 0x2f1   : > { %v1158_v10 = vsel %vm996_vm2, %v2830_v9, 0.0  ;;  %v1375_v13 = vpop.xlane.xlu1 %1374 }
 0x2f2   : > { %1159 = vadd.xlane.f32.xlu1 %v1158_v10  ;;  %v1376_v14 = vsub.f32 %v1367_v44, %v1375_v13  ;;  %v2812_v44 = vld [vmem:[%s3414_s26] sm:$0xff]  }
 0x2f3   : > { %2689 = vmatpush3.bf16.msra.mxu0 %v2812_v44 }
 0x2f4   : > { %v1377_v15 = vmul.f32 1.442695, %v1376_v14  ;;  %2690 = vmatprep.subr.bf16.mxu0 %v2873_v1 }
 0x2f6   : > { %2833 = vpow2.f32 %v1377_v15 }
 0x2f7   : > { %2691 = vmatpush3.bf16.msra.mxu0 %v2813_v53 }
 0x2f8   : > { %v2832_v11 = vpop.eup %2831  ;;  %2704 = vmatprep.subr.bf16.mxu0 %v2873_v1 }
 0x2f9   : > { %v1269_v12 = vsel %vm996_vm2, %v2832_v11, 0.0 }
 0x2fa   : > { %1270 = vadd.xlane.f32.xlu0 %v1269_v12 }
 0x300   : > { %v2834_v16 = vpop.eup %2833 }
 0x301   : > { %v1379_v17 = vsel %vm996_vm2, %v2834_v16, 0.0 }
 0x303   : > { %1275 = vrot.lane.b32.xlu1 %v992_v55, %s3394_s29  ;;  %s3417_s29 = sld [smem:[#allocation13_spill]] }
 0x310   : > { %1165 = vrot.lane.b32.xlu0 %v992_v55, %s2875_s30 }
 0x327   : > { %1380 = vadd.xlane.f32.xlu1 %v1379_v17 }
 0x338   : > { %1385 = vrot.lane.b32.xlu1 %v992_v55, %s3392_s1 }
 0x377   : > { %v1051_v18 = vpop.xlane.xlu0 %1050 }
 0x378   : > { %2835 = vrcp.f32 %v1051_v18 }
 0x37f   : > { %v1160_v19 = vpop.xlane.xlu1 %1159 }
 0x380   : > { %2837 = vrcp.f32 %v1160_v19  ;;  %v2814_v19 = vld [vmem:[%s3366_s13] sm:$0xff]  }
 0x382   : > { %v2836_v20 = vpop.eup %2835 }
 0x383   : > { %v1053_v21 = vmul.f32 %v2836_v20, %v2828_v63  ;;  %v1276_v28 = vpop.permute.xlu1 %1275  ;;  %v2817_v20 = vld [vmem:[%s3417_s29] sm:$0xff]  }
 0x384   : > { %v1281_v30 = vsel %vm1058_vm3, %v1276_v28, 0  ;;  %v2527_v28 = vld [vmem:[%s3419_s3] ss:$0 sm:$0xff]  ;;  %s3426_s3 = smov 8  }
 0x385   : > { %v1054_v22 = vpack.c.bf16 %v1053_v21, %v1053_v21  ;;  %v2818_v21 = vld [vmem:[%s3417_s29 + $0x8] sm:$0xff]  }
 0x387   : > { %2649 = vmatmul.mubr.msk.bf16.vlgmr.msra.gmra.mrb[4].mxu1 %vm996_vm2, %v1054_v22  ;;  %v1271_v23 = vpop.xlane.xlu0 %1270 }
 0x388   : > { %2839 = vrcp.f32 %v1271_v23  ;;  %2660 = vmatprep.mubr.msk.bf16.mxu1 %vm2874_vm0, %v2873_v1 }
 0x38a   : > { %v2838_v24 = vpop.eup %2837 }
 0x38b   : > { %v1162_v25 = vmul.f32 %v2838_v24, %v2830_v9  ;;  %v1166_v26 = vpop.permute.xlu0 %1165 }
 0x38c   : > { %v1171_v27 = vsel %vm1058_vm3, %v1166_v26, 0  ;;  %v2526_v26 = vld [vmem:[%s3418_s10] ss:$0 sm:$0xff]  ;;  %s3423_s10 = smov 96  }
 0x38d   : > { %2659 = vmatpush3.bf16.msra.mxu1 %v1171_v27  ;;  %v1163_v29 = vpack.c.bf16 %v1162_v25, %v1162_v25 }
 0x38e   : > { %2670 = vmatprep.subr.bf16.mxu1 %v2873_v1 }
 0x390   : > { %2661 = vmatmul.mubr.msk.bf16.vlgmr.msra.gmra.mrb[8].mxu1 %vm996_vm2, %v1163_v29 }
 0x391   : > { %2671 = vmatpush3.bf16.msra.mxu1 %v1281_v30  ;;  %2672 = vmatprep.mubr.msk.bf16.mxu1 %vm2874_vm0, %v2873_v1 }
 0x392   : > { %v2840_v31 = vpop.eup %2839  ;;  %2682 = vmatprep.subr.bf16.mxu1 %v2873_v1 }
 0x393   : > { %v1273_v32 = vmul.f32 %v2840_v31, %v2832_v11 }
 0x395   : > { %v1274_v33 = vpack.c.bf16 %v1273_v32, %v1273_v32 }
 0x398   : > { %2673 = vmatmul.mubr.msk.bf16.vlgmr.msra.gmra.mrb[12].mxu1 %vm996_vm2, %v1274_v33  ;;  %v2532_v33 = vld [vmem:[%s3367_s14] ss:$0 sm:$0xff] }
 0x399   : > { %2684 = vmatprep.mubr.msk.bf16.mxu1 %vm2874_vm0, %v2873_v1 }
 0x3b4   : > { %v1381_v34 = vpop.xlane.xlu1 %1380 }
 0x3b5   : > { %2841 = vrcp.f32 %v1381_v34 }
 0x3b8   : > { %v1386_v35 = vpop.permute.xlu1 %1385 }
 0x3b9   : > { %v1391_v36 = vsel %vm1058_vm3, %v1386_v35, 0 }
 0x3ba   : > { %2683 = vmatpush3.bf16.msra.mxu1 %v1391_v36 }
 0x3bb   : > { %2696 = vmatprep.subr.bf16.mxu1 %v2873_v1 }
 0x3bf   : > { %v2842_v37 = vpop.eup %2841 }
 0x3c0   : > { %v1383_v38 = vmul.f32 %v2842_v37, %v2834_v16 }
 0x3c2   : > { %v1384_v39 = vpack.c.bf16 %v1383_v38, %v1383_v38 }
 0x3c4   : > { %2685 = vmatmul.mubr.msk.bf16.vlgmr.msra.gmra.mrb[16].mxu1 %vm996_vm2, %v1384_v39 }
 0x3c5   : > { %2700 = vmatprep.mubr.msk.bf16.mxu1 %vm2874_vm0, %v2873_v1  ;;  %2697 = vmatpush3.bf16.msra.mxu1 %v2817_v20 }
 0x3c6   : > { %2698 = vmatprep.subr.bf16.mxu1 %v2873_v1 }
 0x3c9   : > { %2699 = vmatpush3.bf16.msra.mxu1 %v2818_v21 }
 0x3ca   : > { %2712 = vmatprep.subr.bf16.mxu1 %v2873_v1 }
 0x45a   : > { %v1096_v40 = vpop.f32.mrb[4].mxu1 }
 0x45b   : > { %v2650_v41 = vpop.f32.mrb[5].mxu1 }
 0x45c   : > { %v1099_v42 = vpop.f32.mrb[6].mxu1 }
 0x45d   : > { %v2651_v43 = vpop.f32.mrb[7].mxu1 }
 0x463   : > { %v1207_v45 = vpop.f32.mrb[8].mxu1 }
 0x464   : > { %1434 = vrot.lane.b32.xlu0 %v1207_v45, %s3388_s6  ;;  %v2662_v46 = vpop.f32.mrb[9].mxu1  ;;  %s2565_s6 = sshll.u32 %s3430_s4, 3 }
 0x465   : > { %v1210_v47 = vpop.f32.mrb[10].mxu1  ;;  %s846_s1 = scalar_lea.vmem %s3416_s0, %s2565_s6  ;;  %s3421_s0 = smov 104  }
 0x466   : > { %v2663_v48 = vpop.f32.mrb[11].mxu1  ;;  %s3425_s6 = smov 80  }
 0x46b   : > { %v1317_v49 = vpop.f32.mrb[12].mxu1 }
 0x46c   : > { %1438 = vrot.lane.b32.xlu1 %v1317_v49, %s3387_s11  ;;  %v2674_v50 = vpop.f32.mrb[13].mxu1 }
 0x46d   : > { %v1320_v51 = vpop.f32.mrb[14].mxu1 }
 0x46e   : > { %v2675_v52 = vpop.f32.mrb[15].mxu1 }
 0x497   : > { %v1427_v54 = vpop.f32.mrb[16].mxu1 }
 0x498   : > { %1442 = vrot.lane.b32.xlu0 %v1427_v54, %s3386_s25  ;;  %v2686_v55 = vpop.f32.mrb[17].mxu1  ;;  %s3415_s25 = sld [smem:[#allocation10_spill]] }
 0x499   : > { %v1430_v56 = vpop.f32.mrb[18].mxu1 }
 0x49a   : > { %v2687_v57 = vpop.f32.mrb[19].mxu1 }
 0x49e   : > { %v2522_v2 = vld [vmem:[%s3415_s25] ss:$0 sm:$0xff] }
 0x4d6   : > { %v1435_v58 = vpop.permute.xlu0 %1434 }
 0x4d7   : > { %v1445_v60 = vsel %vm996_vm2, %v1096_v40, %v1435_v58 }
 0x4de   : > { %v1439_v59 = vpop.permute.xlu1 %1438 }
 0x4df   : > { %v1447_v61 = vsel %vm1446_vm4, %v1445_v60, %v1439_v59 }
 0x50a   : > { %v1443_v62 = vpop.permute.xlu0 %1442 }
 0x50b   : > { %v1449_v63 = vsel %vm1448_vm5, %v1447_v61, %v1443_v62 }
 0x50c   : > { %v1450_v0 = vpack.c.bf16 %v1449_v63, %v1449_v63 }
 0x50e   : > { %2693 = vmatmul.mubr.msk.bf16.vlgmr.msra.gmra.mrb[20].mxu0 %vm881_vm1, %v1450_v0 }
 0x50f   : > { %2708 = vmatprep.mubr.msk.bf16.mxu0 %vm2874_vm0, %v2873_v1  ;;  %2705 = vmatpush3.bf16.msra.mxu0 %v2814_v19 }
 0x510   : > { %2706 = vmatprep.subr.bf16.mxu0 %v2873_v1 }
 0x513   : > { %2707 = vmatpush3.bf16.msra.mxu0 %v2815_v3 }
 0x514   : > { %2718 = vmatprep.subr.bf16.mxu0 %v2873_v1 }
 0x5e1   : > { %v1511_v7 = vpop.f32.mrb[20].mxu0 }
 0x5e2   : > { %v1512_v8 = vadd.f32 %v2522_v2, %v1511_v7  ;;  %v2694_v9 = vpop.f32.mrb[21].mxu0 }
 0x5e3   : > { %v1514_v10 = vpop.f32.mrb[22].mxu0 }
 0x5e4   : > { %v2695_v11 = vpop.f32.mrb[23].mxu0  ;;  %v1517_v12 = vadd.f32 %v1512_v8, %v853_v5  ;;  %v2816_v5 = vld [vmem:[%s846_s1] sm:$0xff]   ;;  %s3424_s1 = smov 72  }
 0x5e5   : > { %2709 = vmatmul.mubr.msk.bf16.vlgmr.msra.gmra.mrb[24].mxu0 %vm881_vm1, %v2816_v5 }
 0x5e6   : > { %v1520_v13 = vsel %vm881_vm1, %v1517_v12, 0.0  ;;  %2720 = vmatprep.mubr.msk.bf16.mxu0 %vm2874_vm0, %v2873_v1 }
 0x5e7   : > { %1521 = vadd.xlane.f32.xlu1 %v1520_v13 }
 0x674   : > { %v1522_v14 = vpop.xlane.xlu1 %1521 }
 0x675   : > { %v1524_v15 = vmul.f32 0.03125, %v1522_v14 }
 0x677   : > { %v1525_v16 = vsub.f32 %v1517_v12, %v1524_v15 }
 0x679   : > { %v1526_v17 = vmul.f32 %v1525_v16, %v1525_v16 }
 0x67b   : > { %v1527_v18 = vsel %vm881_vm1, %v1526_v17, 0.0 }
 0x67c   : > { %1528 = vadd.xlane.f32.xlu0 %v1527_v18 }
 0x6b8   : > { %v1684_v34 = vpop.f32.mrb[24].mxu0 }
 0x6b9   : > { %v1685_v35 = vadd.f32 %v2532_v33, %v1684_v34  ;;  %v2710_v36 = vpop.f32.mrb[25].mxu0 }
 0x6ba   : > { %v1687_v37 = vpop.f32.mrb[26].mxu0 }
 0x6bb   : > { %v1688_v38 = vadd.f32 %v2532_v33, %v1687_v37  ;;  %v2711_v39 = vpop.f32.mrb[27].mxu0 }
 0x6bd   : > { %v3213_v40 = vpack.c.bf16 %v1688_v38, %v1685_v35 }
 0x6bf   : > { %1800 = vrot.lane.b32.xlu0 %v3213_v40, %s2875_s30  ;;  %v1696_v4 = vsel %vm996_vm2, %v3213_v40, 0 }
 0x709   : > { %v1529_v22 = vpop.xlane.xlu0 %1528 }
 0x70a   : > { %v1530_v23 = vmul.f32 0.03125, %v1529_v22 }
 0x70c   : > { %v1531_v24 = vadd.f32 1e-05, %v1530_v23 }
 0x70e   : > { %2843 = vrsqrt.f32 %v1531_v24 }
 0x718   : > { %v2844_v25 = vpop.eup %2843 }
 0x719   : > { %v1533_v27 = vmul.f32 %v2844_v25, %v1525_v16 }
 0x71b   : > { %v1540_v29 = vmul.f32 %v2526_v26, %v1533_v27 }
 0x71d   : > { %v3202_v30 = vadd.f32 %v2527_v28, %v1540_v29 }
 0x71f   : > { %v1548_v31 = vadd.f32 %v3202_v30, %v855_v6  ;;  %v2528_v6 = vld [vmem:[%s3365_s12] ss:$0 sm:$0xff] }
 0x721   : > { %v1549_v32 = vpack.c.bf16 %v1548_v31, %v1548_v31 }
 0x723   : > { %2701 = vmatmul.mubr.msk.bf16.vlgmr.msra.gmra.mrb[20].mxu1 %vm881_vm1, %v1549_v32 }
 0x724   : > { %2714 = vmatprep.mubr.msk.bf16.mxu1 %vm2874_vm0, %v2873_v1  ;;  %2713 = vmatpush3.bf16.xpose.msra.mxu1 %v1696_v4 }
 0x725   : > { %2724 = vmatprep.subr.bf16.mxu1 %v2873_v1 }
 0x731   : > { %v1801_v44 = vpop.permute.xlu0 %1800 }
 0x732   : > { %v1806_v48 = vsel %vm996_vm2, %v1801_v44, 0 }
 0x7f6   : > { %v1610_v41 = vpop.f32.mrb[20].mxu1 }
 0x7f7   : > { %v1611_v42 = vadd.f32 %v2528_v6, %v1610_v41  ;;  %v2702_v43 = vpop.f32.mrb[21].mxu1 }
 0x7f8   : > { %v1613_v45 = vpop.f32.mrb[22].mxu1 }
 0x7f9   : > { %v1616_v46 = vpack.c.bf16 %v1611_v42, %v1611_v42  ;;  %v2703_v47 = vpop.f32.mrb[23].mxu1 }
 0x7fb   : > { %1798 = vrot.lane.b32.xlu1 %v1616_v46, %s2875_s30  ;;  %1906 = vrot.lane.b32.xlu0 %v1616_v46, %s3420_s9  ;;  %s3422_s30 = smov 88  }
 0x7fc   : > { %2715 = vmatmul.mubr.msk.bf16.vlgmr.msra.gmra.mrb[24].mxu1 %vm996_vm2, %v1616_v46 }
 0x7fd   : > { %2725 = vmatpush3.bf16.xpose.msra.mxu1 %v1806_v48  ;;  %2726 = vmatprep.mubr.msk.bf16.mxu1 %vm2874_vm0, %v2873_v1 }
 0x7fe   : > { %2736 = vmatprep.subr.bf16.mxu1 %v2873_v1 }
 0x7ff   : > { %1908 = vrot.lane.b32.xlu1 %v3213_v40, %s3420_s9  ;;  %2014 = vrot.lane.b32.xlu0 %v1616_v46, %s3421_s0  ;;  %s3427_s9 = smov 16  }
 0x803   : > { %2016 = vrot.lane.b32.xlu1 %v3213_v40, %s3421_s0  ;;  %s3428_s0 = smov 24  }
 0x86d   : > { %v1799_v49 = vpop.permute.xlu1 %1798  ;;  %v1907_v53 = vpop.permute.xlu0 %1906 }
 0x86e   : > { %2727 = vmatmul.mubr.msk.bf16.vlgmr.msra.gmra.mrb[28].mxu1 %vm996_vm2, %v1799_v49 }
 0x86f   : > { %2738 = vmatprep.mubr.msk.bf16.mxu1 %vm2874_vm0, %v2873_v1 }
 0x871   : > { %v1909_v50 = vpop.permute.xlu1 %1908  ;;  %v2015_v55 = vpop.permute.xlu0 %2014 }
 0x872   : > { %v1914_v51 = vsel %vm996_vm2, %v1909_v50, 0 }
 0x873   : > { %2737 = vmatpush3.bf16.xpose.msra.mxu1 %v1914_v51 }
 0x874   : > { %2748 = vmatprep.subr.bf16.mxu1 %v2873_v1 }
 0x875   : > { %v2017_v52 = vpop.permute.xlu1 %2016 }
 0x876   : > { %v2022_v54 = vsel %vm996_vm2, %v2017_v52, 0 }
 0x87a   : > { %2739 = vmatmul.mubr.msk.bf16.vlgmr.msra.gmra.mrb[32].mxu1 %vm996_vm2, %v1907_v53 }
 0x87b   : > { %2749 = vmatpush3.bf16.xpose.msra.mxu1 %v2022_v54  ;;  %2750 = vmatprep.mubr.msk.bf16.mxu1 %vm2874_vm0, %v2873_v1 }
 0x87c   : > { %2760 = vmatprep.subr.bf16.mxu1 %v2873_v1 }
 0x882   : > { %2751 = vmatmul.mubr.msk.bf16.vlgmr.msra.gmra.mrb[36].mxu1 %vm996_vm2, %v2015_v55 }
 0x883   : > { %2764 = vmatprep.mubr.msk.bf16.mxu1 %vm2874_vm0, %v2873_v1 }
 0x8cf   : > { %v1732_v56 = vpop.f32.mrb[24].mxu1 }
 0x8d0   : > { %v2716_v57 = vpop.f32.mrb[25].mxu1  ;;  %v1738_v58 = vsel %vm1446_vm4, %v1732_v56, -inf }
 0x8d1   : > { %1739 = vmax.xlane.f32.xlu1 %v1738_v58  ;;  %v1735_v59 = vpop.f32.mrb[26].mxu1 }
 0x8d2   : > { %v2717_v60 = vpop.f32.mrb[27].mxu1 }
 0x941   : > { %v1842_v61 = vpop.f32.mrb[28].mxu1 }
 0x942   : > { %v2728_v62 = vpop.f32.mrb[29].mxu1  ;;  %v1848_v63 = vsel %vm1446_vm4, %v1842_v61, -inf }
 0x943   : > { %1849 = vmax.xlane.f32.xlu0 %v1848_v63  ;;  %v1845_v0 = vpop.f32.mrb[30].mxu1  ;;  %v2819_v62 = vld [vmem:[%s3368_s15] sm:$0xff]   ;;  %v2820_v63 = vld [vmem:[%s3368_s15 + $0x8] sm:$0xff]  }
 0x944   : > { %v2729_v2 = vpop.f32.mrb[31].mxu1  ;;  %2761 = vmatpush3.bf16.msra.mxu1 %v2819_v62 }
 0x945   : > { %2762 = vmatprep.subr.bf16.mxu1 %v2873_v1 }
 0x948   : > { %2763 = vmatpush3.bf16.msra.mxu1 %v2820_v63 }
 0x949   : > { %2776 = vmatprep.subr.bf16.mxu1 %v2873_v1 }
 0x94d   : > { %v1950_v7 = vpop.f32.mrb[32].mxu1 }
 0x94e   : > { %v2740_v8 = vpop.f32.mrb[33].mxu1  ;;  %v1956_v9 = vsel %vm1446_vm4, %v1950_v7, -inf }
 0x94f   : > { %1957 = vmax.xlane.f32.xlu0 %v1956_v9  ;;  %v1953_v10 = vpop.f32.mrb[34].mxu1 }
 0x950   : > { %v2741_v11 = vpop.f32.mrb[35].mxu1 }
 0x955   : > { %v2058_v12 = vpop.f32.mrb[36].mxu1 }
 0x956   : > { %v2752_v13 = vpop.f32.mrb[37].mxu1  ;;  %v2064_v14 = vsel %vm1446_vm4, %v2058_v12, -inf }
 0x957   : > { %2065 = vmax.xlane.f32.xlu1 %v2064_v14  ;;  %v2061_v15 = vpop.f32.mrb[38].mxu1 }
 0x958   : > { %v2753_v16 = vpop.f32.mrb[39].mxu1 }
 0x95e   : > { %v1740_v17 = vpop.xlane.xlu1 %1739 }
 0x95f   : > { %v1741_v18 = vsub.f32 %v1732_v56, %v1740_v17 }
 0x961   : > { %v1742_v19 = vmul.f32 1.442695, %v1741_v18 }
 0x963   : > { %2845 = vpow2.f32 %v1742_v19 }
 0x96d   : > { %v2846_v3 = vpop.eup %2845 }
 0x96e   : > { %v1744_v5 = vsel %vm1446_vm4, %v2846_v3, 0.0 }
 0x96f   : > { %1745 = vadd.xlane.f32.xlu0 %v1744_v5 }
 0x9d0   : > { %v1850_v20 = vpop.xlane.xlu0 %1849 }
 0x9d1   : > { %v1851_v21 = vsub.f32 %v1842_v61, %v1850_v20 }
 0x9d3   : > { %v1852_v22 = vmul.f32 1.442695, %v1851_v21 }
 0x9d5   : > { %2847 = vpow2.f32 %v1852_v22 }
 0x9dc   : > { %v1958_v23 = vpop.xlane.xlu0 %1957 }
 0x9dd   : > { %v1959_v24 = vsub.f32 %v1950_v7, %v1958_v23 }
 0x9df   : > { %v2848_v25 = vpop.eup %2847  ;;  %v1960_v26 = vmul.f32 1.442695, %v1959_v24 }
 0x9e0   : > { %v1854_v27 = vsel %vm1446_vm4, %v2848_v25, 0.0 }
 0x9e1   : > { %2849 = vpow2.f32 %v1960_v26  ;;  %1855 = vadd.xlane.f32.xlu1 %v1854_v27 }
 0x9e4   : > { %v2066_v31 = vpop.xlane.xlu1 %2065 }
 0x9e5   : > { %v2067_v32 = vsub.f32 %v2058_v12, %v2066_v31 }
 0x9e7   : > { %v2068_v33 = vmul.f32 1.442695, %v2067_v32  ;;  %v2821_v32 = vld [vmem:[%s3372_s19] sm:$0xff]  }
 0x9e9   : > { %2851 = vpow2.f32 %v2068_v33  ;;  %v2822_v33 = vld [vmem:[%s3372_s19 + $0x8] sm:$0xff]  }
 0x9eb   : > { %v2850_v28 = vpop.eup %2849 }
 0x9ec   : > { %v1962_v29 = vsel %vm1446_vm4, %v2850_v28, 0.0 }
 0x9ed   : > { %1963 = vadd.xlane.f32.xlu0 %v1962_v29 }
 0x9f2   : > { %1860 = vrot.lane.b32.xlu1 %v3213_v40, %s3422_s30 }
 0x9f3   : > { %v2852_v34 = vpop.eup %2851 }
 0x9f4   : > { %v2070_v35 = vsel %vm1446_vm4, %v2852_v34, 0.0 }
 0x9fc   : > { %v1746_v36 = vpop.xlane.xlu0 %1745 }
 0x9fd   : > { %2853 = vrcp.f32 %v1746_v36 }
 0xa03   : > { %1751 = vrot.lane.b32.xlu0 %v3213_v40, %s3423_s10 }
 0xa07   : > { %2076 = vrot.lane.b32.xlu0 %v3213_v40, %s3424_s1  ;;  %v2854_v38 = vpop.eup %2853 }
 0xa08   : > { %v1748_v4 = vmul.f32 %v2854_v38, %v2846_v3  ;;  %v2545_v3 = vld [vmem:[%s3369_s16] ss:$0 sm:$0xff] }
 0xa0a   : > { %v1749_v41 = vpack.c.bf16 %v1748_v4, %v1748_v4 }
 0xa16   : > { %2071 = vadd.xlane.f32.xlu1 %v2070_v35 }
 0xa27   : > { %1968 = vrot.lane.b32.xlu1 %v3213_v40, %s3425_s6 }
 0xa6e   : > { %v1856_v37 = vpop.xlane.xlu1 %1855 }
 0xa6f   : > { %2855 = vrcp.f32 %v1856_v37 }
 0xa72   : > { %v1861_v43 = vpop.permute.xlu1 %1860 }
 0xa79   : > { %v2856_v42 = vpop.eup %2855 }
 0xa7a   : > { %v1964_v39 = vpop.xlane.xlu0 %1963  ;;  %v1858_v40 = vmul.f32 %v2856_v42, %v2848_v25 }
 0xa7b   : > { %2857 = vrcp.f32 %v1964_v39  ;;  %v2549_v39 = vld [vmem:[%s3370_s17] ss:$0 sm:$0xff] }
 0xa7c   : > { %v1859_v44 = vpack.c.bf16 %v1858_v40, %v1858_v40  ;;  %v2825_v40 = vld [vmem:[%s3374_s21 + $0x10] sm:$0xff]  }
 0xa7e   : > { %v1752_v6 = vpop.permute.xlu0 %1751 }
 0xa7f   : > { %2719 = vmatpush3.bf16.msra.mxu0 %v1752_v6  ;;  %v2550_v6 = vld [vmem:[%s3371_s18] ss:$0 sm:$0xff] }
 0xa80   : > { %2730 = vmatprep.subr.bf16.mxu0 %v2873_v1 }
 0xa82   : > { %2721 = vmatmul.mubr.msk.bf16.vlgmr.msra.gmra.mrb[28].mxu0 %vm1446_vm4, %v1749_v41  ;;  %v2077_v50 = vpop.permute.xlu0 %2076 }
 0xa83   : > { %2731 = vmatpush3.bf16.msra.mxu0 %v1861_v43  ;;  %2732 = vmatprep.mubr.msk.bf16.mxu0 %vm2874_vm0, %v2873_v1 }
 0xa84   : > { %2742 = vmatprep.subr.bf16.mxu0 %v2873_v1 }
 0xa85   : > { %v2858_v45 = vpop.eup %2857 }
 0xa86   : > { %v1966_v47 = vmul.f32 %v2858_v45, %v2850_v28  ;;  %v2551_v45 = vld [vmem:[%s3373_s20] ss:$0 sm:$0xff] }
 0xa88   : > { %v1967_v49 = vpack.c.bf16 %v1966_v47, %v1966_v47 }
 0xa8a   : > { %2733 = vmatmul.mubr.msk.bf16.vlgmr.msra.gmra.mrb[32].mxu0 %vm1446_vm4, %v1859_v44  ;;  %v2826_v44 = vld [vmem:[%s3374_s21 + $0x18] sm:$0xff]  }
 0xa8b   : > { %2744 = vmatprep.mubr.msk.bf16.mxu0 %vm2874_vm0, %v2873_v1 }
 0xaa3   : > { %v2072_v46 = vpop.xlane.xlu1 %2071 }
 0xaa4   : > { %2859 = vrcp.f32 %v2072_v46 }
 0xaa7   : > { %v1969_v48 = vpop.permute.xlu1 %1968 }
 0xaa8   : > { %2743 = vmatpush3.bf16.msra.mxu0 %v1969_v48 }
 0xaa9   : > { %2754 = vmatprep.subr.bf16.mxu0 %v2873_v1 }
 0xaab   : > { %2745 = vmatmul.mubr.msk.bf16.vlgmr.msra.gmra.mrb[36].mxu0 %vm1446_vm4, %v1967_v49 }
 0xaac   : > { %2755 = vmatpush3.bf16.msra.mxu0 %v2077_v50  ;;  %2756 = vmatprep.mubr.msk.bf16.mxu0 %vm2874_vm0, %v2873_v1 }
 0xaad   : > { %2768 = vmatprep.subr.bf16.mxu0 %v2873_v1 }
 0xaae   : > { %v2860_v51 = vpop.eup %2859 }
 0xaaf   : > { %v2074_v52 = vmul.f32 %v2860_v51, %v2852_v34  ;;  %v2824_v34 = vld [vmem:[%s3374_s21 + $0x8] sm:$0xff]  }
 0xab1   : > { %v2075_v53 = vpack.c.bf16 %v2074_v52, %v2074_v52 }
 0xab3   : > { %2757 = vmatmul.mubr.msk.bf16.vlgmr.msra.gmra.mrb[40].mxu0 %vm1446_vm4, %v2075_v53 }
 0xab4   : > { %2772 = vmatprep.mubr.msk.bf16.mxu0 %vm2874_vm0, %v2873_v1  ;;  %2769 = vmatpush3.bf16.msra.mxu0 %v2821_v32 }
 0xab5   : > { %2770 = vmatprep.subr.bf16.mxu0 %v2873_v1 }
 0xab8   : > { %2771 = vmatpush3.bf16.msra.mxu0 %v2822_v33 }
 0xb55   : > { %v1791_v54 = vpop.f32.mrb[28].mxu0 }
 0xb56   : > { %v2722_v55 = vpop.f32.mrb[29].mxu0 }
 0xb57   : > { %v1794_v56 = vpop.f32.mrb[30].mxu0 }
 0xb58   : > { %v2723_v57 = vpop.f32.mrb[31].mxu0 }
 0xb5d   : > { %v1900_v58 = vpop.f32.mrb[32].mxu0 }
 0xb5e   : > { %2123 = vrot.lane.b32.xlu1 %v1900_v58, %s3426_s3  ;;  %v2734_v59 = vpop.f32.mrb[33].mxu0 }
 0xb5f   : > { %v1903_v60 = vpop.f32.mrb[34].mxu0 }
 0xb60   : > { %v2735_v61 = vpop.f32.mrb[35].mxu0 }
 0xb7e   : > { %v2008_v0 = vpop.f32.mrb[36].mxu0 }
 0xb7f   : > { %2127 = vrot.lane.b32.xlu0 %v2008_v0, %s3427_s9  ;;  %v2746_v2 = vpop.f32.mrb[37].mxu0 }
 0xb80   : > { %v2011_v7 = vpop.f32.mrb[38].mxu0 }
 0xb81   : > { %v2747_v8 = vpop.f32.mrb[39].mxu0 }
 0xb86   : > { %v2116_v9 = vpop.f32.mrb[40].mxu0 }
 0xb87   : > { %2131 = vrot.lane.b32.xlu1 %v2116_v9, %s3428_s0  ;;  %v2758_v10 = vpop.f32.mrb[41].mxu0 }
 0xb88   : > { %v2119_v11 = vpop.f32.mrb[42].mxu0  ;;  %v2561_v10 = vld [vmem:[%s3376_s23] ss:$0 sm:$0xff] }
 0xb89   : > { %v2759_v12 = vpop.f32.mrb[43].mxu0 }
 0xb8a   : > { %v2562_v12 = vld [vmem:[%s3377_s24] ss:$0 sm:$0xff] }
 0xbd0   : > { %v2124_v13 = vpop.permute.xlu1 %2123 }
 0xbd1   : > { %v2134_v15 = vsel %vm996_vm2, %v1791_v54, %v2124_v13 }
 0xbf1   : > { %v2128_v14 = vpop.permute.xlu0 %2127 }
 0xbf2   : > { %v2135_v16 = vsel %vm1446_vm4, %v2134_v15, %v2128_v14 }
 0xbf9   : > { %v2132_v17 = vpop.permute.xlu1 %2131 }
 0xbfa   : > { %v2136_v18 = vsel %vm1448_vm5, %v2135_v16, %v2132_v17 }
 0xbfb   : > { %v2137_v19 = vpack.c.bf16 %v2136_v18, %v2136_v18 }
 0xbfd   : > { %2765 = vmatmul.mubr.msk.bf16.vlgmr.msra.gmra.mrb[40].mxu1 %vm881_vm1, %v2137_v19 }
 0xbfe   : > { %2784 = vmatprep.mubr.msk.bf16.mxu1 %vm2874_vm0, %v2873_v1 }
 0xcd0   : > { %v2198_v5 = vpop.f32.mrb[40].mxu1 }
 0xcd1   : > { %v2199_v20 = vadd.f32 %v2545_v3, %v2198_v5  ;;  %v2766_v21 = vpop.f32.mrb[41].mxu1 }
 0xcd2   : > { %v2201_v22 = vpop.f32.mrb[42].mxu1 }
 0xcd3   : > { %v2767_v23 = vpop.f32.mrb[43].mxu1  ;;  %v2204_v24 = vadd.f32 %v2199_v20, %v3202_v30  ;;  %v2823_v30 = vld [vmem:[%s3374_s21] sm:$0xff]  }
 0xcd4   : > { %2777 = vmatpush3.bf16.msra.mxu1 %v2823_v30 }
 0xcd5   : > { %v2207_v25 = vsel %vm881_vm1, %v2204_v24, 0.0  ;;  %2778 = vmatprep.subr.bf16.mxu1 %v2873_v1 }
 0xcd6   : > { %2208 = vadd.xlane.f32.xlu0 %v2207_v25 }
 0xcd8   : > { %2779 = vmatpush3.bf16.msra.mxu1 %v2824_v34 }
 0xcd9   : > { %2780 = vmatprep.subr.bf16.mxu1 %v2873_v1 }
 0xcdc   : > { %2781 = vmatpush3.bf16.msra.mxu1 %v2825_v40 }
 0xcdd   : > { %2782 = vmatprep.subr.bf16.mxu1 %v2873_v1  ;;  %v2555_v1 = vld [vmem:[%s3375_s22] ss:$0 sm:$0xff] }
 0xce0   : > { %2783 = vmatpush3.bf16.msra.mxu1 %v2826_v44 }
 0xd63   : > { %v2209_v26 = vpop.xlane.xlu0 %2208 }
 0xd64   : > { %v2210_v27 = vmul.f32 0.03125, %v2209_v26 }
 0xd66   : > { %v2211_v28 = vsub.f32 %v2204_v24, %v2210_v27 }
 0xd68   : > { %v2212_v29 = vmul.f32 %v2211_v28, %v2211_v28 }
 0xd6a   : > { %v2213_v31 = vsel %vm881_vm1, %v2212_v29, 0.0 }
 0xd6b   : > { %2214 = vadd.xlane.f32.xlu1 %v2213_v31 }
 0xdf8   : > { %v2215_v35 = vpop.xlane.xlu1 %2214 }
 0xdf9   : > { %v2216_v36 = vmul.f32 0.03125, %v2215_v35 }
 0xdfb   : > { %v2217_v37 = vadd.f32 1e-05, %v2216_v36 }
 0xdfd   : > { %2861 = vrsqrt.f32 %v2217_v37 }
 0xe07   : > { %v2862_v38 = vpop.eup %2861 }
 0xe08   : > { %v2219_v4 = vmul.f32 %v2862_v38, %v2211_v28 }
 0xe0a   : > { %v2226_v41 = vmul.f32 %v2549_v39, %v2219_v4 }
 0xe0c   : > { %v2233_v42 = vadd.f32 %v2550_v6, %v2226_v41 }
 0xe0e   : > { %v2234_v43 = vpack.c.bf16 %v2233_v42, %v2233_v42 }
 0xe10   : > { %2773 = vmatmul.mubr.msk.bf16.vlgmr.msra.gmra.mrb[44].mxu0 %vm881_vm1, %v2234_v43 }
 0xee3   : > { %v2295_v46 = vpop.f32.mrb[44].mxu0 }
 0xee4   : > { %v2296_v47 = vadd.f32 %v2551_v45, %v2295_v46  ;;  %v2774_v48 = vpop.f32.mrb[45].mxu0 }
 0xee5   : > { %v2298_v49 = vpop.f32.mrb[46].mxu0 }
 0xee6   : > { %v2301_v50 = vmax.f32 %v2296_v47, 0.0  ;;  %v2775_v51 = vpop.f32.mrb[47].mxu0 }
 0xee8   : > { %v2302_v52 = vpack.c.bf16 %v2301_v50, %v2301_v50 }
 0xeea   : > { %2785 = vmatmul.mubr.msk.bf16.vlgmr.msra.gmra.mrb[44].mxu1 %vm2342_vm6, %v2302_v52 }
 0xfbd   : > { %v2380_v53 = vpop.f32.mrb[44].mxu1 }
 0xfbe   : > { %v2381_v54 = vadd.f32 %v2555_v1, %v2380_v53  ;;  %v2786_v55 = vpop.f32.mrb[45].mxu1 }
 0xfbf   : > { %v2383_v56 = vpop.f32.mrb[46].mxu1 }
 0xfc0   : > { %v2787_v57 = vpop.f32.mrb[47].mxu1  ;;  %v2386_v58 = vadd.f32 %v2381_v54, %v2233_v42 }
 0xfc2   : > { %v2389_v59 = vsel %vm881_vm1, %v2386_v58, 0.0 }
 0xfc3   : > { %2390 = vadd.xlane.f32.xlu0 %v2389_v59 }
0x1050   : > { %v2391_v60 = vpop.xlane.xlu0 %2390 }
0x1051   : > { %v2392_v61 = vmul.f32 0.03125, %v2391_v60 }
0x1053   : > { %v2393_v62 = vsub.f32 %v2386_v58, %v2392_v61 }
0x1055   : > { %v2394_v63 = vmul.f32 %v2393_v62, %v2393_v62 }
0x1057   : > { %v2395_v0 = vsel %vm881_vm1, %v2394_v63, 0.0 }
0x1058   : > { %2396 = vadd.xlane.f32.xlu0 %v2395_v0 }
0x10e5   : > { %v2397_v2 = vpop.xlane.xlu0 %2396 }
0x10e6   : > { %v2398_v7 = vmul.f32 0.03125, %v2397_v2 }
0x10e8   : > { %v2399_v8 = vadd.f32 1e-05, %v2398_v7 }
0x10ea   : > { %2863 = vrsqrt.f32 %v2399_v8 }
0x10f4   : > { %v2864_v9 = vpop.eup %2863 }
0x10f5   : > { %v2401_v11 = vmul.f32 %v2864_v9, %v2393_v62 }
0x10f7   : > { %v2408_v13 = vmul.f32 %v2561_v10, %v2401_v11 }
0x10f9   : > { %v2415_v14 = vadd.f32 %v2562_v12, %v2408_v13 }
0x10fb   : > { %v2416_v15 = vpack.c.bf16 %v2415_v14, %v2415_v14 }
0x10fd   : > { %2418 = vst.msk [vmem:[%s850_s28] sm:$0xf] %vm2417_vm7, %v2416_v15 }
0x10fe PF: > { %s37_s7 = sadd.s32 1, %s2871_s7  }
0x10ff   : > { %p34_p4 = scmp.ge.s32.totalorder %s37_s7, 4  }
0x1101   :  { %36 = sbr.rel (!%p34_p4) target bundleno = 13 (0xd), region = 164 }

// kernel: transformer_forward.11
= control target key start
LH: loop header
LB: loop body
LE: loop exit
PB: predicated region body
PF: predicated region fallthrough
CT: control target
= control target key end

     0   :  { %s3867_s0 = inlined_call_operand.vmem [shape: bf16[2,8,32], index: 0, kind: input, shape index: {}]   ;;  %s3868_s1 = inlined_call_operand.vmem [shape: bf16[2,8,32], index: 1, kind: input, shape index: {}]   ;;  %s3869_s2 = inlined_call_operand.vmem [shape: bf16[2,16,32], index: 2, kind: input, shape index: {}]   ;;  %s3870_s3 = inlined_call_operand.vmem [shape: bf16[32,64], index: 3, kind: input, shape index: {}]   ;;  %s3871_s4 = inlined_call_operand.vmem [shape: f32[1,64], index: 4, kind: input, shape index: {}]   ;;  %s3872_s5 = inlined_call_operand.vmem [shape: bf16[32,32], index: 5, kind: input, shape index: {}]   ;;  %s3873_s6 = inlined_call_operand.vmem [shape: f32[1,32], index: 6, kind: input, shape index: {}]   ;;  %s3874_s7 = inlined_call_operand.vmem [shape: bf16[32,32], index: 7, kind: input, shape index: {}]   ;;  %s3875_s8 = inlined_call_operand.vmem [shape: f32[1,32], index: 8, kind: input, shape index: {}]   ;;  %s3876_s9 = inlined_call_operand.vmem [shape: f32[1,32], index: 9, kind: input, shape index: {}]   ;;  %s3877_s10 = inlined_call_operand.vmem [shape: f32[1,32], index: 10, kind: input, shape index: {}]   ;;  %s3878_s11 = inlined_call_operand.vmem [shape: bf16[32,32], index: 11, kind: input, shape index: {}]   ;;  %s3879_s12 = inlined_call_operand.vmem [shape: f32[1,32], index: 12, kind: input, shape index: {}]   ;;  %s3880_s13 = inlined_call_operand.vmem [shape: bf16[32,64], index: 13, kind: input, shape index: {}]   ;;  %s3881_s14 = inlined_call_operand.vmem [shape: f32[1,64], index: 14, kind: input, shape index: {}]   ;;  %s3882_s15 = inlined_call_operand.vmem [shape: bf16[32,32], index: 15, kind: input, shape index: {}]   ;;  %s3883_s16 = inlined_call_operand.vmem [shape: f32[1,32], index: 16, kind: input, shape index: {}]   ;;  %s3884_s17 = inlined_call_operand.vmem [shape: f32[1,32], index: 17, kind: input, shape index: {}]   ;;  %s3885_s18 = inlined_call_operand.hbm [shape: f32[1,32], index: 18, kind: input, shape index: {}]   ;;  %s3886_s19 = inlined_call_operand.vmem [shape: bf16[32,64], index: 19, kind: input, shape index: {}]   ;;  %s3887_s20 = inlined_call_operand.hbm [shape: f32[1,64], index: 20, kind: input, shape index: {}]   ;;  %s3888_s21 = inlined_call_operand.vmem [shape: bf16[64,32], index: 21, kind: input, shape index: {}]   ;;  %s3889_s22 = inlined_call_operand.hbm [shape: f32[1,32], index: 22, kind: input, shape index: {}]   ;;  %s3890_s23 = inlined_call_operand.hbm [shape: f32[1,32], index: 23, kind: input, shape index: {}]   ;;  %s3891_s24 = inlined_call_operand.hbm [shape: f32[1,32], index: 24, kind: input, shape index: {}]   ;;  %s3892_s25 = inlined_call_operand.vmem [shape: f32[1,32], index: 25, kind: input, shape index: {}]   ;;  %s3893_s26 = inlined_call_operand.vmem [shape: f32[1,32], index: 26, kind: input, shape index: {}]   ;;  %s3894_s27 = inlined_call_operand.vmem [shape: f32[2,8,32], index: 27, kind: output, shape index: {}]  }
   0x1   :  { %3909 = sst [smem:[#allocation14_spill]] %s3867_s0 }
   0x2   :  { %3910 = sst [smem:[#allocation15_spill]] %s3868_s1 }
   0x3   :  { %3911 = sst [smem:[#allocation16_spill]] %s3869_s2 }
   0x4   :  { %3912 = sst [smem:[#allocation17_spill]] %s3870_s3 }
   0x5   :  { %3913 = sst [smem:[#allocation18_spill]] %s3871_s4 }
   0x6   :  { %3914 = sst [smem:[#allocation19_spill]] %s3872_s5 }
   0x7   :  { %3915 = sst [smem:[#allocation20_spill]] %s3873_s6 }
   0x8   :  { %3916 = sst [smem:[#allocation21_spill]] %s3874_s7 }
   0x9   :  { %3917 = sst [smem:[#allocation22_spill]] %s3875_s8 }
   0xa   :  { %3918 = sst [smem:[#allocation23_spill]] %s3876_s9 }
   0xb   :  { %3919 = sst [smem:[#allocation24_spill]] %s3877_s10 }
   0xc   :  { %3920 = sst [smem:[#allocation25_spill]] %s3878_s11 }
   0xd   :  { %3921 = sst [smem:[#allocation26_spill]] %s3893_s26 }
   0xe   :  { %3922 = sst [smem:[#allocation27_spill]] %s3894_s27 }
   0xf   :  { %32 = vsyncpa [#allocation3], 0 }
  0x10   :  { %33 = vsyncpa [#allocation5], 0 }
  0x11   :  { %34 = vsyncpa [#allocation8], 0  ;;  %s3387_s7 = smov 0  }
  0x12 LB: > { %3923 = sst [smem:[#allocation13_spill]] %s3228_s7  ;;  %s3230_s4 = smov [#allocation4]   ;;  %s3228_s7 = sphi %s3387_s7, %s40_s7  }
  0x13   : > { %s725_s8 = sshll.u32 %s3230_s4, 4  ;;  %s3393_s30 = sadd.s32 4294967295, %s3228_s7   ;;  %s3398_s8 = int_to_ptr.vmem [resolvable:$true] %s725_s8 }
  0x14   : > { %p2638_p0 = scmp.ge.s32.totalorder %s3228_s7, 1  ;;  %p653_p1 = scmp.lt.s32.totalorder %s3228_s7, 3 }
  0x15   : > { %p3900_p2 = scmp.eq.s32.totalorder %s3393_s30, 0  ;;  %s3231_s5 = smov [#allocation7]  }
  0x16   : > { %p3400_p3 = pnand %p2638_p0, %p653_p1  ;;  %s750_s28 = sshll.u32 %s3231_s5, 4  ;;  %s3406_s28 = int_to_ptr.vmem [resolvable:$true] %s750_s28 }
  0x17   : > { %s3232_s0 = smov [#allocation2]   ;;  %s3233_s1 = smov [#allocation6]  }
  0x18   : > { %s3924_s9 = scalar_select %p3400_p3, 1, 0 }
  0x19   : > { %p2960_p4 = pneg %p3400_p3  ;;  %s711_s10 = sshll.u32 %s3232_s0, 4  ;;  %s3414_s10 = int_to_ptr.vmem [resolvable:$true] %s711_s10 }
  0x1a   : > { %s739_s6 = sshll.u32 %s3233_s1, 4  ;;  %s3070_s3 = scalar_lea.hbm %s3887_s20, 16  ;;  %s3416_s6 = int_to_ptr.vmem [resolvable:$true] %s739_s6 }
  0x1b   : > { %p3410_p5 = pnand %p3900_p2, %p2960_p4  ;;  %p3071_p6 = scmp.ne.s32.totalorder %s3887_s20, %s3070_s3 }
  0x1c   : > { %p3077_p10 = scmp.lt.u32.totalorder %s3070_s3, %s3887_s20 }
  0x1d   : > { %p3426_p7 = pneg %p3410_p5 }
  0x1f   : > { %p3073_p8 = pnand %p3426_p7, %p3071_p6 }
  0x21   : > { %p3074_p9 = pneg %p3073_p8 }
  0x23   : > { %p3079_p11 = pnand %p3077_p10, %p3074_p9 }
  0x25   : > { %3082 = shalt.err (!%p3079_p11)
}
  0x26   : > { %s3083_s11 = scalar_lea.vmem %s3398_s8, 16  ;;  %s3090_s2 = scalar_lea.vmem %s3398_s8, 32 }
  0x27   : > { %p3084_p12 = scmp.ne.s32.totalorder %s3398_s8, %s3083_s11  ;;  %p3091_p1 = scmp.lt.s32.totalorder %s3398_s8, %s3398_s8 }
  0x28   : > { %p3092_p4 = scmp.lt.s32.totalorder %s3090_s2, %s3083_s11 }
  0x29   : > { %p3086_p13 = pnand %p3084_p12, %p3426_p7 }
  0x2a   : > { %p3093_p6 = por %p3092_p4, %p3091_p1 }
  0x2b   : > { %p3087_p0 = pneg %p3086_p13 }
  0x2d   : > { %p3094_p8 = pnand %p3093_p6, %p3087_p0 }
  0x2f   : > { %3097 = shalt.err (!%p3094_p8)
}
  0x30   : > { %2966 = dma.hbm_to_vmem [thread:$0]  (!%p3410_p5), %s3887_s20, 16, %s3398_s8, [#allocation5]  }
  0x31   : > { %s3098_s1 = scalar_lea.hbm %s3890_s23, 16 }
  0x32   : > { %p3099_p9 = scmp.ne.s32.totalorder %s3890_s23, %s3098_s1  ;;  %p3105_p12 = scmp.lt.u32.totalorder %s3098_s1, %s3890_s23 }
  0x34   : > { %p3101_p10 = pnand %p3099_p9, %p3426_p7 }
  0x36   : > { %p3102_p11 = pneg %p3101_p10 }
  0x38   : > { %p3107_p13 = pnand %p3105_p12, %p3102_p11 }
  0x3a   : > { %3110 = shalt.err (!%p3107_p13)
}
  0x3b   : > { %s3111_s8 = scalar_lea.vmem %s3406_s28, 16  ;;  %s3118_s26 = scalar_lea.vmem %s3406_s28, 32 }
  0x3c   : > { %p3112_p0 = scmp.ne.s32.totalorder %s3406_s28, %s3111_s8  ;;  %p3119_p6 = scmp.lt.s32.totalorder %s3406_s28, %s3406_s28 }
  0x3d   : > { %p3120_p8 = scmp.lt.s32.totalorder %s3118_s26, %s3111_s8 }
  0x3e   : > { %p3114_p1 = pnand %p3112_p0, %p3426_p7 }
  0x3f   : > { %p3121_p9 = por %p3120_p8, %p3119_p6 }
  0x40   : > { %p3115_p4 = pneg %p3114_p1 }
  0x42   : > { %p3122_p10 = pnand %p3121_p9, %p3115_p4 }
  0x44   : > { %3125 = shalt.err (!%p3122_p10)
}
  0x45   : > { %2972 = dma.hbm_to_vmem [thread:$0]  (!%p3410_p5), %s3890_s23, 16, %s3406_s28, [#allocation8]  }
  0x46   : > { %s3126_s5 = scalar_lea.hbm %s3885_s18, 16 }
  0x47   : > { %p3127_p11 = scmp.ne.s32.totalorder %s3885_s18, %s3126_s5  ;;  %p3133_p0 = scmp.lt.u32.totalorder %s3126_s5, %s3885_s18 }
  0x49   : > { %p3129_p12 = pnand %p3127_p11, %p3426_p7 }
  0x4b   : > { %p3130_p13 = pneg %p3129_p12 }
  0x4d   : > { %p3135_p1 = pnand %p3133_p0, %p3130_p13 }
  0x4f   : > { %3138 = shalt.err (!%p3135_p1)
}
  0x50   : > { %s3139_s28 = scalar_lea.vmem %s3414_s10, 16  ;;  %s3146_s26 = scalar_lea.vmem %s3414_s10, 32 }
  0x51   : > { %p3140_p4 = scmp.ne.s32.totalorder %s3414_s10, %s3139_s28  ;;  %p3147_p9 = scmp.lt.s32.totalorder %s3414_s10, %s3414_s10 }
  0x52   : > { %p3148_p10 = scmp.lt.s32.totalorder %s3146_s26, %s3139_s28 }
  0x53   : > { %p3142_p6 = pnand %p3140_p4, %p3426_p7 }
  0x54   : > { %p3149_p11 = por %p3148_p10, %p3147_p9 }
  0x55   : > { %p3143_p8 = pneg %p3142_p6 }
  0x57   : > { %p3150_p12 = pnand %p3149_p11, %p3143_p8 }
  0x59   : > { %3153 = shalt.err (!%p3150_p12)
}
  0x5a   : > { %2963 = dma.hbm_to_vmem [thread:$0]  (!%p3410_p5), %s3885_s18, 16, %s3414_s10, [#allocation3]  }
  0x5b   : > { %s3154_s5 = scalar_lea.hbm %s3889_s22, 16 }
  0x5c   : > { %p3155_p13 = scmp.ne.s32.totalorder %s3889_s22, %s3154_s5  ;;  %p3161_p4 = scmp.lt.u32.totalorder %s3154_s5, %s3889_s22 }
  0x5e   : > { %p3157_p0 = pnand %p3155_p13, %p3426_p7 }
  0x60   : > { %p3158_p1 = pneg %p3157_p0 }
  0x62   : > { %p3163_p6 = pnand %p3161_p4, %p3158_p1 }
  0x64   : > { %3166 = shalt.err (!%p3163_p6)
}
  0x65   : > { %s3167_s10 = scalar_lea.vmem %s3416_s6, 16  ;;  %s3174_s28 = scalar_lea.vmem %s3416_s6, 32 }
  0x66   : > { %p3168_p8 = scmp.ne.s32.totalorder %s3416_s6, %s3167_s10  ;;  %p3175_p11 = scmp.lt.s32.totalorder %s3416_s6, %s3416_s6 }
  0x67   : > { %p3176_p12 = scmp.lt.s32.totalorder %s3174_s28, %s3167_s10 }
  0x68   : > { %p3170_p9 = pnand %p3168_p8, %p3426_p7 }
  0x69   : > { %p3177_p13 = por %p3176_p12, %p3175_p11 }
  0x6a   : > { %p3171_p10 = pneg %p3170_p9 }
  0x6c   : > { %p3178_p0 = pnand %p3177_p13, %p3171_p10 }
  0x6e   : > { %3181 = shalt.err (!%p3178_p0)
}
  0x6f   : > { %2969 = dma.hbm_to_vmem [thread:$0]  (!%p3410_p5), %s3889_s22, 16, %s3416_s6, [#allocation5]  }
  0x70   : > { %s3234_s7 = smov [#allocation9]   ;;  %s3182_s1 = scalar_lea.hbm %s3891_s24, 16 }
  0x71   : > { %s761_s3 = sshll.u32 %s3234_s7, 4  ;;  %p3183_p1 = scmp.ne.s32.totalorder %s3891_s24, %s3182_s1  ;;  %s762_s3 = int_to_ptr.vmem [resolvable:$true] %s761_s3 }
  0x72   : > { %p3189_p8 = scmp.lt.u32.totalorder %s3182_s1, %s3891_s24 }
  0x73   : > { %p3185_p4 = pnand %p3183_p1, %p3426_p7 }
  0x75   : > { %p3186_p6 = pneg %p3185_p4 }
  0x77   : > { %p3191_p9 = pnand %p3189_p8, %p3186_p6 }
  0x79   : > { %3194 = shalt.err (!%p3191_p9)
}
  0x7a   : > { %s3195_s6 = scalar_lea.vmem %s762_s3, 16  ;;  %s3202_s28 = scalar_lea.vmem %s762_s3, 32 }
  0x7b   : > { %p3196_p10 = scmp.ne.s32.totalorder %s762_s3, %s3195_s6  ;;  %p3203_p13 = scmp.lt.s32.totalorder %s762_s3, %s762_s3 }
  0x7c   : > { %p3204_p0 = scmp.lt.s32.totalorder %s3202_s28, %s3195_s6 }
  0x7d   : > { %p3198_p11 = pnand %p3196_p10, %p3426_p7 }
  0x7e   : > { %p3205_p2 = por %p3204_p0, %p3203_p13 }
  0x7f   : > { %p3199_p12 = pneg %p3198_p11 }
  0x81   : > { %p3206_p3 = pnand %p3205_p2, %p3199_p12 }
  0x83   : > { %3209 = shalt.err (!%p3206_p3)
}
  0x84   : > { %2975 = dma.hbm_to_vmem [thread:$0]  (!%p3410_p5), %s3891_s24, 16, %s762_s3, [#allocation8]  }
  0x85   : > { %p3927_p1 = scmp.ne.s32.totalorder %s3924_s9, 0 }
  0x86   : > { %p3928_p4 = scmp.eq.s32.totalorder (!%p3927_p1), %s3393_s30, 0 }
  0x87   : > { %802 = sbr.rel (%p3927_p1) target bundleno = 4791 (0x12b7), region = 128 }
  0x8e   : > { %3215 = dma.done.wait (%p3928_p4), [#allocation3], 16   ;;  %p3929_p7 = pmov %p3928_p4 }
  0x8f   : > { %p3930_p6 = pmov %p3928_p4 }
  0x90   : > { %3217 = vsyncadd (%p3929_p7), [#allocation3], 4294967280 }
  0x91   : > { %3219 = dma.done.wait (%p3930_p6), [#allocation5], 32   ;;  %p3931_p2 = pmov %p3928_p4 }
  0x93   : > { %3221 = vsyncadd (%p3931_p2), [#allocation5], 4294967264  ;;  %p3932_p3 = pmov %p3931_p2 }
  0x94   : > { %p3933_p5 = pmov %p3931_p2 }
  0x95   : > { %3223 = dma.done.wait (%p3932_p3), [#allocation8], 32  }
  0x96   : > { %3225 = vsyncadd (%p3933_p5), [#allocation8], 4294967264  ;;  %p897_p8 = scmp.lt.s32.totalorder %s3393_s30, 1  ;;  %v3235_v0 = vmov 0.0   ;;  %vm3236_vm0 = vmmov 0   ;;  %s3934_s7 = sld [smem:[#allocation14_spill]] }
  0x97   : > { %2776 = vmatprep.subr.bf16.mxu0 %v3235_v0  ;;  %2780 = vmatprep.mubr.msk.bf16.mxu0 %vm3236_vm0, %v3235_v0  ;;  %s3935_s1 = sld [smem:[#allocation15_spill]]  ;;  %s3936_s10 = sld [smem:[#allocation17_spill]]  ;;  %vm944_vm1 = vcmask 261120   ;;  %vm1059_vm2 = vcmask 64512   ;;  %vm1121_vm3 = vcmask 1043456   ;;  %vm1509_vm4 = vcmask 130048  }
  0x98   : > { %s3957_s30 = smov (!%p897_p8, %s3393_s30), 1  ;;  %2784 = vmatprep.subr.bf16.mxu1 %v3235_v0  ;;  %2788 = vmatprep.mubr.msk.bf16.mxu1 %vm3236_vm0, %v3235_v0  ;;  %s3237_s29 = smov 120   ;;  %vm1511_vm5 = vcmask 195584   ;;  %vm2405_vm6 = vcmask 523264  }
  0x99   : > { %s2651_s9 = sshll.u32 %s3957_s30, 2  ;;  %s3907_s0 = smov 96  }
  0x9a   : > { %s3906_s4 = smov 72   ;;  %s3242_s5 = smov 112  }
  0x9b   : > { %s3938_s8 = sld [smem:[#allocation19_spill]]  ;;  %s3940_s6 = sld [smem:[#allocation21_spill]] }
  0x9c   : > { %s900_s3 = scalar_lea.vmem %s3934_s7, %s2651_s9  ;;  %s3905_s7 = smov 80  }
  0x9d   : > { %s904_s11 = scalar_lea.vmem %s3935_s1, %s2651_s9  ;;  %v3011_v1 = vld [vmem:[%s3936_s10] sm:$0xff]   ;;  %v3012_v2 = vld [vmem:[%s3936_s10 + $0x8] sm:$0xff]   ;;  %s3937_s9 = sld [smem:[#allocation18_spill]] }
  0x9e   : > { %2777 = vmatpush3.bf16.msra.mxu0 %v3011_v1  ;;  %v3575_v3 = vld [vmem:[%s900_s3] sm:$0xf]  ;;  %s3908_s3 = smov 88   ;;  %s3243_s1 = smov 104  }
  0x9f   : > { %v3577_v4 = vld [vmem:[%s904_s11] sm:$0xf]  ;;  %2778 = vmatprep.subr.bf16.mxu0 %v3235_v0  ;;  %v916_v5 = vunpack.c.l.bf16 %v3575_v3  ;;  %s3904_s28 = smov 8   ;;  %s3903_s26 = smov 16  }
  0xa0   : > { %v918_v6 = vunpack.c.l.bf16 %v3577_v4  ;;  %s3902_s11 = smov 24   ;;  %s3945_s27 = sld [smem:[#allocation24_spill]] }
  0xa1   : > { %v3013_v16 = vld [vmem:[%s3938_s8] sm:$0xff]   ;;  %v3014_v17 = vld [vmem:[%s3938_s8 + $0x8] sm:$0xff]  }
  0xa2   : > { %v919_v7 = vadd.f32 %v918_v6, %v916_v5  ;;  %2779 = vmatpush3.bf16.msra.mxu0 %v3012_v2  ;;  %2785 = vmatpush3.bf16.msra.mxu1 %v3013_v16 }
  0xa3   : > { %2792 = vmatprep.subr.bf16.mxu0 %v3235_v0  ;;  %v2656_v9 = vld [vmem:[%s3937_s9] ss:$0 sm:$0xff]  ;;  %2786 = vmatprep.subr.bf16.mxu1 %v3235_v0  ;;  %s3939_s9 = sld [smem:[#allocation20_spill]] }
  0xa4   : > { %v920_v8 = vpack.c.bf16 %v919_v7, %v919_v7 }
  0xa6   : > { %2781 = vmatmul.mubr.msk.bf16.vlgmr.msra.gmra.mrb[0].mxu0 %vm944_vm1, %v920_v8  ;;  %2787 = vmatpush3.bf16.msra.mxu1 %v3014_v17 }
  0xa7   : > { %2794 = vmatprep.mubr.msk.bf16.mxu0 %vm3236_vm0, %v3235_v0  ;;  %2798 = vmatprep.subr.bf16.mxu1 %v3235_v0 }
  0xa9   : > { %2789 = vmatmul.mubr.msk.bf16.vlgmr.msra.gmra.mrb[0].mxu1 %vm944_vm1, %v3575_v3  ;;  %v2660_v49 = vld [vmem:[%s3939_s9] ss:$0 sm:$0xff]  ;;  %s3941_s9 = sld [smem:[#allocation22_spill]]  ;;  %v3018_v3 = vld [vmem:[%s3880_s13 + $0x8] sm:$0xff]  }
  0xaa   : > { %2800 = vmatprep.mubr.msk.bf16.mxu1 %vm3236_vm0, %v3235_v0 }
 0x179   : > { %v982_v10 = vpop.f32.mrb[0].mxu0 }
 0x17a   : > { %v983_v11 = vadd.f32 %v2656_v9, %v982_v10  ;;  %v2782_v12 = vpop.f32.mrb[1].mxu0 }
 0x17b   : > { %v985_v13 = vpop.f32.mrb[2].mxu0 }
 0x17c   : > { %v988_v14 = vpack.c.bf16 %v983_v11, %v983_v11  ;;  %v2783_v15 = vpop.f32.mrb[3].mxu0  ;;  %v1049_v50 = vpop.f32.mrb[0].mxu1 }
 0x17d   : > { %v1050_v51 = vadd.f32 %v2660_v49, %v1049_v50  ;;  %v2790_v52 = vpop.f32.mrb[1].mxu1 }
 0x17e   : > { %1165 = vrot.lane.b32.xlu1 %v988_v14, %s3237_s29  ;;  %1057 = vrot.lane.b32.xlu0 %v988_v14, %s3907_s0  ;;  %v1052_v53 = vpop.f32.mrb[2].mxu1 }
 0x17f   : > { %v2791_v54 = vpop.f32.mrb[3].mxu1  ;;  %v1055_v55 = vpack.c.bf16 %v1050_v51, %v1050_v51  ;;  %v3016_v53 = vld [vmem:[%s3940_s6 + $0x8] sm:$0xff]  }
 0x181   : > { %v1123_v56 = vsel %vm1121_vm3, %v1055_v55, 0 }
 0x182   : > { %1278 = vrot.lane.b32.xlu1 %v988_v14, %s3905_s7  ;;  %1167 = vrot.lane.b32.xlu0 %v988_v14, %s3908_s3  ;;  %s3943_s3 = sld [smem:[#allocation25_spill]]  ;;  %s3952_s7 = smov 24  }
 0x183   : > { %2799 = vmatpush3.bf16.msra.mxu1 %v1123_v56 }
 0x184   : > { %2810 = vmatprep.subr.bf16.mxu1 %v3235_v0 }
 0x186   : > { %1388 = vrot.lane.b32.xlu1 %v988_v14, %s3906_s4  ;;  %1276 = vrot.lane.b32.xlu0 %v988_v14, %s3242_s5  ;;  %s3942_s4 = sld [smem:[#allocation16_spill]] }
 0x18a   : > { %1386 = vrot.lane.b32.xlu0 %v988_v14, %s3243_s1 }
 0x1f0   : > { %v1058_v18 = vpop.permute.xlu0 %1057  ;;  %v1166_v21 = vpop.permute.xlu1 %1165 }
 0x1f1   : > { %v1064_v19 = vsel %vm1059_vm2, %v1058_v18, 0 }
 0x1f2   : > { %2793 = vmatpush3.bf16.xpose.msra.mxu0 %v1064_v19 }
 0x1f3   : > { %2804 = vmatprep.subr.bf16.mxu0 %v3235_v0 }
 0x1f4   : > { %v1168_v20 = vpop.permute.xlu0 %1167  ;;  %v1279_v23 = vpop.permute.xlu1 %1278 }
 0x1f5   : > { %v1173_v22 = vsel %vm1059_vm2, %v1168_v20, 0  ;;  %v1284_v24 = vsel %vm1059_vm2, %v1279_v23, 0 }
 0x1f8   : > { %v1389_v25 = vpop.permute.xlu1 %1388  ;;  %v1277_v26 = vpop.permute.xlu0 %1276 }
 0x1f9   : > { %2795 = vmatmul.mubr.msk.bf16.vlgmr.msra.gmra.mrb[4].mxu0 %vm1059_vm2, %v988_v14  ;;  %v1394_v27 = vsel %vm1059_vm2, %v1389_v25, 0 }
 0x1fa   : > { %2805 = vmatpush3.bf16.xpose.msra.mxu0 %v1173_v22  ;;  %2806 = vmatprep.mubr.msk.bf16.mxu0 %vm3236_vm0, %v3235_v0 }
 0x1fb   : > { %2816 = vmatprep.subr.bf16.mxu0 %v3235_v0 }
 0x1fc   : > { %v1387_v28 = vpop.permute.xlu0 %1386 }
 0x201   : > { %2807 = vmatmul.mubr.msk.bf16.vlgmr.msra.gmra.mrb[8].mxu0 %vm1059_vm2, %v1166_v21 }
 0x202   : > { %2817 = vmatpush3.bf16.xpose.msra.mxu0 %v1284_v24  ;;  %2818 = vmatprep.mubr.msk.bf16.mxu0 %vm3236_vm0, %v3235_v0 }
 0x203   : > { %2828 = vmatprep.subr.bf16.mxu0 %v3235_v0 }
 0x209   : > { %2819 = vmatmul.mubr.msk.bf16.vlgmr.msra.gmra.mrb[12].mxu0 %vm1059_vm2, %v1277_v26 }
 0x20a   : > { %2829 = vmatpush3.bf16.xpose.msra.mxu0 %v1394_v27  ;;  %2830 = vmatprep.mubr.msk.bf16.mxu0 %vm3236_vm0, %v3235_v0 }
 0x20b   : > { %2840 = vmatprep.subr.bf16.mxu0 %v3235_v0 }
 0x211   : > { %2831 = vmatmul.mubr.msk.bf16.vlgmr.msra.gmra.mrb[16].mxu0 %vm1059_vm2, %v1387_v28 }
 0x212   : > { %2844 = vmatprep.mubr.msk.bf16.mxu0 %vm3236_vm0, %v3235_v0 }
 0x2cc   : > { %v1100_v29 = vpop.f32.mrb[4].mxu0 }
 0x2cd   : > { %v2796_v30 = vpop.f32.mrb[5].mxu0  ;;  %v1106_v31 = vsel %vm1059_vm2, %v1100_v29, -inf }
 0x2ce   : > { %1107 = vmax.xlane.f32.xlu1 %v1106_v31  ;;  %v1103_v32 = vpop.f32.mrb[6].mxu0 }
 0x2cf   : > { %v2797_v33 = vpop.f32.mrb[7].mxu0 }
 0x2d4   : > { %v1209_v34 = vpop.f32.mrb[8].mxu0 }
 0x2d5   : > { %v2808_v35 = vpop.f32.mrb[9].mxu0  ;;  %v1215_v36 = vsel %vm1059_vm2, %v1209_v34, -inf }
 0x2d6   : > { %1216 = vmax.xlane.f32.xlu0 %v1215_v36  ;;  %v1212_v37 = vpop.f32.mrb[10].mxu0 }
 0x2d7   : > { %v2809_v38 = vpop.f32.mrb[11].mxu0 }
 0x2dc   : > { %v1320_v39 = vpop.f32.mrb[12].mxu0 }
 0x2dd   : > { %v2820_v40 = vpop.f32.mrb[13].mxu0  ;;  %v1326_v41 = vsel %vm1059_vm2, %v1320_v39, -inf }
 0x2de   : > { %1327 = vmax.xlane.f32.xlu0 %v1326_v41  ;;  %v1323_v42 = vpop.f32.mrb[14].mxu0 }
 0x2df   : > { %v2821_v43 = vpop.f32.mrb[15].mxu0 }
 0x2e4   : > { %v1430_v44 = vpop.f32.mrb[16].mxu0 }
 0x2e5   : > { %v2832_v45 = vpop.f32.mrb[17].mxu0  ;;  %v1436_v46 = vsel %vm1059_vm2, %v1430_v44, -inf }
 0x2e6   : > { %1437 = vmax.xlane.f32.xlu1 %v1436_v46  ;;  %v1433_v47 = vpop.f32.mrb[18].mxu0 }
 0x2e7   : > { %v2833_v48 = vpop.f32.mrb[19].mxu0 }
 0x35b   : > { %v1108_v57 = vpop.xlane.xlu1 %1107 }
 0x35c   : > { %v1109_v58 = vsub.f32 %v1100_v29, %v1108_v57 }
 0x35e   : > { %v1110_v59 = vmul.f32 1.442695, %v1109_v58 }
 0x360   : > { %3030 = vpow2.f32 %v1110_v59 }
 0x363   : > { %v1217_v60 = vpop.xlane.xlu0 %1216 }
 0x364   : > { %v1218_v61 = vsub.f32 %v1209_v34, %v1217_v60 }
 0x366   : > { %v1219_v62 = vmul.f32 1.442695, %v1218_v61 }
 0x368   : > { %3032 = vpow2.f32 %v1219_v62 }
 0x36a   : > { %v3031_v63 = vpop.eup %3030 }
 0x36b   : > { %v1328_v1 = vpop.xlane.xlu0 %1327  ;;  %v1112_v2 = vsel %vm1059_vm2, %v3031_v63, 0.0 }
 0x36c   : > { %v1329_v7 = vsub.f32 %v1320_v39, %v1328_v1  ;;  %1113 = vadd.xlane.f32.xlu0 %v1112_v2  ;;  %v2672_v2 = vld [vmem:[%s3941_s9] ss:$0 sm:$0xff] }
 0x36e   : > { %v1330_v8 = vmul.f32 1.442695, %v1329_v7 }
 0x370   : > { %3034 = vpow2.f32 %v1330_v8 }
 0x372   : > { %v3033_v9 = vpop.eup %3032 }
 0x373   : > { %v1221_v10 = vsel %vm1059_vm2, %v3033_v9, 0.0  ;;  %v1438_v13 = vpop.xlane.xlu1 %1437 }
 0x374   : > { %1222 = vadd.xlane.f32.xlu1 %v1221_v10  ;;  %v1439_v14 = vsub.f32 %v1430_v44, %v1438_v13  ;;  %v3015_v44 = vld [vmem:[%s3940_s6] sm:$0xff]  }
 0x375   : > { %2841 = vmatpush3.bf16.msra.mxu0 %v3015_v44 }
 0x376   : > { %v1440_v15 = vmul.f32 1.442695, %v1439_v14  ;;  %2842 = vmatprep.subr.bf16.mxu0 %v3235_v0 }
 0x378   : > { %3036 = vpow2.f32 %v1440_v15 }
 0x379   : > { %2843 = vmatpush3.bf16.msra.mxu0 %v3016_v53 }
 0x37a   : > { %v3035_v11 = vpop.eup %3034  ;;  %2856 = vmatprep.subr.bf16.mxu0 %v3235_v0 }
 0x37b   : > { %v1332_v12 = vsel %vm1059_vm2, %v3035_v11, 0.0 }
 0x37c   : > { %1333 = vadd.xlane.f32.xlu0 %v1332_v12 }
 0x382   : > { %v3037_v16 = vpop.eup %3036 }
 0x383   : > { %v1442_v17 = vsel %vm1059_vm2, %v3037_v16, 0.0 }
 0x385   : > { %1338 = vrot.lane.b32.xlu1 %v1055_v55, %s3242_s5 }
 0x392   : > { %1228 = vrot.lane.b32.xlu0 %v1055_v55, %s3237_s29 }
 0x3a9   : > { %1443 = vadd.xlane.f32.xlu1 %v1442_v17 }
 0x3ba   : > { %1448 = vrot.lane.b32.xlu1 %v1055_v55, %s3243_s1 }
 0x3f9   : > { %v1114_v18 = vpop.xlane.xlu0 %1113 }
 0x3fa   : > { %3038 = vrcp.f32 %v1114_v18 }
 0x401   : > { %v1223_v19 = vpop.xlane.xlu1 %1222 }
 0x402   : > { %3040 = vrcp.f32 %v1223_v19  ;;  %v3017_v19 = vld [vmem:[%s3880_s13] sm:$0xff]  }
 0x404   : > { %v3039_v20 = vpop.eup %3038 }
 0x405   : > { %v1116_v21 = vmul.f32 %v3039_v20, %v3031_v63  ;;  %v1339_v28 = vpop.permute.xlu1 %1338  ;;  %v3020_v20 = vld [vmem:[%s3943_s3] sm:$0xff]  }
 0x406   : > { %v1344_v30 = vsel %vm1121_vm3, %v1339_v28, 0  ;;  %v2677_v28 = vld [vmem:[%s3945_s27] ss:$0 sm:$0xff] }
 0x407   : > { %v1117_v22 = vpack.c.bf16 %v1116_v21, %v1116_v21  ;;  %v3021_v21 = vld [vmem:[%s3943_s3 + $0x8] sm:$0xff]  }
 0x409   : > { %2801 = vmatmul.mubr.msk.bf16.vlgmr.msra.gmra.mrb[4].mxu1 %vm1059_vm2, %v1117_v22  ;;  %v1334_v23 = vpop.xlane.xlu0 %1333 }
 0x40a   : > { %3042 = vrcp.f32 %v1334_v23  ;;  %2812 = vmatprep.mubr.msk.bf16.mxu1 %vm3236_vm0, %v3235_v0 }
 0x40c   : > { %v3041_v24 = vpop.eup %3040 }
 0x40d   : > { %v1225_v25 = vmul.f32 %v3041_v24, %v3033_v9  ;;  %v1229_v26 = vpop.permute.xlu0 %1228 }
 0x40e   : > { %v1234_v27 = vsel %vm1121_vm3, %v1229_v26, 0 }
 0x40f   : > { %2811 = vmatpush3.bf16.msra.mxu1 %v1234_v27  ;;  %v1226_v29 = vpack.c.bf16 %v1225_v25, %v1225_v25 }
 0x410   : > { %2822 = vmatprep.subr.bf16.mxu1 %v3235_v0 }
 0x412   : > { %2813 = vmatmul.mubr.msk.bf16.vlgmr.msra.gmra.mrb[8].mxu1 %vm1059_vm2, %v1226_v29 }
 0x413   : > { %2823 = vmatpush3.bf16.msra.mxu1 %v1344_v30  ;;  %2824 = vmatprep.mubr.msk.bf16.mxu1 %vm3236_vm0, %v3235_v0 }
 0x414   : > { %v3043_v31 = vpop.eup %3042  ;;  %2834 = vmatprep.subr.bf16.mxu1 %v3235_v0 }
 0x415   : > { %v1336_v32 = vmul.f32 %v3043_v31, %v3035_v11 }
 0x417   : > { %v1337_v33 = vpack.c.bf16 %v1336_v32, %v1336_v32 }
 0x41a   : > { %2825 = vmatmul.mubr.msk.bf16.vlgmr.msra.gmra.mrb[12].mxu1 %vm1059_vm2, %v1337_v33  ;;  %v2682_v33 = vld [vmem:[%s3881_s14] ss:$0 sm:$0xff] }
 0x41b   : > { %2836 = vmatprep.mubr.msk.bf16.mxu1 %vm3236_vm0, %v3235_v0 }
 0x436   : > { %v1444_v34 = vpop.xlane.xlu1 %1443 }
 0x437   : > { %3044 = vrcp.f32 %v1444_v34 }
 0x43a   : > { %v1449_v35 = vpop.permute.xlu1 %1448 }
 0x43b   : > { %v1454_v36 = vsel %vm1121_vm3, %v1449_v35, 0 }
 0x43c   : > { %2835 = vmatpush3.bf16.msra.mxu1 %v1454_v36 }
 0x43d   : > { %2848 = vmatprep.subr.bf16.mxu1 %v3235_v0 }
 0x441   : > { %v3045_v37 = vpop.eup %3044 }
 0x442   : > { %v1446_v38 = vmul.f32 %v3045_v37, %v3037_v16 }
 0x444   : > { %v1447_v39 = vpack.c.bf16 %v1446_v38, %v1446_v38 }
 0x446   : > { %2837 = vmatmul.mubr.msk.bf16.vlgmr.msra.gmra.mrb[16].mxu1 %vm1059_vm2, %v1447_v39 }
 0x447   : > { %2852 = vmatprep.mubr.msk.bf16.mxu1 %vm3236_vm0, %v3235_v0  ;;  %2849 = vmatpush3.bf16.msra.mxu1 %v3020_v20 }
 0x448   : > { %2850 = vmatprep.subr.bf16.mxu1 %v3235_v0 }
 0x44b   : > { %2851 = vmatpush3.bf16.msra.mxu1 %v3021_v21 }
 0x44c   : > { %2864 = vmatprep.subr.bf16.mxu1 %v3235_v0 }
 0x4dc   : > { %v1159_v40 = vpop.f32.mrb[4].mxu1 }
 0x4dd   : > { %v2802_v41 = vpop.f32.mrb[5].mxu1 }
 0x4de   : > { %v1162_v42 = vpop.f32.mrb[6].mxu1 }
 0x4df   : > { %v2803_v43 = vpop.f32.mrb[7].mxu1 }
 0x4e5   : > { %v1270_v45 = vpop.f32.mrb[8].mxu1 }
 0x4e6   : > { %1497 = vrot.lane.b32.xlu0 %v1270_v45, %s3904_s28  ;;  %v2814_v46 = vpop.f32.mrb[9].mxu1  ;;  %s3950_s28 = smov 8  }
 0x4e7   : > { %v1273_v47 = vpop.f32.mrb[10].mxu1 }
 0x4e8   : > { %v2815_v48 = vpop.f32.mrb[11].mxu1 }
 0x4ed   : > { %v1380_v49 = vpop.f32.mrb[12].mxu1 }
 0x4ee   : > { %1501 = vrot.lane.b32.xlu1 %v1380_v49, %s3903_s26  ;;  %v2826_v50 = vpop.f32.mrb[13].mxu1  ;;  %s2717_s26 = sshll.u32 %s3957_s30, 3 }
 0x4ef   : > { %v1383_v51 = vpop.f32.mrb[14].mxu1  ;;  %s909_s0 = scalar_lea.vmem %s3942_s4, %s2717_s26  ;;  %s3944_s4 = sld [smem:[#allocation23_spill]] }
 0x4f0   : > { %v2827_v52 = vpop.f32.mrb[15].mxu1 }
 0x4f5   : > { %v2676_v26 = vld [vmem:[%s3944_s4] ss:$0 sm:$0xff]  ;;  %s3949_s4 = smov 80  }
 0x519   : > { %v1490_v54 = vpop.f32.mrb[16].mxu1 }
 0x51a   : > { %1505 = vrot.lane.b32.xlu0 %v1490_v54, %s3902_s11  ;;  %v2838_v55 = vpop.f32.mrb[17].mxu1 }
 0x51b   : > { %v1493_v56 = vpop.f32.mrb[18].mxu1 }
 0x51c   : > { %v2839_v57 = vpop.f32.mrb[19].mxu1 }
 0x558   : > { %v1498_v58 = vpop.permute.xlu0 %1497 }
 0x559   : > { %v1508_v60 = vsel %vm1059_vm2, %v1159_v40, %v1498_v58 }
 0x560   : > { %v1502_v59 = vpop.permute.xlu1 %1501 }
 0x561   : > { %v1510_v61 = vsel %vm1509_vm4, %v1508_v60, %v1502_v59 }
 0x58c   : > { %v1506_v62 = vpop.permute.xlu0 %1505 }
 0x58d   : > { %v1512_v63 = vsel %vm1511_vm5, %v1510_v61, %v1506_v62 }
 0x58e   : > { %v1513_v1 = vpack.c.bf16 %v1512_v63, %v1512_v63 }
 0x590   : > { %2845 = vmatmul.mubr.msk.bf16.vlgmr.msra.gmra.mrb[20].mxu0 %vm944_vm1, %v1513_v1 }
 0x591   : > { %2860 = vmatprep.mubr.msk.bf16.mxu0 %vm3236_vm0, %v3235_v0  ;;  %2857 = vmatpush3.bf16.msra.mxu0 %v3017_v19 }
 0x592   : > { %2858 = vmatprep.subr.bf16.mxu0 %v3235_v0 }
 0x595   : > { %2859 = vmatpush3.bf16.msra.mxu0 %v3018_v3 }
 0x596   : > { %2870 = vmatprep.subr.bf16.mxu0 %v3235_v0 }
 0x663   : > { %v1574_v7 = vpop.f32.mrb[20].mxu0 }
 0x664   : > { %v1575_v8 = vadd.f32 %v2672_v2, %v1574_v7  ;;  %v2846_v9 = vpop.f32.mrb[21].mxu0 }
 0x665   : > { %v1577_v10 = vpop.f32.mrb[22].mxu0 }
 0x666   : > { %v2847_v11 = vpop.f32.mrb[23].mxu0  ;;  %v1580_v12 = vadd.f32 %v1575_v8, %v916_v5  ;;  %v3019_v5 = vld [vmem:[%s909_s0] sm:$0xff]   ;;  %s3951_s0 = smov 16  }
 0x667   : > { %2861 = vmatmul.mubr.msk.bf16.vlgmr.msra.gmra.mrb[24].mxu0 %vm944_vm1, %v3019_v5 }
 0x668   : > { %v1583_v13 = vsel %vm944_vm1, %v1580_v12, 0.0  ;;  %2872 = vmatprep.mubr.msk.bf16.mxu0 %vm3236_vm0, %v3235_v0 }
 0x669   : > { %1584 = vadd.xlane.f32.xlu1 %v1583_v13 }
 0x6f6   : > { %v1585_v14 = vpop.xlane.xlu1 %1584 }
 0x6f7   : > { %v1587_v15 = vmul.f32 0.03125, %v1585_v14 }
 0x6f9   : > { %v1588_v16 = vsub.f32 %v1580_v12, %v1587_v15 }
 0x6fb   : > { %v1589_v17 = vmul.f32 %v1588_v16, %v1588_v16 }
 0x6fd   : > { %v1590_v18 = vsel %vm944_vm1, %v1589_v17, 0.0 }
 0x6fe   : > { %1591 = vadd.xlane.f32.xlu0 %v1590_v18 }
 0x73a   : > { %v1747_v34 = vpop.f32.mrb[24].mxu0 }
 0x73b   : > { %v1748_v35 = vadd.f32 %v2682_v33, %v1747_v34  ;;  %v2862_v36 = vpop.f32.mrb[25].mxu0 }
 0x73c   : > { %v1750_v37 = vpop.f32.mrb[26].mxu0 }
 0x73d   : > { %v1751_v38 = vadd.f32 %v2682_v33, %v1750_v37  ;;  %v2863_v39 = vpop.f32.mrb[27].mxu0 }
 0x73f   : > { %v3732_v40 = vpack.c.bf16 %v1751_v38, %v1748_v35 }
 0x741   : > { %1863 = vrot.lane.b32.xlu0 %v3732_v40, %s3237_s29  ;;  %v1759_v4 = vsel %vm1059_vm2, %v3732_v40, 0 }
 0x78b   : > { %v1592_v22 = vpop.xlane.xlu0 %1591 }
 0x78c   : > { %v1593_v23 = vmul.f32 0.03125, %v1592_v22 }
 0x78e   : > { %v1594_v24 = vadd.f32 1e-05, %v1593_v23 }
 0x790   : > { %3046 = vrsqrt.f32 %v1594_v24 }
 0x79a   : > { %v3047_v25 = vpop.eup %3046 }
 0x79b   : > { %v1596_v27 = vmul.f32 %v3047_v25, %v1588_v16 }
 0x79d   : > { %v1603_v29 = vmul.f32 %v2676_v26, %v1596_v27 }
 0x79f   : > { %v3721_v30 = vadd.f32 %v2677_v28, %v1603_v29 }
 0x7a1   : > { %v1611_v31 = vadd.f32 %v3721_v30, %v918_v6  ;;  %v2678_v6 = vld [vmem:[%s3879_s12] ss:$0 sm:$0xff] }
 0x7a3   : > { %v1612_v32 = vpack.c.bf16 %v1611_v31, %v1611_v31 }
 0x7a5   : > { %2853 = vmatmul.mubr.msk.bf16.vlgmr.msra.gmra.mrb[20].mxu1 %vm944_vm1, %v1612_v32 }
 0x7a6   : > { %2866 = vmatprep.mubr.msk.bf16.mxu1 %vm3236_vm0, %v3235_v0  ;;  %2865 = vmatpush3.bf16.xpose.msra.mxu1 %v1759_v4 }
 0x7a7   : > { %2876 = vmatprep.subr.bf16.mxu1 %v3235_v0 }
 0x7b3   : > { %v1864_v44 = vpop.permute.xlu0 %1863 }
 0x7b4   : > { %v1869_v48 = vsel %vm1059_vm2, %v1864_v44, 0 }
 0x878   : > { %v1673_v41 = vpop.f32.mrb[20].mxu1 }
 0x879   : > { %v1674_v42 = vadd.f32 %v2678_v6, %v1673_v41  ;;  %v2854_v43 = vpop.f32.mrb[21].mxu1 }
 0x87a   : > { %v1676_v45 = vpop.f32.mrb[22].mxu1 }
 0x87b   : > { %v1679_v46 = vpack.c.bf16 %v1674_v42, %v1674_v42  ;;  %v2855_v47 = vpop.f32.mrb[23].mxu1 }
 0x87d   : > { %1861 = vrot.lane.b32.xlu1 %v1679_v46, %s3237_s29  ;;  %1969 = vrot.lane.b32.xlu0 %v1679_v46, %s3242_s5  ;;  %s3946_s29 = smov 88  }
 0x87e   : > { %2867 = vmatmul.mubr.msk.bf16.vlgmr.msra.gmra.mrb[24].mxu1 %vm1059_vm2, %v1679_v46 }
 0x87f   : > { %2877 = vmatpush3.bf16.xpose.msra.mxu1 %v1869_v48  ;;  %2878 = vmatprep.mubr.msk.bf16.mxu1 %vm3236_vm0, %v3235_v0 }
 0x880   : > { %2888 = vmatprep.subr.bf16.mxu1 %v3235_v0 }
 0x881   : > { %1971 = vrot.lane.b32.xlu1 %v3732_v40, %s3242_s5  ;;  %2077 = vrot.lane.b32.xlu0 %v1679_v46, %s3243_s1  ;;  %s3947_s5 = smov 96  }
 0x885   : > { %2079 = vrot.lane.b32.xlu1 %v3732_v40, %s3243_s1  ;;  %s3948_s1 = smov 72  }
 0x8ef   : > { %v1862_v49 = vpop.permute.xlu1 %1861  ;;  %v1970_v53 = vpop.permute.xlu0 %1969 }
 0x8f0   : > { %2879 = vmatmul.mubr.msk.bf16.vlgmr.msra.gmra.mrb[28].mxu1 %vm1059_vm2, %v1862_v49 }
 0x8f1   : > { %2890 = vmatprep.mubr.msk.bf16.mxu1 %vm3236_vm0, %v3235_v0 }
 0x8f3   : > { %v1972_v50 = vpop.permute.xlu1 %1971  ;;  %v2078_v55 = vpop.permute.xlu0 %2077 }
 0x8f4   : > { %v1977_v51 = vsel %vm1059_vm2, %v1972_v50, 0 }
 0x8f5   : > { %2889 = vmatpush3.bf16.xpose.msra.mxu1 %v1977_v51 }
 0x8f6   : > { %2900 = vmatprep.subr.bf16.mxu1 %v3235_v0 }
 0x8f7   : > { %v2080_v52 = vpop.permute.xlu1 %2079 }
 0x8f8   : > { %v2085_v54 = vsel %vm1059_vm2, %v2080_v52, 0 }
 0x8fc   : > { %2891 = vmatmul.mubr.msk.bf16.vlgmr.msra.gmra.mrb[32].mxu1 %vm1059_vm2, %v1970_v53 }
 0x8fd   : > { %2901 = vmatpush3.bf16.xpose.msra.mxu1 %v2085_v54  ;;  %2902 = vmatprep.mubr.msk.bf16.mxu1 %vm3236_vm0, %v3235_v0 }
 0x8fe   : > { %2912 = vmatprep.subr.bf16.mxu1 %v3235_v0 }
 0x904   : > { %2903 = vmatmul.mubr.msk.bf16.vlgmr.msra.gmra.mrb[36].mxu1 %vm1059_vm2, %v2078_v55 }
 0x905   : > { %2916 = vmatprep.mubr.msk.bf16.mxu1 %vm3236_vm0, %v3235_v0 }
 0x951   : > { %v1795_v56 = vpop.f32.mrb[24].mxu1 }
 0x952   : > { %v2868_v57 = vpop.f32.mrb[25].mxu1  ;;  %v1801_v58 = vsel %vm1509_vm4, %v1795_v56, -inf }
 0x953   : > { %1802 = vmax.xlane.f32.xlu1 %v1801_v58  ;;  %v1798_v59 = vpop.f32.mrb[26].mxu1 }
 0x954   : > { %v2869_v60 = vpop.f32.mrb[27].mxu1 }
 0x9c3   : > { %v1905_v61 = vpop.f32.mrb[28].mxu1 }
 0x9c4   : > { %v2880_v62 = vpop.f32.mrb[29].mxu1  ;;  %v1911_v63 = vsel %vm1509_vm4, %v1905_v61, -inf }
 0x9c5   : > { %1912 = vmax.xlane.f32.xlu0 %v1911_v63  ;;  %v1908_v1 = vpop.f32.mrb[30].mxu1  ;;  %v3022_v62 = vld [vmem:[%s3882_s15] sm:$0xff]   ;;  %v3023_v63 = vld [vmem:[%s3882_s15 + $0x8] sm:$0xff]  }
 0x9c6   : > { %v2881_v2 = vpop.f32.mrb[31].mxu1  ;;  %2913 = vmatpush3.bf16.msra.mxu1 %v3022_v62 }
 0x9c7   : > { %2914 = vmatprep.subr.bf16.mxu1 %v3235_v0 }
 0x9ca   : > { %2915 = vmatpush3.bf16.msra.mxu1 %v3023_v63 }
 0x9cb   : > { %2928 = vmatprep.subr.bf16.mxu1 %v3235_v0 }
 0x9cf   : > { %v2013_v7 = vpop.f32.mrb[32].mxu1 }
 0x9d0   : > { %v2892_v8 = vpop.f32.mrb[33].mxu1  ;;  %v2019_v9 = vsel %vm1509_vm4, %v2013_v7, -inf }
 0x9d1   : > { %2020 = vmax.xlane.f32.xlu0 %v2019_v9  ;;  %v2016_v10 = vpop.f32.mrb[34].mxu1 }
 0x9d2   : > { %v2893_v11 = vpop.f32.mrb[35].mxu1 }
 0x9d7   : > { %v2121_v12 = vpop.f32.mrb[36].mxu1 }
 0x9d8   : > { %v2904_v13 = vpop.f32.mrb[37].mxu1  ;;  %v2127_v14 = vsel %vm1509_vm4, %v2121_v12, -inf }
 0x9d9   : > { %2128 = vmax.xlane.f32.xlu1 %v2127_v14  ;;  %v2124_v15 = vpop.f32.mrb[38].mxu1 }
 0x9da   : > { %v2905_v16 = vpop.f32.mrb[39].mxu1 }
 0x9e0   : > { %v1803_v17 = vpop.xlane.xlu1 %1802 }
 0x9e1   : > { %v1804_v18 = vsub.f32 %v1795_v56, %v1803_v17 }
 0x9e3   : > { %v1805_v19 = vmul.f32 1.442695, %v1804_v18 }
 0x9e5   : > { %3048 = vpow2.f32 %v1805_v19 }
 0x9ef   : > { %v3049_v3 = vpop.eup %3048 }
 0x9f0   : > { %v1807_v5 = vsel %vm1509_vm4, %v3049_v3, 0.0 }
 0x9f1   : > { %1808 = vadd.xlane.f32.xlu0 %v1807_v5 }
 0xa52   : > { %v1913_v20 = vpop.xlane.xlu0 %1912 }
 0xa53   : > { %v1914_v21 = vsub.f32 %v1905_v61, %v1913_v20 }
 0xa55   : > { %v1915_v22 = vmul.f32 1.442695, %v1914_v21 }
 0xa57   : > { %3050 = vpow2.f32 %v1915_v22 }
 0xa5e   : > { %v2021_v23 = vpop.xlane.xlu0 %2020 }
 0xa5f   : > { %v2022_v24 = vsub.f32 %v2013_v7, %v2021_v23 }
 0xa61   : > { %v3051_v25 = vpop.eup %3050  ;;  %v2023_v26 = vmul.f32 1.442695, %v2022_v24 }
 0xa62   : > { %v1917_v27 = vsel %vm1509_vm4, %v3051_v25, 0.0 }
 0xa63   : > { %3052 = vpow2.f32 %v2023_v26  ;;  %1918 = vadd.xlane.f32.xlu1 %v1917_v27 }
 0xa66   : > { %v2129_v31 = vpop.xlane.xlu1 %2128 }
 0xa67   : > { %v2130_v32 = vsub.f32 %v2121_v12, %v2129_v31 }
 0xa69   : > { %v2131_v33 = vmul.f32 1.442695, %v2130_v32  ;;  %v3024_v32 = vld [vmem:[%s3886_s19] sm:$0xff]  }
 0xa6b   : > { %3054 = vpow2.f32 %v2131_v33  ;;  %v3025_v33 = vld [vmem:[%s3886_s19 + $0x8] sm:$0xff]  }
 0xa6d   : > { %v3053_v28 = vpop.eup %3052 }
 0xa6e   : > { %v2025_v29 = vsel %vm1509_vm4, %v3053_v28, 0.0 }
 0xa6f   : > { %2026 = vadd.xlane.f32.xlu0 %v2025_v29 }
 0xa74   : > { %1923 = vrot.lane.b32.xlu1 %v3732_v40, %s3946_s29 }
 0xa75   : > { %v3055_v34 = vpop.eup %3054 }
 0xa76   : > { %v2133_v35 = vsel %vm1509_vm4, %v3055_v34, 0.0 }
 0xa7e   : > { %v1809_v36 = vpop.xlane.xlu0 %1808 }
 0xa7f   : > { %3056 = vrcp.f32 %v1809_v36 }
 0xa85   : > { %1814 = vrot.lane.b32.xlu0 %v3732_v40, %s3947_s5  ;;  %s3954_s5 = sld [smem:[#allocation27_spill]] }
 0xa89   : > { %2139 = vrot.lane.b32.xlu0 %v3732_v40, %s3948_s1  ;;  %v3057_v38 = vpop.eup %3056 }
 0xa8a   : > { %v1811_v4 = vmul.f32 %v3057_v38, %v3049_v3  ;;  %v2695_v3 = vld [vmem:[%s3883_s16] ss:$0 sm:$0xff] }
 0xa8b   : > { %s913_s1 = scalar_lea.vmem %s3954_s5, %s2717_s26 }
 0xa8c   : > { %v1812_v41 = vpack.c.bf16 %v1811_v4, %v1811_v4 }
 0xa98   : > { %2134 = vadd.xlane.f32.xlu1 %v2133_v35 }
 0xaa9   : > { %2031 = vrot.lane.b32.xlu1 %v3732_v40, %s3949_s4 }
 0xaf0   : > { %v1919_v37 = vpop.xlane.xlu1 %1918 }
 0xaf1   : > { %3058 = vrcp.f32 %v1919_v37 }
 0xaf4   : > { %v1924_v43 = vpop.permute.xlu1 %1923 }
 0xafb   : > { %v3059_v42 = vpop.eup %3058 }
 0xafc   : > { %v2027_v39 = vpop.xlane.xlu0 %2026  ;;  %v1921_v40 = vmul.f32 %v3059_v42, %v3051_v25 }
 0xafd   : > { %3060 = vrcp.f32 %v2027_v39  ;;  %v2699_v39 = vld [vmem:[%s3884_s17] ss:$0 sm:$0xff] }
 0xafe   : > { %v1922_v44 = vpack.c.bf16 %v1921_v40, %v1921_v40  ;;  %v3028_v40 = vld [vmem:[%s3888_s21 + $0x10] sm:$0xff]  }
 0xb00   : > { %v1815_v6 = vpop.permute.xlu0 %1814 }
 0xb01   : > { %2871 = vmatpush3.bf16.msra.mxu0 %v1815_v6  ;;  %v2700_v6 = vld [vmem:[#allocation2] ss:$0 sm:$0xff] }
 0xb02   : > { %2882 = vmatprep.subr.bf16.mxu0 %v3235_v0 }
 0xb04   : > { %2873 = vmatmul.mubr.msk.bf16.vlgmr.msra.gmra.mrb[28].mxu0 %vm1509_vm4, %v1812_v41  ;;  %v2140_v50 = vpop.permute.xlu0 %2139 }
 0xb05   : > { %2883 = vmatpush3.bf16.msra.mxu0 %v1924_v43  ;;  %2884 = vmatprep.mubr.msk.bf16.mxu0 %vm3236_vm0, %v3235_v0 }
 0xb06   : > { %2894 = vmatprep.subr.bf16.mxu0 %v3235_v0 }
 0xb07   : > { %v3061_v45 = vpop.eup %3060 }
 0xb08   : > { %v2029_v47 = vmul.f32 %v3061_v45, %v3053_v28  ;;  %v2701_v45 = vld [vmem:[#allocation4] ss:$0 sm:$0xff] }
 0xb0a   : > { %v2030_v49 = vpack.c.bf16 %v2029_v47, %v2029_v47 }
 0xb0c   : > { %2885 = vmatmul.mubr.msk.bf16.vlgmr.msra.gmra.mrb[32].mxu0 %vm1509_vm4, %v1922_v44  ;;  %v3029_v44 = vld [vmem:[%s3888_s21 + $0x18] sm:$0xff]  }
 0xb0d   : > { %2896 = vmatprep.mubr.msk.bf16.mxu0 %vm3236_vm0, %v3235_v0 }
 0xb25   : > { %v2135_v46 = vpop.xlane.xlu1 %2134 }
 0xb26   : > { %3062 = vrcp.f32 %v2135_v46 }
 0xb29   : > { %v2032_v48 = vpop.permute.xlu1 %2031 }
 0xb2a   : > { %2895 = vmatpush3.bf16.msra.mxu0 %v2032_v48 }
 0xb2b   : > { %2906 = vmatprep.subr.bf16.mxu0 %v3235_v0 }
 0xb2d   : > { %2897 = vmatmul.mubr.msk.bf16.vlgmr.msra.gmra.mrb[36].mxu0 %vm1509_vm4, %v2030_v49 }
 0xb2e   : > { %2907 = vmatpush3.bf16.msra.mxu0 %v2140_v50  ;;  %2908 = vmatprep.mubr.msk.bf16.mxu0 %vm3236_vm0, %v3235_v0 }
 0xb2f   : > { %2920 = vmatprep.subr.bf16.mxu0 %v3235_v0 }
 0xb30   : > { %v3063_v51 = vpop.eup %3062 }
 0xb31   : > { %v2137_v52 = vmul.f32 %v3063_v51, %v3055_v34  ;;  %v3027_v34 = vld [vmem:[%s3888_s21 + $0x8] sm:$0xff]  }
 0xb33   : > { %v2138_v53 = vpack.c.bf16 %v2137_v52, %v2137_v52 }
 0xb35   : > { %2909 = vmatmul.mubr.msk.bf16.vlgmr.msra.gmra.mrb[40].mxu0 %vm1509_vm4, %v2138_v53  ;;  %v2705_v53 = vld [vmem:[#allocation6] ss:$0 sm:$0xff] }
 0xb36   : > { %2924 = vmatprep.mubr.msk.bf16.mxu0 %vm3236_vm0, %v3235_v0  ;;  %2921 = vmatpush3.bf16.msra.mxu0 %v3024_v32 }
 0xb37   : > { %2922 = vmatprep.subr.bf16.mxu0 %v3235_v0 }
 0xb3a   : > { %2923 = vmatpush3.bf16.msra.mxu0 %v3025_v33 }
 0xbd7   : > { %v1854_v54 = vpop.f32.mrb[28].mxu0 }
 0xbd8   : > { %v2874_v55 = vpop.f32.mrb[29].mxu0 }
 0xbd9   : > { %v1857_v56 = vpop.f32.mrb[30].mxu0 }
 0xbda   : > { %v2875_v57 = vpop.f32.mrb[31].mxu0 }
 0xbdf   : > { %v1963_v58 = vpop.f32.mrb[32].mxu0 }
 0xbe0   : > { %2186 = vrot.lane.b32.xlu1 %v1963_v58, %s3950_s28  ;;  %v2886_v59 = vpop.f32.mrb[33].mxu0 }
 0xbe1   : > { %v1966_v60 = vpop.f32.mrb[34].mxu0 }
 0xbe2   : > { %v2887_v61 = vpop.f32.mrb[35].mxu0 }
 0xc00   : > { %v2071_v1 = vpop.f32.mrb[36].mxu0 }
 0xc01   : > { %2190 = vrot.lane.b32.xlu0 %v2071_v1, %s3951_s0  ;;  %v2898_v2 = vpop.f32.mrb[37].mxu0  ;;  %s3953_s0 = sld [smem:[#allocation26_spill]] }
 0xc02   : > { %v2074_v7 = vpop.f32.mrb[38].mxu0 }
 0xc03   : > { %v2899_v8 = vpop.f32.mrb[39].mxu0 }
 0xc08   : > { %v2179_v9 = vpop.f32.mrb[40].mxu0 }
 0xc09   : > { %2194 = vrot.lane.b32.xlu1 %v2179_v9, %s3952_s7  ;;  %v2910_v10 = vpop.f32.mrb[41].mxu0 }
 0xc0a   : > { %v2182_v11 = vpop.f32.mrb[42].mxu0  ;;  %v2711_v10 = vld [vmem:[#allocation7] ss:$0 sm:$0xff] }
 0xc0b   : > { %v2911_v12 = vpop.f32.mrb[43].mxu0 }
 0xc0c   : > { %v2712_v12 = vld [vmem:[#allocation9] ss:$0 sm:$0xff] }
 0xc52   : > { %v2187_v13 = vpop.permute.xlu1 %2186 }
 0xc53   : > { %v2197_v15 = vsel %vm1059_vm2, %v1854_v54, %v2187_v13 }
 0xc73   : > { %v2191_v14 = vpop.permute.xlu0 %2190 }
 0xc74   : > { %v2198_v16 = vsel %vm1509_vm4, %v2197_v15, %v2191_v14 }
 0xc7b   : > { %v2195_v17 = vpop.permute.xlu1 %2194 }
 0xc7c   : > { %v2199_v18 = vsel %vm1511_vm5, %v2198_v16, %v2195_v17 }
 0xc7d   : > { %v2200_v19 = vpack.c.bf16 %v2199_v18, %v2199_v18 }
 0xc7f   : > { %2917 = vmatmul.mubr.msk.bf16.vlgmr.msra.gmra.mrb[40].mxu1 %vm944_vm1, %v2200_v19 }
 0xc80   : > { %2936 = vmatprep.mubr.msk.bf16.mxu1 %vm3236_vm0, %v3235_v0 }
 0xd52   : > { %v2261_v5 = vpop.f32.mrb[40].mxu1 }
 0xd53   : > { %v2262_v20 = vadd.f32 %v2695_v3, %v2261_v5  ;;  %v2918_v21 = vpop.f32.mrb[41].mxu1 }
 0xd54   : > { %v2264_v22 = vpop.f32.mrb[42].mxu1 }
 0xd55   : > { %v2919_v23 = vpop.f32.mrb[43].mxu1  ;;  %v2267_v24 = vadd.f32 %v2262_v20, %v3721_v30  ;;  %v3026_v30 = vld [vmem:[%s3888_s21] sm:$0xff]  }
 0xd56   : > { %2929 = vmatpush3.bf16.msra.mxu1 %v3026_v30  ;;  %v2713_v23 = vld [vmem:[%s3892_s25] ss:$0 sm:$0xff] }
 0xd57   : > { %v2270_v25 = vsel %vm944_vm1, %v2267_v24, 0.0  ;;  %2930 = vmatprep.subr.bf16.mxu1 %v3235_v0 }
 0xd58   : > { %2271 = vadd.xlane.f32.xlu0 %v2270_v25  ;;  %v2714_v25 = vld [vmem:[%s3953_s0] ss:$0 sm:$0xff] }
 0xd5a   : > { %2931 = vmatpush3.bf16.msra.mxu1 %v3027_v34 }
 0xd5b   : > { %2932 = vmatprep.subr.bf16.mxu1 %v3235_v0 }
 0xd5e   : > { %2933 = vmatpush3.bf16.msra.mxu1 %v3028_v40 }
 0xd5f   : > { %2934 = vmatprep.subr.bf16.mxu1 %v3235_v0 }
 0xd62   : > { %2935 = vmatpush3.bf16.msra.mxu1 %v3029_v44 }
 0xde5   : > { %v2272_v26 = vpop.xlane.xlu0 %2271 }
 0xde6   : > { %v2273_v27 = vmul.f32 0.03125, %v2272_v26 }
 0xde8   : > { %v2274_v28 = vsub.f32 %v2267_v24, %v2273_v27 }
 0xdea   : > { %v2275_v29 = vmul.f32 %v2274_v28, %v2274_v28 }
 0xdec   : > { %v2276_v31 = vsel %vm944_vm1, %v2275_v29, 0.0 }
 0xded   : > { %2277 = vadd.xlane.f32.xlu1 %v2276_v31 }
 0xe7a   : > { %v2278_v35 = vpop.xlane.xlu1 %2277 }
 0xe7b   : > { %v2279_v36 = vmul.f32 0.03125, %v2278_v35 }
 0xe7d   : > { %v2280_v37 = vadd.f32 1e-05, %v2279_v36 }
 0xe7f   : > { %3064 = vrsqrt.f32 %v2280_v37 }
 0xe89   : > { %v3065_v38 = vpop.eup %3064 }
 0xe8a   : > { %v2282_v4 = vmul.f32 %v3065_v38, %v2274_v28 }
 0xe8c   : > { %v2289_v41 = vmul.f32 %v2699_v39, %v2282_v4 }
 0xe8e   : > { %v2296_v42 = vadd.f32 %v2700_v6, %v2289_v41 }
 0xe90   : > { %v2297_v43 = vpack.c.bf16 %v2296_v42, %v2296_v42 }
 0xe92   : > { %2925 = vmatmul.mubr.msk.bf16.vlgmr.msra.gmra.mrb[44].mxu0 %vm944_vm1, %v2297_v43 }
 0xf65   : > { %v2358_v46 = vpop.f32.mrb[44].mxu0 }
 0xf66   : > { %v2359_v47 = vadd.f32 %v2701_v45, %v2358_v46  ;;  %v2926_v48 = vpop.f32.mrb[45].mxu0 }
 0xf67   : > { %v2361_v49 = vpop.f32.mrb[46].mxu0 }
 0xf68   : > { %v2364_v50 = vmax.f32 %v2359_v47, 0.0  ;;  %v2927_v51 = vpop.f32.mrb[47].mxu0 }
 0xf6a   : > { %v2365_v52 = vpack.c.bf16 %v2364_v50, %v2364_v50 }
 0xf6c   : > { %2937 = vmatmul.mubr.msk.bf16.vlgmr.msra.gmra.mrb[44].mxu1 %vm2405_vm6, %v2365_v52 }
0x103f   : > { %v2443_v54 = vpop.f32.mrb[44].mxu1 }
0x1040   : > { %v2444_v55 = vadd.f32 %v2705_v53, %v2443_v54  ;;  %v2938_v56 = vpop.f32.mrb[45].mxu1 }
0x1041   : > { %v2446_v0 = vpop.f32.mrb[46].mxu1 }
0x1042   : > { %v2939_v57 = vpop.f32.mrb[47].mxu1  ;;  %v2449_v58 = vadd.f32 %v2444_v55, %v2296_v42 }
0x1044   : > { %v2452_v59 = vsel %vm944_vm1, %v2449_v58, 0.0 }
0x1045   : > { %2453 = vadd.xlane.f32.xlu0 %v2452_v59 }
0x10d2   : > { %v2454_v60 = vpop.xlane.xlu0 %2453 }
0x10d3   : > { %v2455_v61 = vmul.f32 0.03125, %v2454_v60 }
0x10d5   : > { %v2456_v62 = vsub.f32 %v2449_v58, %v2455_v61 }
0x10d7   : > { %v2457_v63 = vmul.f32 %v2456_v62, %v2456_v62 }
0x10d9   : > { %v2458_v1 = vsel %vm944_vm1, %v2457_v63, 0.0 }
0x10da   : > { %2459 = vadd.xlane.f32.xlu0 %v2458_v1 }
0x1167   : > { %v2460_v2 = vpop.xlane.xlu0 %2459 }
0x1168   : > { %v2461_v7 = vmul.f32 0.03125, %v2460_v2 }
0x116a   : > { %v2462_v8 = vadd.f32 1e-05, %v2461_v7 }
0x116c   : > { %3066 = vrsqrt.f32 %v2462_v8 }
0x1176   : > { %v3067_v9 = vpop.eup %3066 }
0x1177   : > { %v2464_v11 = vmul.f32 %v3067_v9, %v2456_v62 }
0x1179   : > { %v2471_v13 = vmul.f32 %v2711_v10, %v2464_v11 }
0x117b   : > { %v2478_v14 = vadd.f32 %v2712_v12, %v2471_v13 }
0x117d   : > { %v2481_v15 = vsel %vm944_vm1, %v2478_v14, 0.0 }
0x117e   : > { %2482 = vadd.xlane.f32.xlu1 %v2481_v15 }
0x120b   : > { %v2483_v16 = vpop.xlane.xlu1 %2482 }
0x120c   : > { %v2484_v17 = vmul.f32 0.03125, %v2483_v16 }
0x120e   : > { %v2485_v18 = vsub.f32 %v2478_v14, %v2484_v17 }
0x1210   : > { %v2486_v19 = vmul.f32 %v2485_v18, %v2485_v18 }
0x1212   : > { %v2487_v3 = vsel %vm944_vm1, %v2486_v19, 0.0 }
0x1213   : > { %2488 = vadd.xlane.f32.xlu0 %v2487_v3 }
0x12a0   : > { %v2489_v5 = vpop.xlane.xlu0 %2488 }
0x12a1   : > { %v2490_v20 = vmul.f32 0.03125, %v2489_v5 }
0x12a3   : > { %v2491_v21 = vadd.f32 1e-05, %v2490_v20 }
0x12a5   : > { %3068 = vrsqrt.f32 %v2491_v21 }
0x12af   : > { %v3069_v22 = vpop.eup %3068 }
0x12b0   : > { %v2493_v24 = vmul.f32 %v3069_v22, %v2485_v18 }
0x12b2   : > { %v2500_v26 = vmul.f32 %v2713_v23, %v2493_v24 }
0x12b4   : > { %v2507_v27 = vadd.f32 %v2714_v25, %v2500_v26 }
0x12b6   : > { %2508 = vst.msk [vmem:[%s913_s1] sm:$0xff] %vm944_vm1, %v2507_v27 }
0x12b7 PF: > { %s3955_s4 = sld [smem:[#allocation13_spill]] }
0x12bd   : > { %s40_s7 = sadd.s32 1, %s3955_s4  }
0x12be   : > { %p37_p9 = scmp.ge.s32.totalorder %s40_s7, 4  }
0x12c0   :  { %39 = sbr.rel (!%p37_p9) target bundleno = 18 (0x12), region = 185 }
0x12c7   :  { %2528 = vsyncpa [#allocation3], 1 }
0x12c8   :  { %2530 = vsyncpa [#allocation3 + $0x1], 1 }
0x12c9   :  { %2531 = vsyncpa [#allocation5], 1 }
0x12ca   :  { %2532 = vsyncpa [#allocation8], 1 }

</bundles_post_ra>
